<compile_context>
chip_gen: v7x
topology: tpu7x:2x2x1
jax: 0.10.0
libtpu: 0.0.40
codegen_flags: <defaults>
</compile_context>

<pallas_src>
import functools

import jax
import jax.numpy as jnp
from jax import lax
from jax.experimental import pallas as pl
from jax.experimental.pallas import tpu as pltpu


def m3_kernel(x_ref, w1_ref, w2_ref, c_ref, m_ref, o_ref, ext_ref, *,
              Wp, B, S, base):
    DW = B * S                       # computed lane width (multiple of 128)
    NE = ext_ref.shape[1]
    CO = w1_ref.shape[0]             # 32
    # 3x3 tap offsets in the flattened padded image.
    offs = tuple(dy * Wp + dx for dy in (-1, 0, 1) for dx in (-1, 0, 1))

    def conv3x3(src_ref, w_ref):
        # im2col: 9 static lane slices of the *ref* stacked on the sublane
        # axis, contracted in ONE MXU matmul.  BN scale is already folded
        # into w_ref, so no per-channel scale multiply is needed afterwards.
        taps = [src_ref[:, base + o: base + o + DW] for o in offs]
        slab = jnp.concatenate(taps, axis=0)                    # (9*C, DW)
        return jnp.dot(w_ref[...], slab,
                       preferred_element_type=jnp.float32)      # (CO, DW)

    # Zero only the margin lanes actually read by the +/-(Wp+1) taps; the
    # data region [base, base+DW) is fully overwritten below.
    ext_ref[:, 0:base] = jnp.zeros((CO, base), ext_ref.dtype)
    ext_ref[:, base + DW:NE] = jnp.zeros((CO, NE - base - DW), ext_ref.dtype)

    # ---- layer 1: conv3x3 (scale-folded) + bias + ReLU + interior mask -----
    y1 = jnp.maximum(conv3x3(x_ref, w1_ref) + c_ref[:, 0:1], 0.0)
    # Masked store: zeros on the pad ring / gap lanes give conv2 its padding.
    ext_ref[:, base:base + DW] = y1 * m_ref[...]

    # ---- layer 2: conv3x3 (scale-folded) + bias + ReLU ----------------------
    y2 = jnp.maximum(conv3x3(ext_ref, w2_ref) + c_ref[:, 1:2], 0.0)

    # ---- layer 3: 1x1 conv (32 -> 1) + bias, lane-dense (1, DW) result ------
    y3 = jnp.sum(y2 * c_ref[:, 2:3], axis=0, keepdims=True) + c_ref[0:1, 3:4]
    o_ref[...] = y3


def m3_forward(x_nchw, params):
    w1, sb1, w2, sb2, w3, b3 = params
    B, C, H, W = x_nchw.shape
    Hp, Wp = H + 2, W + 2
    Np = Hp * Wp
    base = 128                                      # aligned leading margin
    S = ((Np + Wp + 1 + 127) // 128) * 128          # per-image lane stride
    DW = B * S
    NE = base + DW + 128                            # extended lane width

    # ---- layout plumbing (wrapper-side) ------------------------------------
    x = x_nchw.astype(jnp.float32)
    xp = jnp.pad(x, ((0, 0), (0, 0), (1, 1), (1, 1)))            # (B,C,Hp,Wp)
    xpf = jnp.pad(xp.reshape(B, C, Np), ((0, 0), (0, 0), (0, S - Np)))
    x_ext = jnp.pad(jnp.transpose(xpf, (1, 0, 2)).reshape(C, DW),
                    ((0, 0), (base, NE - base - DW)))            # (C, NE)

    # Fold BN scales into the conv weights; only bias + ReLU stay in-kernel.
    s1, t1 = sb1[0], sb1[1]
    s2, t2 = sb2[0], sb2[1]
    w1_2d = (w1.reshape(9 * C, 32) * s1[None, :]).T              # (32, 9*C)
    w2_2d = (w2.reshape(9 * 32, 32) * s2[None, :]).T             # (32, 288)

    # Pack all small per-channel constants into ONE (32, 4) block:
    #   col0 = bias1, col1 = bias2, col2 = 1x1-conv weights, col3 = b3.
    consts = jnp.concatenate(
        [t1.reshape(32, 1), t2.reshape(32, 1), w3.reshape(32, 1),
         jnp.broadcast_to(b3.reshape(1, 1), (32, 1))], axis=1)

    # Interior mask precomputed once: 1 on real pixels, 0 on the pad ring and
    # on the alignment-gap lanes between / after the images.
    p = jnp.arange(Np)
    qi, qj = p // Wp, p % Wp
    m = ((qi >= 1) & (qi <= H) & (qj >= 1) & (qj <= W)).astype(jnp.float32)
    mask = jnp.tile(jnp.pad(m, (0, S - Np)), B).reshape(1, DW)

    kernel = functools.partial(m3_kernel, Wp=Wp, B=B, S=S, base=base)
    out = pl.pallas_call(
        kernel,
        out_shape=jax.ShapeDtypeStruct((1, DW), jnp.float32),
        grid_spec=pltpu.PrefetchScalarGridSpec(
            num_scalar_prefetch=0,
            grid=(1,),
            in_specs=[
                pl.BlockSpec((C, NE), lambda i: (0, 0)),
                pl.BlockSpec((32, 9 * C), lambda i: (0, 0)),
                pl.BlockSpec((32, 9 * 32), lambda i: (0, 0)),
                pl.BlockSpec((32, 4), lambda i: (0, 0)),
                pl.BlockSpec((1, DW), lambda i: (0, 0)),
            ],
            out_specs=pl.BlockSpec((1, DW), lambda i: (0, 0)),
            scratch_shapes=[pltpu.VMEM((32, NE), jnp.float32)],
        ),
        compiler_params=pltpu.CompilerParams(
            dimension_semantics=("arbitrary",)),
    )(x_ext, w1_2d, w2_2d, consts, mask)

    # Drop gap lanes + pad ring, restore NCHW (B, 1, H, W).
    out = out.reshape(B, S)[:, :Np].reshape(B, Hp, Wp)[:, 1:H + 1, 1:W + 1]
    return out[:, None, :, :]


def init_params(key, cin, eps=1e-5):
    ks = jax.random.split(key, 14)

    def convw(k, kh, kw, ci, co):
        fan_in = kh * kw * ci
        return jax.random.normal(k, (kh, kw, ci, co), jnp.float32) / jnp.sqrt(fan_in)

    def bn_stats(kg, kb, km, kv, c):
        g = 1.0 + 0.1 * jax.random.normal(kg, (c,), jnp.float32)
        beta = 0.1 * jax.random.normal(kb, (c,), jnp.float32)
        mean = 0.1 * jax.random.normal(km, (c,), jnp.float32)
        var = jax.random.uniform(kv, (c,), jnp.float32, minval=0.5, maxval=1.5)
        return g, beta, mean, var

    # layer 1: conv(cin->32) + BN
    w1 = convw(ks[0], 3, 3, cin, 32)
    b1 = 0.1 * jax.random.normal(ks[1], (32,), jnp.float32)
    g1, be1, m1, v1 = bn_stats(ks[2], ks[3], ks[4], ks[5], 32)
    s1 = g1 / jnp.sqrt(v1 + eps)
    sb1 = jnp.stack([s1, (b1 - m1) * s1 + be1])              # (2, 32)

    # layer 2: conv(32->32) + BN
    w2 = convw(ks[6], 3, 3, 32, 32)
    b2 = 0.1 * jax.random.normal(ks[7], (32,), jnp.float32)
    g2, be2, m2, v2 = bn_stats(ks[8], ks[9], ks[10], ks[11], 32)
    s2 = g2 / jnp.sqrt(v2 + eps)
    sb2 = jnp.stack([s2, (b2 - m2) * s2 + be2])              # (2, 32)

    # layer 3: conv(32->1, 1x1)
    w3 = convw(ks[12], 1, 1, 32, 1).reshape(32, 1)
    b3 = 0.1 * jax.random.normal(ks[13], (1, 1), jnp.float32)

    return w1, sb1, w2, sb2, w3, b3


def m3_reference(x_nchw, params):
    """Pure-JAX (XLA conv) reference with the same fused scale/bias semantics."""
    w1, sb1, w2, sb2, w3, b3 = params
    dn = ("NHWC", "HWIO", "NHWC")
    x = jnp.transpose(x_nchw, (0, 2, 3, 1)).astype(jnp.float32)
    y = lax.conv_general_dilated(x, w1, (1, 1), "SAME", dimension_numbers=dn)
    y = jnp.maximum(y * sb1[0] + sb1[1], 0.0)
    y = lax.conv_general_dilated(y, w2, (1, 1), "SAME", dimension_numbers=dn)
    y = jnp.maximum(y * sb2[0] + sb2[1], 0.0)
    y = lax.conv_general_dilated(y, w3.reshape(1, 1, 32, 1), (1, 1), "SAME",
                                 dimension_numbers=dn)
    y = y + b3[0, 0]
    return jnp.transpose(y, (0, 3, 1, 2))


if __name__ == "__main__":
    B, C, H, W = 2, 4, 16, 16
    key = jax.random.PRNGKey(0)
    kx, kp = jax.random.split(key)

    x = jax.random.normal(kx, (B, C, H, W), jnp.float32)
    params = init_params(kp, C)

    out = m3_forward(x, params)
    out = jax.block_until_ready(out)

    assert out.shape == (B, 1, H, W), out.shape

    ref = m3_reference(x, params)
    if not jnp.allclose(out, ref, atol=1e-3, rtol=1e-3):
        max_err = jnp.max(jnp.abs(out - ref))
        raise AssertionError(f"mismatch vs reference, max abs err = {max_err}")

    print("KERNEL_OK")
</pallas_src>

<mosaic_0001>
module attributes {stable_mosaic.version = 11 : i64} {
  func.func @m3_kernel(%arg0: i32, %arg1: memref<4x1024xf32, #tpu.memory_space<vmem>>, %arg2: memref<32x36xf32, #tpu.memory_space<vmem>>, %arg3: memref<32x288xf32, #tpu.memory_space<vmem>>, %arg4: memref<32x4xf32, #tpu.memory_space<vmem>>, %arg5: memref<1x768xf32, #tpu.memory_space<vmem>>, %arg6: memref<1x768xf32, #tpu.memory_space<vmem>>, %arg7: memref<32x1024xf32, #tpu.memory_space<vmem>>) attributes {dimension_semantics = [#tpu.dimension_semantics<arbitrary>], iteration_bounds = array<i64: 1>, scalar_prefetch = 0 : i64, scratch_operands = 1 : i64, tpu.core_type = #tpu.core_type<tc>, window_params = [{pipeline_mode = #tpu.pipeline_mode<synchronous>, transform_indices = @transform_0, window_bounds = array<i64: 4, 1024>}, {pipeline_mode = #tpu.pipeline_mode<synchronous>, transform_indices = @transform_1, window_bounds = array<i64: 32, 36>}, {pipeline_mode = #tpu.pipeline_mode<synchronous>, transform_indices = @transform_2, window_bounds = array<i64: 32, 288>}, {pipeline_mode = #tpu.pipeline_mode<synchronous>, transform_indices = @transform_3, window_bounds = array<i64: 32, 4>}, {pipeline_mode = #tpu.pipeline_mode<synchronous>, transform_indices = @transform_4, window_bounds = array<i64: 1, 768>}, {pipeline_mode = #tpu.pipeline_mode<synchronous>, transform_indices = @transform_5, window_bounds = array<i64: 1, 768>}]} {
    %cst = arith.constant 0.000000e+00 : f32
    %0 = vector.broadcast %cst : f32 to vector<32x128xf32>
    %c0 = arith.constant 0 : index
    %c0_0 = arith.constant 0 : index
    %1 = vector.load %arg7[%c0, %c0_0] : memref<32x1024xf32, #tpu.memory_space<vmem>>, vector<32x128xf32>
    tpu.vector_store %arg7[%c0, %c0_0], %0 {strides = array<i32>} : memref<32x1024xf32, #tpu.memory_space<vmem>>, vector<32x128xf32>,
    %cst_1 = arith.constant 0.000000e+00 : f32
    %2 = vector.broadcast %cst_1 : f32 to vector<32x128xf32>
    %c0_2 = arith.constant 0 : index
    %c896 = arith.constant 896 : index
    %3 = vector.load %arg7[%c0_2, %c896] : memref<32x1024xf32, #tpu.memory_space<vmem>>, vector<32x128xf32>
    tpu.vector_store %arg7[%c0_2, %c896], %2 {strides = array<i32>} : memref<32x1024xf32, #tpu.memory_space<vmem>>, vector<32x128xf32>,
    %c0_3 = arith.constant 0 : index
    %c109 = arith.constant 109 : index
    %4 = vector.load %arg1[%c0_3, %c109] : memref<4x1024xf32, #tpu.memory_space<vmem>>, vector<4x768xf32>
    %c0_4 = arith.constant 0 : index
    %c110 = arith.constant 110 : index
    %5 = vector.load %arg1[%c0_4, %c110] : memref<4x1024xf32, #tpu.memory_space<vmem>>, vector<4x768xf32>
    %c0_5 = arith.constant 0 : index
    %c111 = arith.constant 111 : index
    %6 = vector.load %arg1[%c0_5, %c111] : memref<4x1024xf32, #tpu.memory_space<vmem>>, vector<4x768xf32>
    %c0_6 = arith.constant 0 : index
    %c127 = arith.constant 127 : index
    %7 = vector.load %arg1[%c0_6, %c127] : memref<4x1024xf32, #tpu.memory_space<vmem>>, vector<4x768xf32>
    %c0_7 = arith.constant 0 : index
    %c128 = arith.constant 128 : index
    %8 = vector.load %arg1[%c0_7, %c128] : memref<4x1024xf32, #tpu.memory_space<vmem>>, vector<4x768xf32>
    %c0_8 = arith.constant 0 : index
    %c129 = arith.constant 129 : index
    %9 = vector.load %arg1[%c0_8, %c129] : memref<4x1024xf32, #tpu.memory_space<vmem>>, vector<4x768xf32>
    %c0_9 = arith.constant 0 : index
    %c145 = arith.constant 145 : index
    %10 = vector.load %arg1[%c0_9, %c145] : memref<4x1024xf32, #tpu.memory_space<vmem>>, vector<4x768xf32>
    %c0_10 = arith.constant 0 : index
    %c146 = arith.constant 146 : index
    %11 = vector.load %arg1[%c0_10, %c146] : memref<4x1024xf32, #tpu.memory_space<vmem>>, vector<4x768xf32>
    %c0_11 = arith.constant 0 : index
    %c147 = arith.constant 147 : index
    %12 = vector.load %arg1[%c0_11, %c147] : memref<4x1024xf32, #tpu.memory_space<vmem>>, vector<4x768xf32>
    %13 = tpu.concatenate %4, %5, %6, %7, %8, %9, %10, %11, %12 in 0 : vector<4x768xf32>, vector<4x768xf32>, vector<4x768xf32>, vector<4x768xf32>, vector<4x768xf32>, vector<4x768xf32>, vector<4x768xf32>, vector<4x768xf32>, vector<4x768xf32> -> vector<36x768xf32>
    %c0_12 = arith.constant 0 : index
    %c0_13 = arith.constant 0 : index
    %14 = vector.load %arg2[%c0_12, %c0_13] : memref<32x36xf32, #tpu.memory_space<vmem>>, vector<32x36xf32>
    %cst_14 = arith.constant dense<0.000000e+00> : vector<32x768xf32>
    %15 = tpu.matmul %14, %13, %cst_14 {dimension_numbers = #tpu.dot_dimension_numbers<[1], [0], [0], [1], [0, 0, 1, 1], [], []>} : vector<32x36xf32>, vector<36x768xf32>, vector<32x768xf32> -> vector<32x768xf32>
    %c0_15 = arith.constant 0 : index
    %c0_16 = arith.constant 0 : index
    %16 = vector.load %arg4[%c0_15, %c0_16] : memref<32x4xf32, #tpu.memory_space<vmem>>, vector<32x1xf32>
    %17 = vector.broadcast %16 : vector<32x1xf32> to vector<32x768xf32>
    %18 = arith.addf %15, %17 : vector<32x768xf32>
    %cst_17 = arith.constant 0.000000e+00 : f32
    %19 = vector.broadcast %cst_17 : f32 to vector<32x768xf32>
    %20 = arith.maximumf %18, %19 : vector<32x768xf32>
    %c0_18 = arith.constant 0 : index
    %c0_19 = arith.constant 0 : index
    %21 = vector.load %arg5[%c0_18, %c0_19] : memref<1x768xf32, #tpu.memory_space<vmem>>, vector<1x768xf32>
    %22 = vector.broadcast %21 : vector<1x768xf32> to vector<32x768xf32>
    %23 = arith.mulf %20, %22 : vector<32x768xf32>
    %c0_20 = arith.constant 0 : index
    %c128_21 = arith.constant 128 : index
    %24 = vector.load %arg7[%c0_20, %c128_21] : memref<32x1024xf32, #tpu.memory_space<vmem>>, vector<32x768xf32>
    tpu.vector_store %arg7[%c0_20, %c128_21], %23 {strides = array<i32>} : memref<32x1024xf32, #tpu.memory_space<vmem>>, vector<32x768xf32>,
    %c0_22 = arith.constant 0 : index
    %c109_23 = arith.constant 109 : index
    %25 = vector.load %arg7[%c0_22, %c109_23] : memref<32x1024xf32, #tpu.memory_space<vmem>>, vector<32x768xf32>
    %c0_24 = arith.constant 0 : index
    %c110_25 = arith.constant 110 : index
    %26 = vector.load %arg7[%c0_24, %c110_25] : memref<32x1024xf32, #tpu.memory_space<vmem>>, vector<32x768xf32>
    %c0_26 = arith.constant 0 : index
    %c111_27 = arith.constant 111 : index
    %27 = vector.load %arg7[%c0_26, %c111_27] : memref<32x1024xf32, #tpu.memory_space<vmem>>, vector<32x768xf32>
    %c0_28 = arith.constant 0 : index
    %c127_29 = arith.constant 127 : index
    %28 = vector.load %arg7[%c0_28, %c127_29] : memref<32x1024xf32, #tpu.memory_space<vmem>>, vector<32x768xf32>
    %c0_30 = arith.constant 0 : index
    %c128_31 = arith.constant 128 : index
    %29 = vector.load %arg7[%c0_30, %c128_31] : memref<32x1024xf32, #tpu.memory_space<vmem>>, vector<32x768xf32>
    %c0_32 = arith.constant 0 : index
    %c129_33 = arith.constant 129 : index
    %30 = vector.load %arg7[%c0_32, %c129_33] : memref<32x1024xf32, #tpu.memory_space<vmem>>, vector<32x768xf32>
    %c0_34 = arith.constant 0 : index
    %c145_35 = arith.constant 145 : index
    %31 = vector.load %arg7[%c0_34, %c145_35] : memref<32x1024xf32, #tpu.memory_space<vmem>>, vector<32x768xf32>
    %c0_36 = arith.constant 0 : index
    %c146_37 = arith.constant 146 : index
    %32 = vector.load %arg7[%c0_36, %c146_37] : memref<32x1024xf32, #tpu.memory_space<vmem>>, vector<32x768xf32>
    %c0_38 = arith.constant 0 : index
    %c147_39 = arith.constant 147 : index
    %33 = vector.load %arg7[%c0_38, %c147_39] : memref<32x1024xf32, #tpu.memory_space<vmem>>, vector<32x768xf32>
    %34 = tpu.concatenate %25, %26, %27, %28, %29, %30, %31, %32, %33 in 0 : vector<32x768xf32>, vector<32x768xf32>, vector<32x768xf32>, vector<32x768xf32>, vector<32x768xf32>, vector<32x768xf32>, vector<32x768xf32>, vector<32x768xf32>, vector<32x768xf32> -> vector<288x768xf32>
    %c0_40 = arith.constant 0 : index
    %c0_41 = arith.constant 0 : index
    %35 = vector.load %arg3[%c0_40, %c0_41] : memref<32x288xf32, #tpu.memory_space<vmem>>, vector<32x288xf32>
    %cst_42 = arith.constant dense<0.000000e+00> : vector<32x768xf32>
    %36 = tpu.matmul %35, %34, %cst_42 {dimension_numbers = #tpu.dot_dimension_numbers<[1], [0], [0], [1], [0, 0, 1, 1], [], []>} : vector<32x288xf32>, vector<288x768xf32>, vector<32x768xf32> -> vector<32x768xf32>
    %c0_43 = arith.constant 0 : index
    %c1 = arith.constant 1 : index
    %37 = vector.load %arg4[%c0_43, %c1] : memref<32x4xf32, #tpu.memory_space<vmem>>, vector<32x1xf32>
    %38 = vector.broadcast %37 : vector<32x1xf32> to vector<32x768xf32>
    %39 = arith.addf %36, %38 : vector<32x768xf32>
    %cst_44 = arith.constant 0.000000e+00 : f32
    %40 = vector.broadcast %cst_44 : f32 to vector<32x768xf32>
    %41 = arith.maximumf %39, %40 : vector<32x768xf32>
    %c0_45 = arith.constant 0 : index
    %c2 = arith.constant 2 : index
    %42 = vector.load %arg4[%c0_45, %c2] : memref<32x4xf32, #tpu.memory_space<vmem>>, vector<32x1xf32>
    %43 = vector.broadcast %42 : vector<32x1xf32> to vector<32x768xf32>
    %44 = arith.mulf %41, %43 : vector<32x768xf32>
    %cst_46 = arith.constant dense<0.000000e+00> : vector<768xf32>
    %45 = vector.multi_reduction <add>, %44, %cst_46 [0] : vector<32x768xf32> to vector<768xf32>
    %46 = vector.shape_cast %45 : vector<768xf32> to vector<1x768xf32>
    %c0_47 = arith.constant 0 : index
    %c3 = arith.constant 3 : index
    %47 = vector.load %arg4[%c0_47, %c3] : memref<32x4xf32, #tpu.memory_space<vmem>>, vector<1x1xf32>
    %48 = vector.broadcast %47 : vector<1x1xf32> to vector<1x768xf32>
    %49 = arith.addf %46, %48 : vector<1x768xf32>
    %c0_48 = arith.constant 0 : index
    %c0_49 = arith.constant 0 : index
    %50 = vector.load %arg6[%c0_48, %c0_49] : memref<1x768xf32, #tpu.memory_space<vmem>>, vector<1x768xf32>
    tpu.vector_store %arg6[%c0_48, %c0_49], %49 {strides = array<i32>} : memref<1x768xf32, #tpu.memory_space<vmem>>, vector<1x768xf32>,
    return
  }
  func.func @transform_0(%arg0: i32) -> (i32, i32) {
    %c0_i32 = arith.constant 0 : i32
    %c0_i32_0 = arith.constant 0 : i32
    %c0_i32_1 = arith.constant 0 : i32
    return %c0_i32, %c0_i32_0 : i32, i32
  }
  func.func @transform_1(%arg0: i32) -> (i32, i32) {
    %c0_i32 = arith.constant 0 : i32
    %c0_i32_0 = arith.constant 0 : i32
    %c0_i32_1 = arith.constant 0 : i32
    return %c0_i32, %c0_i32_0 : i32, i32
  }
  func.func @transform_2(%arg0: i32) -> (i32, i32) {
    %c0_i32 = arith.constant 0 : i32
    %c0_i32_0 = arith.constant 0 : i32
    %c0_i32_1 = arith.constant 0 : i32
    return %c0_i32, %c0_i32_0 : i32, i32
  }
  func.func @transform_3(%arg0: i32) -> (i32, i32) {
    %c0_i32 = arith.constant 0 : i32
    %c0_i32_0 = arith.constant 0 : i32
    %c0_i32_1 = arith.constant 0 : i32
    return %c0_i32, %c0_i32_0 : i32, i32
  }
  func.func @transform_4(%arg0: i32) -> (i32, i32) {
    %c0_i32 = arith.constant 0 : i32
    %c0_i32_0 = arith.constant 0 : i32
    %c0_i32_1 = arith.constant 0 : i32
    return %c0_i32, %c0_i32_0 : i32, i32
  }
  func.func @transform_5(%arg0: i32) -> (i32, i32) {
    %c0_i32 = arith.constant 0 : i32
    %c0_i32_0 = arith.constant 0 : i32
    %c0_i32_1 = arith.constant 0 : i32
    return %c0_i32, %c0_i32_0 : i32, i32
  }
}

</mosaic_0001>

<bundles_post_ra>
// kernel: tpu_custom_call.1
= control target key start
LH: loop header
LB: loop body
LE: loop exit
PB: predicated region body
PF: predicated region fallthrough
CT: control target
= control target key end

     0   :  { %10 = vsyncpa [#allocation4], 0  ;;  %s8496_s0 = inlined_call_operand.vmem [shape: f32[4,1024], index: 0, kind: input, shape index: {}]   ;;  %s8497_s1 = inlined_call_operand.hbm [shape: f32[32,36], index: 1, kind: input, shape index: {}]   ;;  %s8498_s2 = inlined_call_operand.hbm [shape: f32[32,288], index: 2, kind: input, shape index: {}]   ;;  %s8499_s3 = inlined_call_operand.vmem [shape: f32[32,4], index: 3, kind: input, shape index: {}]   ;;  %s8500_s4 = inlined_call_operand.vmem [shape: f32[1,768], index: 4, kind: input, shape index: {}]   ;;  %s8501_s5 = inlined_call_operand.hbm [shape: f32[1,768], index: 5, kind: output, shape index: {}]  }
   0x1   :  { %11 = vsyncpa [#allocation7], 0 }
   0x2   :  { %12 = vsyncpa [#allocation5], 0  ;;  %s5173_s18 = smov [#allocation3]   ;;  %s5101_s22 = scalar_lea.hbm %s8497_s1, 512 }
   0x3   :  { %s20_s19 = sshll.u32 %s5173_s18, 4  ;;  %p5102_p0 = scmp.ne.s32.totalorder %s8497_s1, %s5101_s22  ;;  %s21_s19 = int_to_ptr.vmem [resolvable:$true] %s20_s19 }
   0x4   :  { %p5105_p1 = scmp.lt.u32.totalorder %s5101_s22, %s8497_s1 }
   0x6   :  { %p5107_p2 = pnand %p5105_p1, %p5102_p0 }
   0x8   :  { %5110 = shalt.err (!%p5107_p2)
}
   0x9   :  { %s5111_s27 = scalar_lea.vmem %s21_s19, 512  ;;  %p5116_p4 = scmp.lt.s32.totalorder %s21_s19, %s21_s19 }
   0xa   :  { %p5112_p3 = scmp.ne.s32.totalorder %s21_s19, %s5111_s27  ;;  %p5117_p5 = scmp.lt.s32.totalorder %s5111_s27, %s5111_s27 }
   0xc   :  { %p5118_p6 = por %p5117_p5, %p5116_p4 }
   0xe   :  { %p5119_p7 = pnand %p5118_p6, %p5112_p3 }
  0x10   :  { %5122 = shalt.err (!%p5119_p7)
}
  0x11   :  { %s5174_s28 = smov 128   ;;  %s5175_s29 = smov 8  }
  0x12   :  { %26 = dma.hbm_to_vmem [thread:$0]  %s8497_s1, 512, %s21_s19, [#allocation4], %s5174_s28, %s5174_s28, %s5175_s29  }
  0x13   :  { %s5176_s7 = smov [#allocation6]   ;;  %s5123_s11 = scalar_lea.hbm %s8498_s2, 1536 }
  0x14   :  { %s32_s8 = sshll.u32 %s5176_s7, 4  ;;  %p5124_p8 = scmp.ne.s32.totalorder %s8498_s2, %s5123_s11  ;;  %s33_s8 = int_to_ptr.vmem [resolvable:$true] %s32_s8 }
  0x15   :  { %p5127_p9 = scmp.lt.u32.totalorder %s5123_s11, %s8498_s2 }
  0x17   :  { %p5129_p10 = pnand %p5127_p9, %p5124_p8 }
  0x19   :  { %5132 = shalt.err (!%p5129_p10)
}
  0x1a   :  { %s5133_s16 = scalar_lea.vmem %s33_s8, 1536  ;;  %p5138_p12 = scmp.lt.s32.totalorder %s33_s8, %s33_s8 }
  0x1b   :  { %p5134_p11 = scmp.ne.s32.totalorder %s33_s8, %s5133_s16  ;;  %p5139_p13 = scmp.lt.s32.totalorder %s5133_s16, %s5133_s16 }
  0x1d   :  { %p5140_p0 = por %p5139_p13, %p5138_p12 }
  0x1f   :  { %p5141_p1 = pnand %p5140_p0, %p5134_p11 }
  0x21   :  { %5144 = shalt.err (!%p5141_p1)
}
  0x22   :  { %s5177_s1 = smov 384   ;;  %s5178_s17 = smov 24  }
  0x23   :  { %38 = dma.hbm_to_vmem [thread:$0]  %s8498_s2, 1536, %s33_s8, [#allocation7], %s5177_s1, %s5177_s1, %s5178_s17  }
  0x24   :  { %5167 = dma.done.wait [#allocation4], 512  }
  0x25   :  { %5168 = vsyncadd [#allocation4], 4294966784 }
  0x26   :  { %5169 = dma.done.wait [#allocation7], 1536  }
  0x27   :  { %5170 = vsyncadd [#allocation7], 4294965760  ;;  %v8503_v0 = vmov 0.0   ;;  %v5254_v1 = vld [vmem:[%s8496_s0 + $0x10] sm:$0xff]  ;;  %v5259_v2 = vld [vmem:[%s8496_s0] sm:$0xff]  ;;  %s5180_s27 = smov 127  }
  0x28   :  { %612 = vmatprep.mubr.f32.mxu0 %v8503_v0  ;;  %701 = vmatprep.mubr.f32.mxu1 %v8503_v0  ;;  %v5264_v3 = vld [vmem:[%s8496_s0 + $0x18] sm:$0xf]  ;;  %v80_v4 = vcombine.low %v5254_v1, %v5254_v1  ;;  %v78_v5 = vcombine.low %v5259_v2, %v5259_v2  ;;  %v5275_v7 = vld [vmem:[%s8496_s0 + $0x8] sm:$0xff]  ;;  %v5283_v11 = vcombine.high %v5259_v2, %v5259_v2  ;;  %v5181_v18 = vmov 0   ;;  %s5182_s28 = smov 126   ;;  %s5183_s8 = smov 110  }
  0x29   :  { %v81_v6 = vcombine.low %v5264_v3, %v5264_v3  ;;  %v79_v8 = vcombine.low %v5275_v7, %v5275_v7  ;;  %v5291_v14 = vcombine.high %v5275_v7, %v5275_v7  ;;  %v5301_v17 = vcombine.high %v5254_v1, %v5254_v1  ;;  %3837 = vset.pattern.permute.xlu1 %v5181_v18  ;;  %v62_v21 = vld [vmem:[%s8496_s0 + $0xc] sm:$0xff]  ;;  %v61_v22 = vld [vmem:[%s8496_s0 + $0x4] sm:$0xff]  ;;  %v63_v25 = vld [vmem:[%s8496_s0 + $0x14] sm:$0xff]  ;;  %s5184_s11 = smov 109   ;;  %s5185_s12 = smov 108  }
  0x2a   :  { %v3726_v9 = vpack.i.bf16 %v5254_v1, %v80_v4  ;;  %v3716_v10 = vpack.i.bf16 %v5259_v2, %v78_v5  ;;  %v3736_v16 = vpack.i.bf16 %v5283_v11, %v5259_v2  ;;  %3836 = vset.pattern.permute.xlu0 %v5181_v18  ;;  %v3751_v19 = vpack.i.bf16 %v8503_v0, %v5264_v3  ;;  %v67_v36 = vld [vmem:[%s8496_s0 + $0x1c] sm:$0xf]  ;;  %s5186_s15 = smov 92   ;;  %s5187_s16 = smov 91   ;;  %v347_v38 = vld [vmem:[%s8499_s3 + $0x8] sm:$0xff]  ;;  %v346_v39 = vld [vmem:[%s8499_s3] sm:$0xff] }
  0x2b   :  { %v3731_v12 = vpack.i.bf16 %v8503_v0, %v81_v6  ;;  %v3721_v13 = vpack.i.bf16 %v5275_v7, %v79_v8  ;;  %v3741_v15 = vpack.i.bf16 %v5291_v14, %v5275_v7  ;;  %v3746_v20 = vpack.i.bf16 %v5301_v17, %v5254_v1  ;;  %s5188_s0 = smov 90   ;;  %v348_v40 = vld [vmem:[%s8499_s3 + $0x10] sm:$0xff]  ;;  %v5361_v41 = vld [vmem:[%s8499_s3 + $0x18] sm:$0xff]  ;;  %s5190_s2 = smov 19  }
  0x2c   :  { %3727 = vrot.lane.b32.xlu1 %v3726_v9, %s5180_s27  ;;  %3717 = vrot.lane.b32.xlu0 %v3716_v10, %s5180_s27  ;;  %v170_v23 = vcombine.high %v62_v21, %v62_v21  ;;  %v169_v24 = vcombine.high %v61_v22, %v61_v22  ;;  %v201_v26 = vcombine.low %v61_v22, %v61_v22  ;;  %v5189_v42 = vmov 1  }
  0x2d   :  { %v171_v29 = vcombine.high %v63_v25, %v63_v25  ;;  %v203_v30 = vcombine.low %v63_v25, %v63_v25  ;;  %v202_v33 = vcombine.low %v62_v21, %v62_v21  ;;  %v204_v37 = vcombine.low %v67_v36, %v67_v36 }
  0x2e   :  { %v3781_v27 = vpack.i.bf16 %v170_v23, %v62_v21  ;;  %v3776_v28 = vpack.i.bf16 %v169_v24, %v61_v22  ;;  %v3791_v31 = vpack.i.bf16 %v61_v22, %v201_v26  ;;  %vm96_vm0 = vcmask 1039360  }
  0x2f   :  { %v3786_v32 = vpack.i.bf16 %v171_v29, %v63_v25  ;;  %v3801_v34 = vpack.i.bf16 %v63_v25, %v203_v30  ;;  %v3796_v35 = vpack.i.bf16 %v62_v21, %v202_v33  ;;  %vm306_vm1 = vcmask 736256  }
  0x30   :  { %3732 = vrot.lane.b32.xlu1 %v3731_v12, %s5180_s27  ;;  %3722 = vrot.lane.b32.xlu0 %v3721_v13, %s5180_s27  ;;  %vm313_vm2 = vcmask 1043456   ;;  %vm124_vm3 = vcmask 1031168   ;;  %vm152_vm4 = vcmask 900096   ;;  %vm184_vm5 = vcmask 891904  }
  0x31   :  { %vm219_vm6 = vcmask 883712   ;;  %vm250_vm7 = vcmask 752640   ;;  %vm278_vm8 = vcmask 744448   ;;  %vm468_vm9 = vcmask 154624  }
  0x32   :  { %vm523_vm10 = vcmask 293888   ;;  %vm2631_vm11 = vcmask 261120  }
  0x34   :  { %3742 = vrot.lane.b32.xlu1 %v3741_v15, %s5182_s28  ;;  %3737 = vrot.lane.b32.xlu0 %v3736_v16, %s5182_s28 }
  0x38   :  { %3752 = vrot.lane.b32.xlu1 %v3751_v19, %s5182_s28  ;;  %3747 = vrot.lane.b32.xlu0 %v3746_v20, %s5182_s28 }
  0x3c   :  { %3762 = vrot.lane.b32.xlu1 %v3721_v13, %s5183_s8  ;;  %3757 = vrot.lane.b32.xlu0 %v3716_v10, %s5183_s8 }
  0x40   :  { %3772 = vrot.lane.b32.xlu1 %v3731_v12, %s5183_s8  ;;  %3767 = vrot.lane.b32.xlu0 %v3726_v9, %s5183_s8 }
  0x44   :  { %3782 = vrot.lane.b32.xlu1 %v3781_v27, %s5184_s11  ;;  %3777 = vrot.lane.b32.xlu0 %v3776_v28, %s5184_s11 }
  0x48   :  { %3792 = vrot.lane.b32.xlu1 %v3791_v31, %s5185_s12  ;;  %3787 = vrot.lane.b32.xlu0 %v3786_v32, %s5184_s11 }
  0x4c   :  { %3802 = vrot.lane.b32.xlu1 %v3801_v34, %s5185_s12  ;;  %3797 = vrot.lane.b32.xlu0 %v3796_v35, %s5185_s12 }
  0x50   :  { %3807 = vrot.lane.b32.xlu1 %v3776_v28, %s5186_s15  ;;  %217 = vrot.lane.b32.xlu0 %v204_v37, %s5185_s12 }
  0x54   :  { %3817 = vrot.lane.b32.xlu1 %v3786_v32, %s5186_s15  ;;  %3812 = vrot.lane.b32.xlu0 %v3781_v27, %s5186_s15 }
  0x58   :  { %3822 = vrot.lane.b32.xlu1 %v3791_v31, %s5187_s16  ;;  %248 = vrot.lane.b32.xlu0 %v67_v36, %s5186_s15 }
  0x5c   :  { %3832 = vrot.lane.b32.xlu1 %v3801_v34, %s5187_s16  ;;  %3827 = vrot.lane.b32.xlu0 %v3796_v35, %s5187_s16 }
  0x60   :  { %292 = vrot.lane.b32.xlu1 %v61_v22, %s5188_s0  ;;  %276 = vrot.lane.b32.xlu0 %v204_v37, %s5187_s16 }
  0x64   :  { %296 = vrot.lane.b32.xlu1 %v62_v21, %s5188_s0  ;;  %294 = vrot.lane.b32.xlu0 %v169_v24, %s5188_s0 }
  0x68   :  { %300 = vrot.lane.b32.xlu1 %v63_v25, %s5188_s0  ;;  %298 = vrot.lane.b32.xlu0 %v170_v23, %s5188_s0 }
  0x6c   :  { %304 = vrot.lane.b32.xlu1 %v67_v36, %s5188_s0  ;;  %302 = vrot.lane.b32.xlu0 %v171_v29, %s5188_s0 }
  0x70   :  { %357 = vperm.xlu1 %3837, %v347_v38   ;;  %352 = vperm.xlu0 %3836, %v346_v39  }
  0x74   :  { %362 = vperm.xlu1 %3837, %v348_v40   ;;  %367 = vperm.xlu0 %3836, %v5361_v41  }
  0x78   :  { %3839 = vset.pattern.permute.xlu1 %v5189_v42  ;;  %3838 = vset.pattern.permute.xlu0 %v5189_v42 }
  0x79   :  { %1682 = vperm.xlu1 %3839, %v347_v38   ;;  %1677 = vperm.xlu0 %3838, %v346_v39  }
  0x7d   :  { %1687 = vperm.xlu1 %3839, %v348_v40  }
  0x9e   :  { %v5364_v43 = vpop.permute.xlu1 %3727  ;;  %v3718_v44 = vpop.permute.xlu0 %3717 }
  0x9f   :  { %v3730_v10 = vunpack.i.h.bf16 %v5364_v43  ;;  %v3729_v12 = vunpack.i.l.bf16 %v5364_v43  ;;  %v3720_v13 = vunpack.i.h.bf16 %v3718_v44  ;;  %v3719_v15 = vunpack.i.l.bf16 %v3718_v44 }
  0xa1   :  { %v97_v25 = vsel %vm96_vm0, %v3719_v15, %v3720_v13  ;;  %v101_v26 = vsel %vm96_vm0, %v3729_v12, %v3730_v10 }
  0xa2   :  { %v5366_v45 = vpop.permute.xlu1 %3732  ;;  %v3723_v46 = vpop.permute.xlu0 %3722  ;;  %v314_v32 = vsel %vm313_vm2, %v5259_v2, %v97_v25  ;;  %v5433_v33 = vsel %vm313_vm2, %v5254_v1, %v101_v26 }
  0xa3   :  { %v3725_v16 = vunpack.i.h.bf16 %v3723_v46  ;;  %v3724_v18 = vunpack.i.l.bf16 %v3723_v46  ;;  %v3734_v21 = vunpack.i.l.bf16 %v5366_v45 }
  0xa5   :  { %v99_v24 = vsel %vm96_vm0, %v3724_v18, %v3725_v16  ;;  %v100_v29 = vsel %vm96_vm0, %v3725_v16, %v3729_v12  ;;  %v98_v30 = vsel %vm96_vm0, %v3720_v13, %v3724_v18  ;;  %v102_v39 = vsel %vm96_vm0, %v3730_v10, %v3734_v21 }
  0xa6   :  { %v5368_v47 = vpop.permute.xlu1 %3742  ;;  %v5370_v48 = vpop.permute.xlu0 %3737  ;;  %v316_v31 = vsel %vm313_vm2, %v5275_v7, %v99_v24  ;;  %v317_v38 = vsel %vm313_vm2, %v5291_v14, %v100_v29  ;;  %v315_v40 = vsel %vm313_vm2, %v5283_v11, %v98_v30  ;;  %v320_v1 = vsel %vm313_vm2, %v5264_v3, %v3734_v21 }
  0xa7   :  { %v3745_v42 = vunpack.i.h.bf16 %v5368_v47  ;;  %v3740_v43 = vunpack.i.h.bf16 %v5370_v48  ;;  %v3739_v44 = vunpack.i.l.bf16 %v5370_v48  ;;  %v3744_v46 = vunpack.i.l.bf16 %v5368_v47 }
  0xa8   :  { %v3845_v11 = vpack.i.bf16 %v317_v38, %v316_v31  ;;  %v319_v3 = vsel %vm313_vm2, %v5301_v17, %v102_v39 }
  0xa9   :  { %v3850_v21 = vpack.i.bf16 %v319_v3, %v5433_v33  ;;  %v127_v24 = vsel %vm124_vm3, %v3744_v46, %v3745_v42 }
  0xaa   :  { %v5372_v49 = vpop.permute.xlu1 %3752  ;;  %v5374_v50 = vpop.permute.xlu0 %3747 }
  0xab   :  { %v3749_v10 = vunpack.i.l.bf16 %v5374_v50  ;;  %v3750_v18 = vunpack.i.h.bf16 %v5374_v50  ;;  %v126_v50 = vsel %vm124_vm3, %v3740_v43, %v3744_v46  ;;  %v3754_v26 = vunpack.i.l.bf16 %v5372_v49 }
  0xae   :  { %v5376_v51 = vpop.permute.xlu1 %3762  ;;  %v5378_v52 = vpop.permute.xlu0 %3757 }
  0xaf   :  { %v3760_v34 = vunpack.i.h.bf16 %v5378_v52  ;;  %v3759_v35 = vunpack.i.l.bf16 %v5378_v52  ;;  %v3764_v14 = vunpack.i.l.bf16 %v5376_v51  ;;  %v3765_v52 = vunpack.i.h.bf16 %v5376_v51 }
  0xb1   :  { %v153_v16 = vsel %vm152_vm4, %v3759_v35, %v3760_v34  ;;  %v155_v25 = vsel %vm152_vm4, %v3764_v14, %v3765_v52 }
  0xb2   :  { %v5380_v53 = vpop.permute.xlu1 %3772  ;;  %v5382_v54 = vpop.permute.xlu0 %3767  ;;  %v323_v35 = vsel %vm313_vm2, %v127_v24, %v155_v25 }
  0xb3   :  { %v3770_v12 = vunpack.i.h.bf16 %v5382_v54  ;;  %v3769_v48 = vunpack.i.l.bf16 %v5382_v54  ;;  %v3774_v17 = vunpack.i.l.bf16 %v5380_v53  ;;  %v125_v54 = vsel %vm124_vm3, %v3739_v44, %v3740_v43 }
  0xb4   :  { %v130_v44 = vsel %vm124_vm3, %v3750_v18, %v3754_v26 }
  0xb5   :  { %v157_v29 = vsel %vm152_vm4, %v3769_v48, %v3770_v12 }
  0xb6   :  { %v5384_v55 = vpop.permute.xlu1 %3782  ;;  %v5386_v56 = vpop.permute.xlu0 %3777 }
  0xb7   :  { %v3779_v38 = vunpack.i.l.bf16 %v5386_v56 }
  0xba   :  { %v5388_v57 = vpop.permute.xlu1 %3792  ;;  %v5390_v58 = vpop.permute.xlu0 %3787 }
  0xbb   :  { %v3795_v30 = vunpack.i.h.bf16 %v5388_v57  ;;  %v3794_v31 = vunpack.i.l.bf16 %v5388_v57  ;;  %v3790_v46 = vunpack.i.h.bf16 %v5390_v58 }
  0xbd   :  { %v220_v43 = vsel %vm219_vm6, %v3794_v31, %v3795_v30 }
  0xbe   :  { %v5392_v59 = vpop.permute.xlu1 %3802  ;;  %v5394_v60 = vpop.permute.xlu0 %3797 }
  0xc2   :  { %v5396_v61 = vpop.permute.xlu1 %3807  ;;  %v5398_v62 = vpop.permute.xlu0 %217 }
  0xc6   :  { %v5400_v63 = vpop.permute.xlu1 %3817  ;;  %v5402_v4 = vpop.permute.xlu0 %3812 }
  0xca   :  { %v5404_v5 = vpop.permute.xlu1 %3822  ;;  %v5406_v6 = vpop.permute.xlu0 %248 }
  0xcb   :  { %v3824_v24 = vunpack.i.l.bf16 %v5404_v5 }
  0xce   :  { %v5408_v8 = vpop.permute.xlu1 %3832  ;;  %v5410_v9 = vpop.permute.xlu0 %3827 }
  0xd2   :  { %v293_v19 = vpop.permute.xlu1 %292  ;;  %v5414_v20 = vpop.permute.xlu0 %276 }
  0xd3   :  { %454 = vrot.lane.b32.xlu1 %v293_v19, %s5190_s2 }
  0xd6   :  { %v297_v22 = vpop.permute.xlu1 %296  ;;  %v295_v23 = vpop.permute.xlu0 %294 }
  0xd7   :  { %v308_v27 = vsel %vm306_vm1, %v295_v23, %v297_v22  ;;  %v307_v28 = vsel %vm306_vm1, %v293_v19, %v295_v23  ;;  %v3840_v19 = vpack.i.bf16 %v315_v40, %v314_v32  ;;  %v321_v23 = vsel %vm313_vm2, %v125_v54, %v153_v16 }
  0xd8   :  { %458 = vrot.lane.b32.xlu1 %v308_v27, %s5190_s2  ;;  %456 = vrot.lane.b32.xlu0 %v307_v28, %s5190_s2  ;;  %v128_v27 = vsel %vm124_vm3, %v3745_v42, %v3749_v10  ;;  %v156_v28 = vsel %vm152_vm4, %v3765_v52, %v3769_v48  ;;  %v129_v32 = vsel %vm124_vm3, %v3749_v10, %v3750_v18  ;;  %v3800_v40 = vunpack.i.h.bf16 %v5394_v60 }
  0xd9   :  { %v324_v57 = vsel %vm313_vm2, %v128_v27, %v156_v28  ;;  %v325_v39 = vsel %vm313_vm2, %v129_v32, %v157_v29  ;;  %v3784_v42 = vunpack.i.l.bf16 %v5384_v55  ;;  %v3789_v52 = vunpack.i.l.bf16 %v5390_v58 }
  0xda   :  { %v301_v36 = vpop.permute.xlu1 %300  ;;  %v299_v37 = vpop.permute.xlu0 %298  ;;  %v328_v10 = vsel %vm313_vm2, %v3779_v38, %v3794_v31  ;;  %v3829_v18 = vunpack.i.l.bf16 %v5410_v9  ;;  %v3809_v27 = vunpack.i.l.bf16 %v5396_v61  ;;  %v3834_v29 = vunpack.i.l.bf16 %v5408_v8 }
  0xdb   :  { %v310_v7 = vsel %vm306_vm1, %v299_v37, %v301_v36  ;;  %v309_v2 = vsel %vm306_vm1, %v297_v22, %v299_v37  ;;  %v154_v22 = vsel %vm152_vm4, %v3760_v34, %v3764_v14  ;;  %v3855_v34 = vpack.i.bf16 %v321_v23, %v320_v1 }
  0xdc   :  { %462 = vrot.lane.b32.xlu1 %v310_v7, %s5190_s2  ;;  %460 = vrot.lane.b32.xlu0 %v309_v2, %s5190_s2  ;;  %v322_v33 = vsel %vm313_vm2, %v126_v50, %v154_v22  ;;  %v3780_v37 = vunpack.i.h.bf16 %v5386_v56  ;;  %v3805_v7 = vunpack.i.h.bf16 %v5392_v59  ;;  %v3804_v2 = vunpack.i.l.bf16 %v5392_v59 }
  0xdd   :  { %v3799_v1 = vunpack.i.l.bf16 %v5394_v60  ;;  %v327_v56 = vsel %vm313_vm2, %v3754_v26, %v3774_v17  ;;  %v3785_v14 = vunpack.i.h.bf16 %v5384_v55  ;;  %v3865_v60 = vpack.i.bf16 %v325_v39, %v324_v57 }
  0xde   :  { %v305_v13 = vpop.permute.xlu1 %304  ;;  %v303_v15 = vpop.permute.xlu0 %302  ;;  %v185_v3 = vsel %vm184_vm5, %v3779_v38, %v3780_v37  ;;  %v223_v55 = vsel %vm219_vm6, %v3800_v40, %v3804_v2  ;;  %v224_v48 = vsel %vm219_vm6, %v3804_v2, %v3805_v7  ;;  %v3814_v23 = vunpack.i.l.bf16 %v5402_v4 }
  0xdf   :  { %v312_v47 = vsel %vm306_vm1, %v303_v15, %v305_v13  ;;  %v311_v51 = vsel %vm306_vm1, %v301_v36, %v303_v15  ;;  %v158_v36 = vsel %vm152_vm4, %v3770_v12, %v3774_v17  ;;  %v329_v12 = vsel %vm313_vm2, %v185_v3, %v220_v43 }
  0xe0   :  { %466 = vrot.lane.b32.xlu1 %v312_v47, %s5190_s2  ;;  %464 = vrot.lane.b32.xlu0 %v311_v51, %s5190_s2  ;;  %v326_v59 = vsel %vm313_vm2, %v130_v44, %v158_v36  ;;  %v221_v58 = vsel %vm219_vm6, %v3795_v30, %v3799_v1  ;;  %v186_v15 = vsel %vm184_vm5, %v3780_v37, %v3784_v42  ;;  %v3825_v50 = vunpack.i.h.bf16 %v5404_v5 }
  0xe1   :  { %v3870_v13 = vpack.i.bf16 %v327_v56, %v326_v59  ;;  %v222_v16 = vsel %vm219_vm6, %v3799_v1, %v3800_v40  ;;  %v188_v47 = vsel %vm184_vm5, %v3785_v14, %v3789_v52  ;;  %v189_v51 = vsel %vm184_vm5, %v3789_v52, %v3790_v46 }
  0xe2   :  { %v3875_v17 = vpack.i.bf16 %v329_v12, %v328_v10  ;;  %v332_v54 = vsel %vm313_vm2, %v188_v47, %v223_v55  ;;  %v330_v22 = vsel %vm313_vm2, %v186_v15, %v221_v58  ;;  %v3810_v26 = vunpack.i.h.bf16 %v5396_v61 }
  0xe3   :  { %v225_v28 = vsel %vm219_vm6, %v3805_v7, %v5398_v62  ;;  %v3830_v30 = vunpack.i.h.bf16 %v5410_v9  ;;  %v280_v5 = vsel %vm278_vm8, %v3825_v50, %v3829_v18  ;;  %v3819_v31 = vunpack.i.l.bf16 %v5400_v63 }
  0xe4   :  { %3846 = vrot.lane.b32.xlu0 %v3845_v11, %s5190_s2  ;;  %3841 = vrot.lane.b32.xlu1 %v3840_v19, %s5190_s2  ;;  %v3860_v11 = vpack.i.bf16 %v323_v35, %v322_v33  ;;  %v187_v19 = vsel %vm184_vm5, %v3784_v42, %v3785_v14  ;;  %v3815_v32 = vunpack.i.h.bf16 %v5402_v4  ;;  %v3835_v62 = vunpack.i.h.bf16 %v5408_v8 }
  0xe5   :  { %v331_v25 = vsel %vm313_vm2, %v187_v19, %v222_v16  ;;  %v252_v35 = vsel %vm250_vm7, %v3810_v26, %v3814_v23  ;;  %v279_v9 = vsel %vm278_vm8, %v3824_v24, %v3825_v50  ;;  %v251_v36 = vsel %vm250_vm7, %v3809_v27, %v3810_v26 }
  0xe6   :  { %v3880_v33 = vpack.i.bf16 %v331_v25, %v330_v22  ;;  %v337_v37 = vsel %vm313_vm2, %v252_v35, %v280_v5  ;;  %v335_v38 = vsel %vm313_vm2, %v3809_v27, %v3824_v24  ;;  %v284_v57 = vsel %vm278_vm8, %v3835_v62, %v5414_v20 }
  0xe7   :  { %v282_v4 = vsel %vm278_vm8, %v3830_v30, %v3834_v29  ;;  %v334_v8 = vsel %vm313_vm2, %v3790_v46, %v225_v28  ;;  %v336_v39 = vsel %vm313_vm2, %v251_v36, %v279_v9  ;;  %v253_v7 = vsel %vm250_vm7, %v3814_v23, %v3815_v32 }
  0xe8   :  { %3856 = vrot.lane.b32.xlu0 %v3855_v34, %s5190_s2  ;;  %3851 = vrot.lane.b32.xlu1 %v3850_v21, %s5190_s2  ;;  %v333_v21 = vsel %vm313_vm2, %v189_v51, %v224_v48  ;;  %v3820_v34 = vunpack.i.h.bf16 %v5400_v63  ;;  %v281_v63 = vsel %vm278_vm8, %v3829_v18, %v3830_v30  ;;  %v254_v2 = vsel %vm250_vm7, %v3815_v32, %v3819_v31 }
  0xe9   :  { %v3885_v61 = vpack.i.bf16 %v333_v21, %v332_v54  ;;  %v3895_v20 = vpack.i.bf16 %v337_v37, %v336_v39  ;;  %v3890_v1 = vpack.i.bf16 %v335_v38, %v334_v8  ;;  %v283_v42 = vsel %vm278_vm8, %v3834_v29, %v3835_v62 }
  0xea   :  { %v256_v40 = vsel %vm250_vm7, %v3820_v34, %v5406_v6  ;;  %v338_v44 = vsel %vm313_vm2, %v253_v7, %v281_v63  ;;  %v339_v56 = vsel %vm313_vm2, %v254_v2, %v282_v4  ;;  %v255_v14 = vsel %vm250_vm7, %v3819_v31, %v3820_v34 }
  0xeb   :  { %v341_v43 = vsel %vm313_vm2, %v256_v40, %v284_v57  ;;  %v340_v46 = vsel %vm313_vm2, %v255_v14, %v283_v42  ;;  %v3900_v6 = vpack.i.bf16 %v339_v56, %v338_v44 }
  0xec   :  { %3866 = vrot.lane.b32.xlu0 %v3865_v60, %s5190_s2  ;;  %3861 = vrot.lane.b32.xlu1 %v3860_v11, %s5190_s2  ;;  %v3905_v52 = vpack.i.bf16 %v341_v43, %v340_v46 }
  0xef   :  { %v5565_v59 = vpop.permute.xlu1 %357  ;;  %v5569_v11 = vpop.permute.xlu0 %352 }
  0xf0   :  { %3876 = vrot.lane.b32.xlu0 %v3875_v17, %s5190_s2  ;;  %3871 = vrot.lane.b32.xlu1 %v3870_v13, %s5190_s2 }
  0xf3   :  { %v5567_v60 = vpop.permute.xlu1 %362  ;;  %v5573_v10 = vpop.permute.xlu0 %367 }
  0xf4   :  { %3886 = vrot.lane.b32.xlu0 %v3885_v61, %s5190_s2  ;;  %3881 = vrot.lane.b32.xlu1 %v3880_v33, %s5190_s2 }
  0xf8   :  { %3896 = vrot.lane.b32.xlu0 %v3895_v20, %s5190_s2  ;;  %3891 = vrot.lane.b32.xlu1 %v3890_v1, %s5190_s2  ;;  %v5571_v3 = vpop.permute.xlu1 %1682  ;;  %v5577_v55 = vpop.permute.xlu0 %1677 }
  0xf9   :  { %8714 = vst [vmem:[#allocation12_spill] sm:$0xff] %v5571_v3  ;;  %8716 = vst [vmem:[#allocation14_spill] sm:$0xff] %v5577_v55 }
  0xfc   :  { %3906 = vrot.lane.b32.xlu0 %v3905_v52, %s5190_s2  ;;  %3901 = vrot.lane.b32.xlu1 %v3900_v6, %s5190_s2  ;;  %v5575_v12 = vpop.permute.xlu1 %1687 }
  0xfd   :  { %8715 = vst [vmem:[#allocation13_spill] sm:$0xff] %v5575_v12 }
 0x100   :  { %1692 = vperm.xlu0 %3838, %v5361_v41  }
 0x145   :  { %v5579_v48 = vpop.permute.xlu1 %454 }
 0x14a   :  { %v5581_v58 = vpop.permute.xlu1 %458  ;;  %v5583_v13 = vpop.permute.xlu0 %456 }
 0x14e   :  { %v5585_v41 = vpop.permute.xlu1 %462  ;;  %v5587_v15 = vpop.permute.xlu0 %460 }
 0x152   :  { %v5589_v16 = vpop.permute.xlu1 %466  ;;  %v5591_v18 = vpop.permute.xlu0 %464 }
 0x156   :  { %v3847_v47 = vpop.permute.xlu0 %3846  ;;  %v3842_v51 = vpop.permute.xlu1 %3841 }
 0x157   :  { %v3849_v54 = vunpack.i.h.bf16 %v3847_v47  ;;  %v3848_v21 = vunpack.i.l.bf16 %v3847_v47  ;;  %v3844_v22 = vunpack.i.h.bf16 %v3842_v51  ;;  %v3843_v23 = vunpack.i.l.bf16 %v3842_v51 }
 0x159   :  { %v470_v5 = vsel %vm468_vm9, %v3844_v22, %v3848_v21  ;;  %v469_v32 = vsel %vm468_vm9, %v3843_v23, %v3844_v22  ;;  %v471_v61 = vsel %vm468_vm9, %v3848_v21, %v3849_v54 }
 0x15a   :  { %v5593_v19 = vpop.permute.xlu0 %3856  ;;  %v5595_v17 = vpop.permute.xlu1 %3851 }
 0x15b   :  { %v3853_v50 = vunpack.i.l.bf16 %v5595_v17  ;;  %v3859_v24 = vunpack.i.h.bf16 %v5593_v19 }
 0x15d   :  { %v472_v31 = vsel %vm468_vm9, %v3849_v54, %v3853_v50 }
 0x15e   :  { %v5599_v25 = vpop.permute.xlu0 %3866  ;;  %v3862_v26 = vpop.permute.xlu1 %3861 }
 0x15f   :  { %v3869_v27 = vunpack.i.h.bf16 %v5599_v25  ;;  %v3868_v28 = vunpack.i.l.bf16 %v5599_v25  ;;  %v3864_v29 = vunpack.i.h.bf16 %v3862_v26  ;;  %v3863_v30 = vunpack.i.l.bf16 %v3862_v26 }
 0x160   :  { %v496_v25 = vsel %vm468_vm9, %v5587_v15, %v5585_v41 }
 0x161   :  { %v476_v33 = vsel %vm468_vm9, %v3863_v30, %v3864_v29  ;;  %v478_v34 = vsel %vm468_vm9, %v3868_v28, %v3869_v27  ;;  %v475_v62 = vsel %vm468_vm9, %v3859_v24, %v3863_v30  ;;  %v477_v35 = vsel %vm468_vm9, %v3864_v29, %v3868_v28 }
 0x162   :  { %v3877_v9 = vpop.permute.xlu0 %3876  ;;  %v3872_v36 = vpop.permute.xlu1 %3871  ;;  %v3406_v37 = vpack.c.bf16 %v476_v33, %v470_v5  ;;  %v3414_v38 = vpack.c.bf16 %v478_v34, %v472_v31  ;;  %v3408_v57 = vpack.c.bf16 %v475_v62, %v469_v32  ;;  %v3416_v63 = vpack.c.bf16 %v477_v35, %v471_v61 }
 0x163   :  { %v3879_v39 = vunpack.i.h.bf16 %v3877_v9  ;;  %v3878_v7 = vunpack.i.l.bf16 %v3877_v9  ;;  %v3874_v47 = vunpack.i.h.bf16 %v3872_v36  ;;  %v3873_v51 = vunpack.i.l.bf16 %v3872_v36 }
 0x164   :  { %3407 = vmatprep.subr.bf16.mxu0 %v3406_v37  ;;  %3415 = vmatprep.subr.bf16.mxu1 %v3414_v38  ;;  %v494_v28 = vsel %vm468_vm9, %v5583_v13, %v5581_v58  ;;  %v3858_v29 = vunpack.i.l.bf16 %v5593_v19  ;;  %v3854_v30 = vunpack.i.h.bf16 %v5595_v17  ;;  %v342_v37 = vld [vmem:[#allocation3] sm:$0xff] }
 0x165   :  { %3409 = vmatpush1.bf16.msra.mxu0 %v3408_v57  ;;  %3417 = vmatpush1.bf16.msra.mxu1 %v3416_v63  ;;  %v481_v56 = vsel %vm468_vm9, %v3878_v7, %v3879_v39  ;;  %v480_v19 = vsel %vm468_vm9, %v3873_v51, %v3874_v47  ;;  %v479_v36 = vsel %vm468_vm9, %v3869_v27, %v3873_v51 }
 0x166   :  { %v5615_v4 = vpop.permute.xlu0 %3886  ;;  %v3882_v8 = vpop.permute.xlu1 %3881  ;;  %v493_v57 = vsel %vm468_vm9, %v5579_v48, %v5583_v13  ;;  %v474_v63 = vsel %vm468_vm9, %v3854_v30, %v3858_v29  ;;  %v495_v7 = vsel %vm468_vm9, %v5581_v58, %v5587_v15  ;;  %v498_v58 = vsel %vm468_vm9, %v5591_v18, %v5589_v16 }
 0x167   :  { %v3883_v2 = vunpack.i.l.bf16 %v3882_v8  ;;  %v3888_v44 = vunpack.i.l.bf16 %v5615_v4  ;;  %v3884_v14 = vunpack.i.h.bf16 %v3882_v8  ;;  %v3889_v38 = vunpack.i.h.bf16 %v5615_v4 }
 0x168   :  { %v3422_v27 = vpack.c.bf16 %v480_v19, %v474_v63  ;;  %v497_v15 = vsel %vm468_vm9, %v5585_v41, %v5591_v18  ;;  %v8502_v41 = vlaneseq }
 0x169   :  { %v482_v46 = vsel %vm468_vm9, %v3879_v39, %v3883_v2  ;;  %v484_v32 = vsel %vm468_vm9, %v3884_v14, %v3888_v44  ;;  %v483_v33 = vsel %vm468_vm9, %v3883_v2, %v3884_v14  ;;  %v473_v39 = vsel %vm468_vm9, %v3853_v50, %v3854_v30  ;;  %v343_v50 = vld [vmem:[#allocation3 + $0x8] sm:$0xff] }
 0x16a   :  { %v3897_v40 = vpop.permute.xlu0 %3896  ;;  %v3892_v20 = vpop.permute.xlu1 %3891  ;;  %v3424_v48 = vpack.c.bf16 %v479_v36, %v473_v39  ;;  %v485_v2 = vsel %vm468_vm9, %v3888_v44, %v3889_v38  ;;  %v5689_v16 = vshrl.u32 %v8502_v41, 7 }
 0x16b   :  { %v3899_v1 = vunpack.i.h.bf16 %v3897_v40  ;;  %v3898_v42 = vunpack.i.l.bf16 %v3897_v40  ;;  %v3894_v43 = vunpack.i.h.bf16 %v3892_v20  ;;  %v3893_v62 = vunpack.i.l.bf16 %v3892_v20  ;;  %v344_v20 = vld [vmem:[#allocation3 + $0x10] sm:$0xff] }
 0x16c   :  { %8717 = vst [vmem:[#allocation15_spill] sm:$0xff] %v5689_v16  ;;  %v843_v18 = vsub.s32 0, %v5689_v16  ;;  %v855_v51 = vsub.s32 3, %v5689_v16  ;;  %v863_v63 = vsub.s32 5, %v5689_v16 }
 0x16d   :  { %v488_v52 = vsel %vm468_vm9, %v3898_v42, %v3899_v1  ;;  %v487_v6 = vsel %vm468_vm9, %v3894_v43, %v3898_v42  ;;  %v486_v13 = vsel %vm468_vm9, %v3889_v38, %v3893_v62  ;;  %v5695_v42 = vld [vmem:[%s8500_s4] sm:$0x3f]  ;;  %v847_v43 = vsub.s32 1, %v5689_v16 }
 0x16e   :  { %v3907_v54 = vpop.permute.xlu0 %3906  ;;  %v3902_v21 = vpop.permute.xlu1 %3901  ;;  %v3410_v22 = vpack.c.bf16 %v488_v52, %v482_v46  ;;  %v3412_v23 = vpack.c.bf16 %v487_v6, %v481_v56  ;;  %v5700_v14 = vrot.slane %v5695_v42, %v843_v18  ;;  %v851_v52 = vsub.s32 2, %v5689_v16 }
 0x16f   :  { %v3904_v24 = vunpack.i.h.bf16 %v3902_v21  ;;  %v3903_v26 = vunpack.i.l.bf16 %v3902_v21  ;;  %v3909_v5 = vunpack.i.h.bf16 %v3907_v54  ;;  %v3908_v31 = vunpack.i.l.bf16 %v3907_v54 }
 0x170   :  { %3411 = vmatprep.subr.bf16.mxu0 %v3410_v22  ;;  %v5705_v47 = vrot.slane %v5695_v42, %v847_v43  ;;  %v5712_v29 = vrot.slane %v5695_v42, %v851_v52 }
 0x171   :  { %3413 = vmatpush1.bf16.msra.mxu0 %v3412_v23  ;;  %v490_v61 = vsel %vm468_vm9, %v3903_v26, %v3904_v24  ;;  %v489_v34 = vsel %vm468_vm9, %v3899_v1, %v3903_v26  ;;  %v492_v8 = vsel %vm468_vm9, %v3908_v31, %v3909_v5  ;;  %v491_v4 = vsel %vm468_vm9, %v3904_v24, %v3908_v31  ;;  %v345_v1 = vld [vmem:[#allocation3 + $0x18] sm:$0xff] }
 0x172   :  { %3376 = vmatprep.subr.msk.mxu0 %vm313_vm2, %v494_v28  ;;  %v3418_v35 = vpack.c.bf16 %v490_v61, %v484_v32  ;;  %v3420_v9 = vpack.c.bf16 %v489_v34, %v483_v33  ;;  %v3426_v17 = vpack.c.bf16 %v492_v8, %v486_v13  ;;  %v3428_v40 = vpack.c.bf16 %v491_v4, %v485_v2 }
 0x173   :  { %v5720_v33 = vrot.slane %v5695_v42, %v855_v51 }
 0x174   :  { %3419 = vmatprep.subr.bf16.mxu1 %v3418_v35 }
 0x175   :  { %3377 = vmatpush1.msk.msra.mxu0 %vm313_vm2, %v493_v57  ;;  %3421 = vmatpush1.bf16.msra.mxu1 %v3420_v9  ;;  %v859_v9 = vsub.s32 4, %v5689_v16 }
 0x176   :  { %3378 = vmatmul.mubr.msk.f32.vlgmr.msra.gmra.mrb[0].mxu0 %vm523_vm10, %v342_v37  ;;  %3382 = vmatprep.subr.msk.mxu1 %vm313_vm2, %v496_v25 }
 0x177   :  { %3423 = vmatprep.subr.bf16.mxu0 %v3422_v27  ;;  %618 = vmatprep.mubr.f32.mxu0 %v8503_v0 }
 0x178   :  { %3425 = vmatpush1.bf16.msra.mxu0 %v3424_v48 }
 0x179   :  { %3427 = vmatprep.subr.bf16.mxu0 %v3426_v17  ;;  %3383 = vmatpush1.msk.msra.mxu1 %vm313_vm2, %v495_v7 }
 0x17a   :  { %3379 = vmatmul.mubr.msk.f32.gmra.mrb[2].mxu0 %vm523_vm10, %v343_v50  ;;  %3384 = vmatmul.mubr.msk.f32.vlgmr.msra.gmra.mrb[0].mxu1 %vm523_vm10, %v342_v37 }
 0x17b   :  { %624 = vmatprep.mubr.f32.mxu0 %v8503_v0  ;;  %707 = vmatprep.mubr.f32.mxu1 %v8503_v0 }
 0x17c   :  { %3429 = vmatpush1.bf16.msra.mxu0 %v3428_v40 }
 0x17d   :  { %3388 = vmatprep.subr.msk.mxu0 %vm313_vm2, %v498_v58 }
 0x17e   :  { %3380 = vmatmul.mubr.msk.f32.gmra.mrb[4].mxu0 %vm523_vm10, %v344_v20  ;;  %3385 = vmatmul.mubr.msk.f32.gmra.mrb[2].mxu1 %vm523_vm10, %v343_v50 }
 0x17f   :  { %630 = vmatprep.mubr.f32.mxu0 %v8503_v0  ;;  %713 = vmatprep.mubr.f32.mxu1 %v8503_v0 }
 0x180   :  { %3389 = vmatpush1.msk.msra.mxu0 %vm313_vm2, %v497_v15 }
 0x182   :  { %3381 = vmatmul.mubr.msk.f32.gmra.mrb[6].mxu0 %vm523_vm10, %v345_v1  ;;  %3386 = vmatmul.mubr.msk.f32.gmra.mrb[4].mxu1 %vm523_vm10, %v344_v20 }
 0x183   :  { %719 = vmatprep.mubr.f32.mxu1 %v8503_v0  ;;  %790 = vmatprep.mubr.f32.mxu0 %v8503_v0 }
 0x186   :  { %3387 = vmatmul.mubr.msk.f32.gmra.mrb[6].mxu1 %vm523_vm10, %v345_v1  ;;  %3390 = vmatmul.mubr.msk.f32.vlgmr.msra.gmra.mrb[8].mxu0 %vm523_vm10, %v342_v37 }
 0x187   :  { %796 = vmatprep.mubr.f32.mxu0 %v8503_v0 }
 0x18a   :  { %3391 = vmatmul.mubr.msk.f32.gmra.mrb[10].mxu0 %vm523_vm10, %v343_v50 }
 0x18b   :  { %802 = vmatprep.mubr.f32.mxu0 %v8503_v0 }
 0x18e   :  { %3392 = vmatmul.mubr.msk.f32.gmra.mrb[12].mxu0 %vm523_vm10, %v344_v20  ;;  %v5746_v20 = vrot.slane %v5695_v42, %v859_v9 }
 0x18f   :  { %808 = vmatprep.mubr.f32.mxu0 %v8503_v0 }
 0x192   :  { %3393 = vmatmul.mubr.msk.f32.gmra.mrb[14].mxu0 %vm523_vm10, %v345_v1 }
 0x193   :  { %2797 = vmatprep.mubr.f32.mxu0 %v8503_v0 }
 0x249   :  { %v614_v44 = vpop.f32.mrb[0].mxu0 }
 0x24a   :  { %v615_v56 = vadd.f32 %v614_v44, %v5569_v11  ;;  %v616_v46 = vpop.f32.mrb[1].mxu0 }
 0x24b   :  { %v617_v6 = vadd.f32 %v616_v46, %v5569_v11 }
 0x24c   :  { %v815_v54 = vmax.f32 %v615_v56, 0.0 }
 0x24d   :  { %v816_v21 = vmax.f32 %v617_v6, 0.0  ;;  %v620_v22 = vpop.f32.mrb[2].mxu0  ;;  %v703_v23 = vpop.f32.mrb[0].mxu1 }
 0x24e   :  { %v871_v24 = vmul.f32 %v5700_v14, %v815_v54  ;;  %v621_v26 = vadd.f32 %v620_v22, %v5565_v59  ;;  %v704_v28 = vadd.f32 %v703_v23, %v5569_v11  ;;  %v622_v30 = vpop.f32.mrb[3].mxu0  ;;  %v705_v5 = vpop.f32.mrb[1].mxu1 }
 0x24f   :  { %v5715_v31 = vmul.f32 %v5705_v47, %v816_v21  ;;  %v623_v32 = vadd.f32 %v622_v30, %v5565_v59  ;;  %v706_v61 = vadd.f32 %v705_v5, %v5569_v11  ;;  %v5774_v5 = vrot.slane %v5695_v42, %v863_v63 }
 0x250   :  { %v821_v34 = vmax.f32 %v621_v26, 0.0  ;;  %v817_v62 = vmax.f32 %v704_v28, 0.0  ;;  %v3910_v35 = vpack.i.bf16 %v871_v24, %v8503_v0 }
 0x251   :  { %v822_v19 = vmax.f32 %v623_v32, 0.0  ;;  %v818_v36 = vmax.f32 %v706_v61, 0.0  ;;  %v626_v37 = vpop.f32.mrb[4].mxu0  ;;  %v709_v38 = vpop.f32.mrb[2].mxu1  ;;  %v5725_v57 = vpack.i.bf16 %v5715_v31, %v871_v24 }
 0x252   :  { %v5729_v8 = vmul.f32 %v5700_v14, %v821_v34  ;;  %v5732_v39 = vmul.f32 %v5712_v29, %v817_v62  ;;  %v627_v25 = vadd.f32 %v626_v37, %v5567_v60  ;;  %v710_v27 = vadd.f32 %v709_v38, %v5565_v59  ;;  %v628_v48 = vpop.f32.mrb[5].mxu0  ;;  %v711_v13 = vpop.f32.mrb[3].mxu1  ;;  %3911 = vrot.lane.b32.xlu1 %v3910_v35, %s5190_s2 }
 0x253   :  { %v878_v4 = vmul.f32 %v5705_v47, %v822_v19  ;;  %v5739_v17 = vmul.f32 %v5720_v33, %v818_v36  ;;  %v629_v50 = vadd.f32 %v628_v48, %v5567_v60  ;;  %v712_v7 = vadd.f32 %v711_v13, %v5565_v59  ;;  %3916 = vrot.lane.b32.xlu0 %v5725_v57, %s5180_s27 }
 0x254   :  { %v827_v2 = vmax.f32 %v627_v25, 0.0  ;;  %v823_v40 = vmax.f32 %v710_v27, 0.0  ;;  %v3995_v58 = vpack.i.bf16 %v5732_v39, %v5715_v31 }
 0x255   :  { %v828_v15 = vmax.f32 %v629_v50, 0.0  ;;  %v824_v1 = vmax.f32 %v712_v7, 0.0  ;;  %v632_v18 = vpop.f32.mrb[6].mxu0  ;;  %v715_v43 = vpop.f32.mrb[4].mxu1  ;;  %v5752_v44 = vpack.i.bf16 %v5739_v17, %v5732_v39  ;;  %v5755_v56 = vpack.i.bf16 %v878_v4, %v5729_v8 }
 0x256   :  { %v5758_v46 = vmul.f32 %v5700_v14, %v827_v2  ;;  %v879_v52 = vmul.f32 %v5712_v29, %v823_v40  ;;  %v633_v6 = vadd.f32 %v632_v18, %v5573_v10  ;;  %v716_v51 = vadd.f32 %v715_v43, %v5567_v60  ;;  %v634_v54 = vpop.f32.mrb[7].mxu0  ;;  %v717_v21 = vpop.f32.mrb[5].mxu1 }
 0x257   :  { %v5764_v22 = vmul.f32 %v5705_v47, %v828_v15  ;;  %v880_v23 = vmul.f32 %v5720_v33, %v824_v1  ;;  %v635_v24 = vadd.f32 %v634_v54, %v5573_v10  ;;  %v718_v26 = vadd.f32 %v717_v21, %v5567_v60  ;;  %3926 = vrot.lane.b32.xlu0 %v5725_v57, %s5182_s28 }
 0x258   :  { %v833_v28 = vmax.f32 %v633_v6, 0.0  ;;  %v829_v30 = vmax.f32 %v716_v51, 0.0  ;;  %3921 = vrot.lane.b32.xlu1 %v5752_v44, %s5180_s27  ;;  %v5776_v32 = vpack.i.bf16 %v879_v52, %v878_v4  ;;  %v4090_v31 = vpack.i.bf16 %v5758_v46, %v8503_v0 }
 0x259   :  { %v834_v61 = vmax.f32 %v635_v24, 0.0  ;;  %v830_v34 = vmax.f32 %v718_v26, 0.0  ;;  %v721_v62 = vpop.f32.mrb[6].mxu1  ;;  %v792_v35 = vpop.f32.mrb[8].mxu0  ;;  %v5778_v9 = vpack.i.bf16 %v880_v23, %v879_v52  ;;  %v5782_v19 = vpack.i.bf16 %v5764_v22, %v5758_v46 }
 0x25a   :  { %v5785_v36 = vmul.f32 %v5700_v14, %v833_v28  ;;  %v5788_v37 = vmul.f32 %v5712_v29, %v829_v30  ;;  %v722_v42 = vadd.f32 %v721_v62, %v5573_v10  ;;  %v793_v38 = vadd.f32 %v792_v35, %v5569_v11  ;;  %v723_v63 = vpop.f32.mrb[7].mxu1  ;;  %v794_v25 = vpop.f32.mrb[9].mxu0 }
 0x25b   :  { %v890_v27 = vmul.f32 %v5705_v47, %v834_v61  ;;  %v5794_v48 = vmul.f32 %v5720_v33, %v830_v34  ;;  %v724_v13 = vadd.f32 %v723_v63, %v5573_v10  ;;  %v795_v4 = vadd.f32 %v794_v25, %v5569_v11  ;;  %3936 = vrot.lane.b32.xlu0 %v5725_v57, %s5183_s8 }
 0x25c   :  { %v835_v14 = vmax.f32 %v722_v42, 0.0  ;;  %v819_v50 = vmax.f32 %v793_v38, 0.0  ;;  %3931 = vrot.lane.b32.xlu1 %v5752_v44, %s5182_s28  ;;  %v4175_v7 = vpack.i.bf16 %v5788_v37, %v5764_v22 }
 0x25d   :  { %v836_v2 = vmax.f32 %v724_v13, 0.0  ;;  %v820_v47 = vmax.f32 %v795_v4, 0.0  ;;  %v798_v40 = vpop.f32.mrb[10].mxu0  ;;  %v5806_v15 = vpack.i.bf16 %v5794_v48, %v5788_v37  ;;  %v5809_v11 = vpack.i.bf16 %v890_v27, %v5785_v36 }
 0x25e   :  { %v891_v1 = vmul.f32 %v5712_v29, %v835_v14  ;;  %v5813_v18 = vmul.f32 %v5746_v20, %v819_v50  ;;  %v799_v43 = vadd.f32 %v798_v40, %v5565_v59  ;;  %v800_v52 = vpop.f32.mrb[11].mxu0 }
 0x25f   :  { %v892_v6 = vmul.f32 %v5720_v33, %v836_v2  ;;  %v5818_v51 = vmul.f32 %v5774_v5, %v820_v47  ;;  %v801_v54 = vadd.f32 %v800_v52, %v5565_v59  ;;  %3946 = vrot.lane.b32.xlu0 %v5725_v57, %s5184_s11 }
 0x260   :  { %v825_v21 = vmax.f32 %v799_v43, 0.0  ;;  %3941 = vrot.lane.b32.xlu1 %v5752_v44, %s5183_s8  ;;  %v5825_v29 = vpack.i.bf16 %v891_v1, %v890_v27  ;;  %v4270_v24 = vpack.i.bf16 %v5813_v18, %v5739_v17 }
 0x261   :  { %v826_v26 = vmax.f32 %v801_v54, 0.0  ;;  %v804_v28 = vpop.f32.mrb[12].mxu0  ;;  %v5829_v33 = vpack.i.bf16 %v892_v6, %v891_v1  ;;  %v5833_v30 = vpack.i.bf16 %v5818_v51, %v5813_v18 }
 0x262   :  { %v881_v59 = vmul.f32 %v5746_v20, %v825_v21  ;;  %v805_v61 = vadd.f32 %v804_v28, %v5567_v60  ;;  %v806_v34 = vpop.f32.mrb[13].mxu0 }
 0x263   :  { %v5838_v62 = vmul.f32 %v5774_v5, %v826_v26  ;;  %v807_v35 = vadd.f32 %v806_v34, %v5567_v60  ;;  %3956 = vrot.lane.b32.xlu0 %v5725_v57, %s5185_s12 }
 0x264   :  { %v831_v42 = vmax.f32 %v805_v61, 0.0  ;;  %3951 = vrot.lane.b32.xlu1 %v5752_v44, %s5184_s11  ;;  %v5845_v38 = vpack.i.bf16 %v881_v59, %v880_v23 }
 0x265   :  { %v832_v63 = vmax.f32 %v807_v35, 0.0  ;;  %v810_v25 = vpop.f32.mrb[14].mxu0  ;;  %v5848_v27 = vpack.i.bf16 %v5838_v62, %v881_v59 }
 0x266   :  { %v5851_v13 = vmul.f32 %v5746_v20, %v831_v42  ;;  %v811_v4 = vadd.f32 %v810_v25, %v5573_v10  ;;  %v812_v60 = vpop.f32.mrb[15].mxu0  ;;  %v4315_v25 = vpack.i.bf16 %v8503_v0, %v5818_v51 }
 0x267   :  { %v5855_v14 = vmul.f32 %v5774_v5, %v832_v63  ;;  %v813_v50 = vadd.f32 %v812_v60, %v5573_v10  ;;  %3966 = vrot.lane.b32.xlu0 %v5725_v57, %s5186_s15 }
 0x268   :  { %v837_v23 = vmax.f32 %v811_v4, 0.0  ;;  %3961 = vrot.lane.b32.xlu1 %v5752_v44, %s5185_s12  ;;  %v8743_v12 = vpack.i.bf16 %v5851_v13, %v5794_v48 }
 0x269   :  { %v838_v47 = vmax.f32 %v813_v50, 0.0  ;;  %v5866_v40 = vpack.i.bf16 %v5855_v14, %v5851_v13 }
 0x26a   :  { %v893_v1 = vmul.f32 %v5746_v20, %v837_v23  ;;  %v4000_v20 = vpack.i.bf16 %v5729_v8, %v8503_v0  ;;  %v5966_v8 = vpop.permute.xlu0 %1692 }
 0x26b   :  { %v5870_v43 = vmul.f32 %v5774_v5, %v838_v47  ;;  %3976 = vrot.lane.b32.xlu0 %v5725_v57, %s5187_s16  ;;  %8718 = vst [vmem:[#allocation16_spill] sm:$0xff] %v5966_v8 }
 0x26c   :  { %3971 = vrot.lane.b32.xlu1 %v5752_v44, %s5186_s15  ;;  %v5876_v10 = vpack.i.bf16 %v893_v1, %v892_v6 }
 0x26d   :  { %v5879_v52 = vpack.i.bf16 %v5870_v43, %v893_v1 }
 0x26f   :  { %3986 = vrot.lane.b32.xlu0 %v5725_v57, %s5188_s0  ;;  %v4180_v57 = vpack.i.bf16 %v5785_v36, %v8503_v0 }
 0x270   :  { %3981 = vrot.lane.b32.xlu1 %v5752_v44, %s5187_s16 }
 0x273   :  { %3996 = vrot.lane.b32.xlu0 %v3995_v58, %s5190_s2 }
 0x274   :  { %3991 = vrot.lane.b32.xlu1 %v5752_v44, %s5188_s0 }
 0x277   :  { %4036 = vrot.lane.b32.xlu0 %v5776_v32, %s5180_s27 }
 0x278   :  { %4001 = vrot.lane.b32.xlu1 %v4000_v20, %s5180_s27 }
 0x27b   :  { %4041 = vrot.lane.b32.xlu0 %v5776_v32, %s5182_s28 }
 0x27c   :  { %4006 = vrot.lane.b32.xlu1 %v4000_v20, %s5182_s28 }
 0x27f   :  { %4046 = vrot.lane.b32.xlu0 %v5776_v32, %s5183_s8 }
 0x280   :  { %4011 = vrot.lane.b32.xlu1 %v4000_v20, %s5183_s8 }
 0x283   :  { %4056 = vrot.lane.b32.xlu0 %v5778_v9, %s5184_s11 }
 0x284   :  { %4016 = vrot.lane.b32.xlu1 %v4000_v20, %s5185_s12 }
 0x287   :  { %4061 = vrot.lane.b32.xlu0 %v5776_v32, %s5185_s12 }
 0x288   :  { %4021 = vrot.lane.b32.xlu1 %v4000_v20, %s5186_s15 }
 0x28b   :  { %4066 = vrot.lane.b32.xlu0 %v5776_v32, %s5186_s15 }
 0x28c   :  { %4026 = vrot.lane.b32.xlu1 %v4000_v20, %s5187_s16 }
 0x28f   :  { %4071 = vrot.lane.b32.xlu0 %v5776_v32, %s5187_s16 }
 0x290   :  { %4031 = vrot.lane.b32.xlu1 %v4000_v20, %s5188_s0 }
 0x293   :  { %4076 = vrot.lane.b32.xlu0 %v5776_v32, %s5188_s0 }
 0x294   :  { %4051 = vrot.lane.b32.xlu1 %v5755_v56, %s5184_s11 }
 0x297   :  { %4086 = vrot.lane.b32.xlu0 %v5778_v9, %s5190_s2 }
 0x298   :  { %4081 = vrot.lane.b32.xlu1 %v5755_v56, %s5190_s2 }
 0x29b   :  { %4091 = vrot.lane.b32.xlu0 %v4090_v31, %s5190_s2 }
 0x29c   :  { %4096 = vrot.lane.b32.xlu1 %v5782_v19, %s5180_s27 }
 0x29f   :  { %4101 = vrot.lane.b32.xlu0 %v5806_v15, %s5180_s27 }
 0x2a0   :  { %4106 = vrot.lane.b32.xlu1 %v5782_v19, %s5182_s28 }
 0x2a3   :  { %4111 = vrot.lane.b32.xlu0 %v5806_v15, %s5182_s28 }
 0x2a4   :  { %4116 = vrot.lane.b32.xlu1 %v5782_v19, %s5183_s8 }
 0x2a7   :  { %4121 = vrot.lane.b32.xlu0 %v5806_v15, %s5183_s8 }
 0x2a8   :  { %4131 = vrot.lane.b32.xlu1 %v5806_v15, %s5184_s11 }
 0x2ab   :  { %4126 = vrot.lane.b32.xlu0 %v5782_v19, %s5184_s11 }
 0x2ac   :  { %4136 = vrot.lane.b32.xlu1 %v5782_v19, %s5185_s12 }
 0x2af   :  { %4141 = vrot.lane.b32.xlu0 %v5806_v15, %s5185_s12 }
 0x2b0   :  { %4146 = vrot.lane.b32.xlu1 %v5782_v19, %s5186_s15 }
 0x2b3   :  { %4151 = vrot.lane.b32.xlu0 %v5806_v15, %s5186_s15 }
 0x2b4   :  { %4156 = vrot.lane.b32.xlu1 %v5782_v19, %s5187_s16 }
 0x2b7   :  { %4161 = vrot.lane.b32.xlu0 %v5806_v15, %s5187_s16 }
 0x2b8   :  { %4166 = vrot.lane.b32.xlu1 %v5782_v19, %s5188_s0 }
 0x2bb   :  { %4171 = vrot.lane.b32.xlu0 %v5806_v15, %s5188_s0 }
 0x2bc   :  { %4176 = vrot.lane.b32.xlu1 %v4175_v7, %s5190_s2 }
 0x2bf   :  { %4181 = vrot.lane.b32.xlu0 %v4180_v57, %s5180_s27 }
 0x2c0   :  { %4216 = vrot.lane.b32.xlu1 %v5825_v29, %s5180_s27 }
 0x2c3   :  { %4186 = vrot.lane.b32.xlu0 %v4180_v57, %s5182_s28 }
 0x2c4   :  { %4221 = vrot.lane.b32.xlu1 %v5825_v29, %s5182_s28  ;;  %v5971_v39 = vpop.permute.xlu1 %3911 }
 0x2c5   :  { %v5973_v58 = vpop.permute.xlu0 %3916  ;;  %v8510_v20 = vunpack.i.h.bf16 %v5971_v39 }
 0x2c7   :  { %4191 = vrot.lane.b32.xlu0 %v4180_v57, %s5183_s8 }
 0x2c8   :  { %4226 = vrot.lane.b32.xlu1 %v5825_v29, %s5183_s8 }
 0x2c9   :  { %v5978_v44 = vpop.permute.xlu0 %3926 }
 0x2ca   :  { %v5980_v56 = vpop.permute.xlu1 %3921 }
 0x2cb   :  { %8719 = vst [vmem:[#allocation17_spill] sm:$0xff] %v5980_v56  ;;  %4196 = vrot.lane.b32.xlu0 %v4180_v57, %s5185_s12 }
 0x2cc   :  { %4231 = vrot.lane.b32.xlu1 %v5809_v11, %s5184_s11 }
 0x2cd   :  { %v5985_v46 = vpop.permute.xlu0 %3936 }
 0x2ce   :  { %v5987_v22 = vpop.permute.xlu1 %3931 }
 0x2cf   :  { %8720 = vst [vmem:[#allocation18_spill] sm:$0xff] %v5987_v22  ;;  %4201 = vrot.lane.b32.xlu0 %v4180_v57, %s5186_s15 }
 0x2d0   :  { %4241 = vrot.lane.b32.xlu1 %v5825_v29, %s5185_s12 }
 0x2d1   :  { %v5992_v5 = vpop.permute.xlu0 %3946 }
 0x2d2   :  { %v5994_v32 = vpop.permute.xlu1 %3941 }
 0x2d3   :  { %8721 = vst [vmem:[#allocation19_spill] sm:$0xff] %v5994_v32  ;;  %4206 = vrot.lane.b32.xlu0 %v4180_v57, %s5187_s16 }
 0x2d4   :  { %4246 = vrot.lane.b32.xlu1 %v5825_v29, %s5186_s15 }
 0x2d5   :  { %v5999_v9 = vpop.permute.xlu0 %3956 }
 0x2d6   :  { %v6001_v19 = vpop.permute.xlu1 %3951 }
 0x2d7   :  { %8722 = vst [vmem:[#allocation20_spill] sm:$0xff] %v6001_v19  ;;  %4211 = vrot.lane.b32.xlu0 %v4180_v57, %s5188_s0 }
 0x2d8   :  { %4251 = vrot.lane.b32.xlu1 %v5825_v29, %s5187_s16 }
 0x2d9   :  { %v6006_v36 = vpop.permute.xlu0 %3966 }
 0x2da   :  { %v6008_v37 = vpop.permute.xlu1 %3961 }
 0x2db   :  { %4236 = vrot.lane.b32.xlu0 %v5829_v33, %s5184_s11 }
 0x2dc   :  { %4256 = vrot.lane.b32.xlu1 %v5825_v29, %s5188_s0 }
 0x2dd   :  { %v6014_v7 = vpop.permute.xlu0 %3976 }
 0x2de   :  { %v6016_v15 = vpop.permute.xlu1 %3971 }
 0x2df   :  { %4261 = vrot.lane.b32.xlu0 %v5809_v11, %s5190_s2 }
 0x2e0   :  { %4266 = vrot.lane.b32.xlu1 %v5829_v33, %s5190_s2 }
 0x2e1   :  { %v6022_v6 = vpop.permute.xlu0 %3986 }
 0x2e2   :  { %v6024_v54 = vpop.permute.xlu1 %3981 }
 0x2e3   :  { %4276 = vrot.lane.b32.xlu0 %v5833_v30, %s5180_s27 }
 0x2e4   :  { %4271 = vrot.lane.b32.xlu1 %v4270_v24, %s5190_s2 }
 0x2e5   :  { %v6032_v21 = vpop.permute.xlu0 %3996 }
 0x2e6   :  { %8723 = vst [vmem:[#allocation21_spill] sm:$0xff] %v6032_v21  ;;  %v6034_v29 = vpop.permute.xlu1 %3991  ;;  %v8506_v51 = vunpack.i.h.bf16 %v6032_v21 }
 0x2e7   :  { %8724 = vst [vmem:[#allocation22_spill] sm:$0xff] %v6034_v29  ;;  %4281 = vrot.lane.b32.xlu0 %v5833_v30, %s5182_s28 }
 0x2e8   :  { %4321 = vrot.lane.b32.xlu1 %v5845_v38, %s5180_s27 }
 0x2e9   :  { %v6040_v11 = vpop.permute.xlu0 %4036 }
 0x2ea   :  { %v6042_v26 = vpop.permute.xlu1 %4001 }
 0x2eb   :  { %4286 = vrot.lane.b32.xlu0 %v5833_v30, %s5183_s8 }
 0x2ec   :  { %4326 = vrot.lane.b32.xlu1 %v5845_v38, %s5182_s28 }
 0x2ed   :  { %v6048_v17 = vpop.permute.xlu0 %4041 }
 0x2ee   :  { %8725 = vst [vmem:[#allocation23_spill] sm:$0xff] %v6048_v17  ;;  %v6050_v18 = vpop.permute.xlu1 %4006 }
 0x2ef   :  { %4291 = vrot.lane.b32.xlu0 %v5833_v30, %s5184_s11 }
 0x2f0   :  { %4331 = vrot.lane.b32.xlu1 %v5845_v38, %s5183_s8 }
 0x2f1   :  { %v6056_v24 = vpop.permute.xlu0 %4046 }
 0x2f2   :  { %8726 = vst [vmem:[#allocation24_spill] sm:$0xff] %v6056_v24  ;;  %v6058_v28 = vpop.permute.xlu1 %4011 }
 0x2f3   :  { %4296 = vrot.lane.b32.xlu0 %v5833_v30, %s5185_s12 }
 0x2f4   :  { %4336 = vrot.lane.b32.xlu1 %v5845_v38, %s5185_s12 }
 0x2f5   :  { %v6064_v33 = vpop.permute.xlu0 %4056 }
 0x2f6   :  { %8727 = vst [vmem:[#allocation25_spill] sm:$0xff] %v6064_v33  ;;  %v6066_v59 = vpop.permute.xlu1 %4016 }
 0x2f7   :  { %8728 = vst [vmem:[#allocation26_spill] sm:$0xff] %v6066_v59  ;;  %4301 = vrot.lane.b32.xlu0 %v5833_v30, %s5186_s15 }
 0x2f8   :  { %4341 = vrot.lane.b32.xlu1 %v5845_v38, %s5186_s15 }
 0x2f9   :  { %v6072_v61 = vpop.permute.xlu0 %4061 }
 0x2fa   :  { %8729 = vst [vmem:[#allocation27_spill] sm:$0xff] %v6072_v61  ;;  %v6074_v34 = vpop.permute.xlu1 %4021 }
 0x2fb   :  { %8730 = vst [vmem:[#allocation28_spill] sm:$0xff] %v6074_v34  ;;  %4306 = vrot.lane.b32.xlu0 %v5833_v30, %s5187_s16 }
 0x2fc   :  { %4346 = vrot.lane.b32.xlu1 %v5845_v38, %s5187_s16 }
 0x2fd   :  { %v6080_v35 = vpop.permute.xlu0 %4066 }
 0x2fe   :  { %v6082_v42 = vpop.permute.xlu1 %4026 }
 0x2ff   :  { %8731 = vst [vmem:[#allocation29_spill] sm:$0xff] %v6082_v42  ;;  %4311 = vrot.lane.b32.xlu0 %v5833_v30, %s5188_s0  ;;  %v4355_v30 = vpack.i.bf16 %v8503_v0, %v5838_v62 }
 0x300   :  { %4351 = vrot.lane.b32.xlu1 %v5845_v38, %s5188_s0  ;;  %v3998_v38 = vunpack.i.l.bf16 %v6032_v21 }
 0x301   :  { %v6088_v63 = vpop.permute.xlu0 %4071 }
 0x302   :  { %v6092_v4 = vpop.permute.xlu1 %4031  ;;  %v2200_v41 = vsel %vm468_vm9, %v8510_v20, %v3998_v38 }
 0x303   :  { %8732 = vst [vmem:[#allocation30_spill] sm:$0xff] %v6092_v4  ;;  %4316 = vrot.lane.b32.xlu0 %v4315_v25, %s5190_s2 }
 0x304   :  { %4371 = vrot.lane.b32.xlu1 %v5848_v27, %s5184_s11 }
 0x305   :  { %v6097_v60 = vpop.permute.xlu0 %4076 }
 0x306   :  { %8733 = vst [vmem:[#allocation31_spill] sm:$0xff] %v6097_v60  ;;  %v6101_v50 = vpop.permute.xlu1 %4051 }
 0x307   :  { %4356 = vrot.lane.b32.xlu0 %v4355_v30, %s5180_s27 }
 0x308   :  { %4396 = vrot.lane.b32.xlu1 %v5848_v27, %s5190_s2  ;;  %v6122_v27 = vsel %vm468_vm9, %v3998_v38, %v8506_v51 }
 0x309   :  { %v6108_v23 = vpop.permute.xlu0 %4086  ;;  %8735 = vst [vmem:[#allocation33_spill] sm:$0xff] %v6122_v27 }
 0x30a   :  { %8734 = vst [vmem:[#allocation32_spill] sm:$0xff] %v6108_v23  ;;  %v8507_v47 = vunpack.i.l.bf16 %v6108_v23  ;;  %v6111_v1 = vpop.permute.xlu1 %4081 }
 0x30b   :  { %v4084_v62 = vunpack.i.h.bf16 %v6111_v1  ;;  %v8509_v31 = vunpack.i.l.bf16 %v6111_v1  ;;  %4361 = vrot.lane.b32.xlu0 %v4355_v30, %s5182_s28 }
 0x30c   :  { %4406 = vrot.lane.b32.xlu1 %v5866_v40, %s5180_s27 }
 0x30d   :  { %v6127_v57 = vsel %vm468_vm9, %v4084_v62, %v8507_v47  ;;  %v6129_v25 = vpop.permute.xlu0 %4091  ;;  %v2206_v0 = vsel %vm468_vm9, %v8509_v31, %v4084_v62 }
 0x30e   :  { %8736 = vst [vmem:[#allocation34_spill] sm:$0xff] %v6127_v57  ;;  %v6137_v2 = vpop.permute.xlu1 %4096  ;;  %v3430_v16 = vpack.c.bf16 %v2206_v0, %v2200_v41 }
 0x30f   :  { %4366 = vrot.lane.b32.xlu0 %v4355_v30, %s5183_s8 }
 0x310   :  { %4411 = vrot.lane.b32.xlu1 %v5866_v40, %s5182_s28  ;;  %3431 = vmatprep.subr.bf16.mxu1 %v3430_v16 }
 0x311   :  { %v6144_v47 = vpop.permute.xlu0 %4101 }
 0x312   :  { %8737 = vst [vmem:[#allocation35_spill] sm:$0xff] %v6144_v47  ;;  %v6146_v8 = vpop.permute.xlu1 %4106  ;;  %v3918_v47 = vunpack.i.l.bf16 %v5973_v58 }
 0x313   :  { %4376 = vrot.lane.b32.xlu0 %v4355_v30, %s5185_s12 }
 0x314   :  { %4416 = vrot.lane.b32.xlu1 %v5866_v40, %s5183_s8 }
 0x315   :  { %v6151_v38 = vpop.permute.xlu0 %4111 }
 0x316   :  { %v6153_v0 = vpop.permute.xlu1 %4116 }
 0x317   :  { %4381 = vrot.lane.b32.xlu0 %v4355_v30, %s5186_s15 }
 0x318   :  { %4426 = vrot.lane.b32.xlu1 %v5866_v40, %s5185_s12 }
 0x319   :  { %v6158_v41 = vpop.permute.xlu0 %4121 }
 0x31a   :  { %8738 = vst [vmem:[#allocation36_spill] sm:$0xff] %v6158_v41  ;;  %v6160_v16 = vpop.permute.xlu1 %4131 }
 0x31b   :  { %8739 = vst [vmem:[#allocation37_spill] sm:$0xff] %v6160_v16  ;;  %4386 = vrot.lane.b32.xlu0 %v4355_v30, %s5187_s16 }
 0x31c   :  { %4431 = vrot.lane.b32.xlu1 %v5866_v40, %s5186_s15 }
 0x31d   :  { %v6165_v62 = vpop.permute.xlu0 %4126 }
 0x31e   :  { %v6167_v51 = vpop.permute.xlu1 %4136 }
 0x31f   :  { %8740 = vst [vmem:[#allocation38_spill] sm:$0xff] %v6167_v51  ;;  %4391 = vrot.lane.b32.xlu0 %v4355_v30, %s5188_s0  ;;  %v8746_v30 = vmov 0.0  }
 0x320   :  { %4436 = vrot.lane.b32.xlu1 %v5866_v40, %s5187_s16  ;;  %v4445_v27 = vpack.i.bf16 %v8746_v30, %v5855_v14 }
 0x321   :  { %v6172_v31 = vpop.permute.xlu0 %4141 }
 0x322   :  { %8741 = vst [vmem:[#allocation39_spill] sm:$0xff] %v6172_v31  ;;  %v6174_v20 = vpop.permute.xlu1 %4146 }
 0x323   :  { %8742 = vst [vmem:[#allocation40_spill] sm:$0xff] %v6174_v20  ;;  %4401 = vrot.lane.b32.xlu0 %v8743_v12, %s5190_s2 }
 0x324   :  { %4441 = vrot.lane.b32.xlu1 %v5866_v40, %s5188_s0 }
 0x325   :  { %v6182_v3 = vpop.permute.xlu0 %4151 }
 0x326   :  { %8744 = vst [vmem:[#allocation41_spill] sm:$0xff] %v6182_v3  ;;  %v6184_v55 = vpop.permute.xlu1 %4156  ;;  %v3919_v3 = vunpack.i.h.bf16 %v5973_v58 }
 0x327   :  { %8745 = vst [vmem:[#allocation42_spill] sm:$0xff] %v6184_v55  ;;  %4421 = vrot.lane.b32.xlu0 %v5866_v40, %s5184_s11 }
 0x328   :  { %4446 = vrot.lane.b32.xlu1 %v4445_v27, %s5190_s2 }
 0x329   :  { %v6191_v57 = vpop.permute.xlu0 %4161 }
 0x32a   :  { %8747 = vst [vmem:[#allocation43_spill] sm:$0xff] %v6191_v57  ;;  %v6193_v21 = vpop.permute.xlu1 %4166  ;;  %v4490_v57 = vpack.i.bf16 %v8746_v30, %v5870_v43 }
 0x32b   :  { %4451 = vrot.lane.b32.xlu0 %v5876_v10, %s5180_s27 }
 0x32c   :  { %1057 = vrot.lane.b32.xlu1 %v5870_v43, %s5180_s27 }
 0x32d   :  { %v6199_v12 = vpop.permute.xlu0 %4171 }
 0x32e   :  { %8748 = vst [vmem:[#allocation44_spill] sm:$0xff] %v6199_v12  ;;  %v6201_v48 = vpop.permute.xlu1 %4176 }
 0x32f   :  { %8749 = vst [vmem:[#allocation45_spill] sm:$0xff] %v6201_v48  ;;  %4456 = vrot.lane.b32.xlu0 %v5876_v10, %s5182_s28 }
 0x330   :  { %1137 = vrot.lane.b32.xlu1 %v5870_v43, %s5182_s28 }
 0x331   :  { %v6207_v13 = vpop.permute.xlu0 %4181 }
 0x332   :  { %8750 = vst [vmem:[#allocation46_spill] sm:$0xff] %v6207_v13  ;;  %v6209_v14 = vpop.permute.xlu1 %4216 }
 0x333   :  { %8751 = vst [vmem:[#allocation47_spill] sm:$0xff] %v6209_v14  ;;  %4461 = vrot.lane.b32.xlu0 %v5876_v10, %s5183_s8 }
 0x334   :  { %1217 = vrot.lane.b32.xlu1 %v5870_v43, %s5183_s8  ;;  %v3923_v43 = vunpack.i.l.bf16 %v5980_v56 }
 0x335   :  { %v6215_v40 = vpop.permute.xlu0 %4186 }
 0x336   :  { %8752 = vst [vmem:[#allocation48_spill] sm:$0xff] %v6215_v40  ;;  %v6217_v27 = vpop.permute.xlu1 %4221 }
 0x337   :  { %8753 = vst [vmem:[#allocation49_spill] sm:$0xff] %v6217_v27  ;;  %4466 = vrot.lane.b32.xlu0 %v5876_v10, %s5185_s12 }
 0x338   :  { %4486 = vrot.lane.b32.xlu1 %v5879_v52, %s5184_s11 }
 0x339   :  { %v6223_v23 = vpop.permute.xlu0 %4191 }
 0x33a   :  { %v6225_v55 = vpop.permute.xlu1 %4226 }
 0x33b   :  { %8754 = vst [vmem:[#allocation50_spill] sm:$0xff] %v6225_v55  ;;  %4471 = vrot.lane.b32.xlu0 %v5876_v10, %s5186_s15  ;;  %v8537_v55 = vunpack.i.h.bf16 %v5980_v56  ;;  %v3989_v56 = vunpack.i.h.bf16 %v6022_v6 }
 0x33c   :  { %4491 = vrot.lane.b32.xlu1 %v4490_v57, %s5185_s12 }
 0x33d   :  { %v6232_v20 = vpop.permute.xlu0 %4196  ;;  %v1062_v51 = vsel %vm96_vm0, %v3923_v43, %v8537_v55  ;;  %v8764_v55 = vunpack.i.l.bf16 %v5978_v44 }
 0x33e   :  { %8755 = vst [vmem:[#allocation51_spill] sm:$0xff] %v6232_v20  ;;  %v6234_v27 = vpop.permute.xlu1 %4231  ;;  %v3735_v20 = vunpack.i.h.bf16 %v5366_v45  ;;  %v3929_v45 = vunpack.i.h.bf16 %v5978_v44 }
 0x33f   :  { %8756 = vst [vmem:[#allocation52_spill] sm:$0xff] %v6234_v27  ;;  %4476 = vrot.lane.b32.xlu0 %v5876_v10, %s5187_s16 }
 0x340   :  { %4496 = vrot.lane.b32.xlu1 %v4490_v57, %s5186_s15  ;;  %v1059_v58 = vsel %vm96_vm0, %v3735_v20, %v3918_v47 }
 0x341   :  { %v6239_v40 = vpop.permute.xlu0 %4201 }
 0x342   :  { %8757 = vst [vmem:[#allocation53_spill] sm:$0xff] %v6239_v40  ;;  %v6243_v30 = vpop.permute.xlu1 %4241  ;;  %v1061_v40 = vsel %vm96_vm0, %v3919_v3, %v3923_v43  ;;  %v3988_v43 = vunpack.i.l.bf16 %v6022_v6  ;;  %v8763_v6 = vunpack.i.l.bf16 %v5987_v22 }
 0x343   :  { %8758 = vst [vmem:[#allocation54_spill] sm:$0xff] %v6243_v30  ;;  %4481 = vrot.lane.b32.xlu0 %v5876_v10, %s5188_s0  ;;  %v8539_v30 = vunpack.i.l.bf16 %v6034_v29  ;;  %v1060_v10 = vsel %vm96_vm0, %v3918_v47, %v3919_v3  ;;  %v4520_v3 = vpack.i.bf16 %v1062_v51, %v1061_v40  ;;  %v1140_v51 = vsel %vm124_vm3, %v8764_v55, %v3929_v45 }
 0x344   :  { %4501 = vrot.lane.b32.xlu1 %v4490_v57, %s5187_s16  ;;  %v4515_v13 = vpack.i.bf16 %v1060_v10, %v1059_v58  ;;  %v3949_v58 = vunpack.i.h.bf16 %v5992_v5  ;;  %v8765_v10 = vunpack.i.l.bf16 %v5994_v32  ;;  %v4043_v55 = vunpack.i.l.bf16 %v6048_v17 }
 0x345   :  { %v6251_v27 = vpop.permute.xlu0 %4206  ;;  %v1636_v47 = vsel %vm306_vm1, %v3989_v56, %v8539_v30  ;;  %v1635_v30 = vsel %vm306_vm1, %v3988_v43, %v3989_v56  ;;  %v8768_v40 = vunpack.i.l.bf16 %v5985_v46 }
 0x346   :  { %8759 = vst [vmem:[#allocation55_spill] sm:$0xff] %v6251_v27  ;;  %v6258_v14 = vpop.permute.xlu1 %4246  ;;  %v3939_v27 = vunpack.i.h.bf16 %v5985_v46 }
 0x347   :  { %8760 = vst [vmem:[#allocation56_spill] sm:$0xff] %v6258_v14  ;;  %4511 = vrot.lane.b32.xlu0 %v5879_v52, %s5190_s2 }
 0x348   :  { %4506 = vrot.lane.b32.xlu1 %v4490_v57, %s5188_s0  ;;  %v1141_v57 = vsel %vm124_vm3, %v3929_v45, %v8763_v6  ;;  %v1221_v14 = vsel %vm152_vm4, %v3939_v27, %v8765_v10  ;;  %v1220_v32 = vsel %vm152_vm4, %v8768_v40, %v3939_v27  ;;  %v3959_v6 = vunpack.i.h.bf16 %v5999_v9 }
 0x349   :  { %v6271_v20 = vpop.permute.xlu0 %4211  ;;  %v8770_v27 = vunpack.i.h.bf16 %v6092_v4  ;;  %v8772_v45 = vunpack.i.h.bf16 %v6050_v18  ;;  %v8775_v10 = vunpack.i.l.bf16 %v6008_v37 }
 0x34a   :  { %8761 = vst [vmem:[#allocation57_spill] sm:$0xff] %v6271_v20  ;;  %v6276_v52 = vpop.permute.xlu1 %4251 }
 0x34b   :  { %8762 = vst [vmem:[#allocation58_spill] sm:$0xff] %v6276_v52  ;;  %4521 = vrot.lane.b32.xlu0 %v4520_v3, %s5190_s2  ;;  %v4535_v3 = vpack.i.bf16 %v1636_v47, %v1635_v30  ;;  %v8769_v30 = vunpack.i.l.bf16 %v6001_v19  ;;  %v4560_v40 = vpack.i.bf16 %v8770_v27, %v3988_v43  ;;  %v8774_v43 = vunpack.i.l.bf16 %v5992_v5 }
 0x34c   :  { %4516 = vrot.lane.b32.xlu1 %v4515_v13, %s5190_s2  ;;  %v4525_v13 = vpack.i.bf16 %v1141_v57, %v1140_v51  ;;  %v4530_v57 = vpack.i.bf16 %v1221_v14, %v1220_v32  ;;  %v4048_v51 = vunpack.i.l.bf16 %v6056_v24  ;;  %v8776_v14 = vunpack.i.h.bf16 %v6056_v24 }
 0x34d   :  { %v6295_v29 = vpop.permute.xlu0 %4236  ;;  %v1292_v47 = vsel %vm184_vm5, %v3949_v58, %v8769_v30  ;;  %v8771_v30 = vunpack.i.h.bf16 %v6048_v17  ;;  %v1291_v27 = vsel %vm184_vm5, %v8774_v43, %v3949_v58  ;;  %v8777_v58 = vunpack.i.h.bf16 %v6201_v48 }
 0x34e   :  { %8766 = vst [vmem:[#allocation59_spill] sm:$0xff] %v6295_v29  ;;  %v6300_v56 = vpop.permute.xlu1 %4256  ;;  %v4540_v32 = vpack.i.bf16 %v1292_v47, %v1291_v27  ;;  %v1227_v17 = vsel %vm152_vm4, %v4048_v51, %v8776_v14  ;;  %v8778_v43 = vunpack.i.l.bf16 %v6201_v48  ;;  %v8782_v27 = vunpack.i.h.bf16 %v6058_v28 }
 0x34f   :  { %8767 = vst [vmem:[#allocation60_spill] sm:$0xff] %v6300_v56  ;;  %4536 = vrot.lane.b32.xlu0 %v4535_v3, %s5190_s2  ;;  %v1147_v22 = vsel %vm124_vm3, %v4043_v55, %v8771_v30  ;;  %v4054_v30 = vunpack.i.h.bf16 %v6101_v50  ;;  %v4053_v24 = vunpack.i.l.bf16 %v6101_v50  ;;  %v8785_v50 = vunpack.i.l.bf16 %v6016_v15 }
 0x350   :  { %4526 = vrot.lane.b32.xlu1 %v4525_v13, %s5190_s2  ;;  %v1146_v13 = vsel %vm124_vm3, %v8772_v45, %v4043_v55  ;;  %v1396_v55 = vsel %vm219_vm6, %v3959_v6, %v8775_v10  ;;  %v1226_v14 = vsel %vm152_vm4, %v8782_v27, %v4048_v51  ;;  %v8556_v51 = vunpack.i.l.bf16 %v6064_v33 }
 0x351   :  { %v6319_v52 = vpop.permute.xlu0 %4261  ;;  %v4600_v47 = vpack.i.bf16 %v1147_v22, %v1146_v13  ;;  %v3968_v13 = vunpack.i.l.bf16 %v6006_v36 }
 0x352   :  { %v6329_v19 = vpop.permute.xlu1 %4266  ;;  %v8780_v10 = vunpack.i.h.bf16 %v6319_v52 }
 0x353   :  { %8773 = vst [vmem:[#allocation61_spill] sm:$0xff] %v6329_v19  ;;  %v8553_v3 = vunpack.i.l.bf16 %v6329_v19  ;;  %4561 = vrot.lane.b32.xlu0 %v4560_v40, %s5190_s2  ;;  %v6350_v40 = vsel %vm468_vm9, %v8778_v43, %v8777_v58  ;;  %v3969_v19 = vunpack.i.h.bf16 %v6006_v36  ;;  %v1297_v36 = vsel %vm184_vm5, %v4054_v30, %v8556_v51 }
 0x354   :  { %4531 = vrot.lane.b32.xlu1 %v4530_v57, %s5190_s2  ;;  %8779 = vst [vmem:[#allocation62_spill] sm:$0xff] %v6350_v40 }
 0x355   :  { %v6357_v45 = vsel %vm468_vm9, %v8780_v10, %v8553_v3  ;;  %v6359_v57 = vpop.permute.xlu0 %4276  ;;  %v8784_v10 = vunpack.i.l.bf16 %v5999_v9  ;;  %v1476_v27 = vsel %vm250_vm7, %v3969_v19, %v8785_v50  ;;  %v3979_v50 = vunpack.i.h.bf16 %v6014_v7 }
 0x356   :  { %8781 = vst [vmem:[#allocation63_spill] sm:$0xff] %v6357_v45  ;;  %v6366_v58 = vpop.permute.xlu1 %4271  ;;  %v1475_v43 = vsel %vm250_vm7, %v3968_v13, %v3969_v19 }
 0x357   :  { %8783 = vst [vmem:[#allocation64_spill] sm:$0xff] %v6366_v58  ;;  %4601 = vrot.lane.b32.xlu0 %v4600_v47, %s5190_s2  ;;  %v1395_v22 = vsel %vm219_vm6, %v8784_v10, %v3959_v6  ;;  %v4605_v47 = vpack.i.bf16 %v1227_v17, %v1226_v14  ;;  %v4063_v6 = vunpack.i.l.bf16 %v6072_v61  ;;  %v3978_v17 = vunpack.i.l.bf16 %v6014_v7 }
 0x358   :  { %4541 = vrot.lane.b32.xlu1 %v4540_v32, %s5190_s2  ;;  %v4545_v40 = vpack.i.bf16 %v1396_v55, %v1395_v22  ;;  %v1296_v32 = vsel %vm184_vm5, %v4053_v24, %v4054_v30  ;;  %v4019_v55 = vunpack.i.h.bf16 %v6066_v59  ;;  %v8786_v14 = vunpack.i.l.bf16 %v6024_v54 }
 0x359   :  { %v6382_v3 = vpop.permute.xlu0 %4281  ;;  %v4550_v30 = vpack.i.bf16 %v1476_v27, %v1475_v43  ;;  %v4615_v45 = vpack.i.bf16 %v1297_v36, %v1296_v32  ;;  %v8562_v7 = vunpack.i.h.bf16 %v6080_v35  ;;  %v4068_v59 = vunpack.i.l.bf16 %v6080_v35 }
 0x35a   :  { %v6390_v10 = vpop.permute.xlu1 %4321  ;;  %v1556_v22 = vsel %vm278_vm8, %v3979_v50, %v8786_v14  ;;  %v1401_v58 = vsel %vm219_vm6, %v4019_v55, %v4063_v6  ;;  %v4024_v14 = vunpack.i.h.bf16 %v6074_v34  ;;  %v8812_v34 = vld [vmem:[#allocation47_spill] sm:$0xff] }
 0x35b   :  { %4606 = vrot.lane.b32.xlu0 %v4605_v47, %s5190_s2  ;;  %v8787_v47 = vunpack.i.h.bf16 %v6072_v61  ;;  %v1482_v32 = vsel %vm250_vm7, %v4068_v59, %v8562_v7 }
 0x35c   :  { %4546 = vrot.lane.b32.xlu1 %v4545_v40, %s5190_s2  ;;  %v1555_v40 = vsel %vm278_vm8, %v3978_v17, %v3979_v50  ;;  %v4029_v50 = vunpack.i.h.bf16 %v6082_v42 }
 0x35d   :  { %v6401_v51 = vpop.permute.xlu0 %4286  ;;  %v1402_v19 = vsel %vm219_vm6, %v4063_v6, %v8787_v47  ;;  %v4555_v27 = vpack.i.bf16 %v1556_v22, %v1555_v40  ;;  %v1481_v6 = vsel %vm250_vm7, %v4024_v14, %v4068_v59  ;;  %v8564_v47 = vunpack.i.h.bf16 %v6088_v63 }
 0x35e   :  { %v6409_v33 = vpop.permute.xlu1 %4326  ;;  %v4620_v36 = vpack.i.bf16 %v1402_v19, %v1401_v58  ;;  %v4625_v58 = vpack.i.bf16 %v1482_v32, %v1481_v6  ;;  %v8788_v19 = vunpack.i.l.bf16 %v5992_v5  ;;  %v8789_v6 = vunpack.i.l.bf16 %v5999_v9 }
 0x35f   :  { %4616 = vrot.lane.b32.xlu0 %v4615_v45, %s5190_s2  ;;  %v4073_v45 = vunpack.i.l.bf16 %v6088_v63 }
 0x360   :  { %4551 = vrot.lane.b32.xlu1 %v4550_v30, %s5190_s2  ;;  %v4565_v40 = vpack.i.bf16 %v4053_v24, %v8788_v19  ;;  %v4570_v32 = vpack.i.bf16 %v4019_v55, %v8789_v6  ;;  %v4575_v24 = vpack.i.bf16 %v4024_v14, %v3968_v13  ;;  %v3755_v55 = vunpack.i.h.bf16 %v5372_v49 }
 0x361   :  { %v6415_v43 = vpop.permute.xlu0 %4291  ;;  %v1561_v30 = vsel %vm278_vm8, %v4029_v50, %v4073_v45  ;;  %v1562_v59 = vsel %vm278_vm8, %v4073_v45, %v8564_v47  ;;  %v8567_v13 = vunpack.i.l.bf16 %v6319_v52  ;;  %v3913_v14 = vunpack.i.l.bf16 %v5971_v39 }
 0x362   :  { %v6423_v61 = vpop.permute.xlu1 %4331  ;;  %v3775_v6 = vunpack.i.h.bf16 %v5380_v53  ;;  %v8797_v49 = vunpack.i.h.bf16 %v5971_v39  ;;  %v8800_v39 = vunpack.i.l.bf16 %v6201_v48 }
 0x363   :  { %4621 = vrot.lane.b32.xlu0 %v4620_v36, %s5190_s2 }
 0x364   :  { %4556 = vrot.lane.b32.xlu1 %v4555_v27, %s5190_s2  ;;  %v4630_v27 = vpack.i.bf16 %v1562_v59, %v1561_v30  ;;  %v4580_v30 = vpack.i.bf16 %v4029_v50, %v3978_v17  ;;  %v8792_v59 = vunpack.i.h.bf16 %v6050_v18  ;;  %v8793_v17 = vunpack.i.l.bf16 %v5978_v44 }
 0x365   :  { %v6428_v22 = vpop.permute.xlu0 %4296 }
 0x366   :  { %v6436_v7 = vpop.permute.xlu1 %4336  ;;  %v1139_v50 = vsel %vm124_vm3, %v3755_v55, %v8793_v17  ;;  %v8796_v55 = vunpack.i.h.bf16 %v6319_v52 }
 0x367   :  { %4626 = vrot.lane.b32.xlu0 %v4625_v58, %s5190_s2  ;;  %v4008_v58 = vunpack.i.l.bf16 %v6050_v18  ;;  %v4038_v18 = vunpack.i.l.bf16 %v6040_v11 }
 0x368   :  { %4566 = vrot.lane.b32.xlu1 %v4565_v40, %s5190_s2  ;;  %v2218_v17 = vsel %vm468_vm9, %v8567_v13, %v8796_v55  ;;  %v8569_v13 = vunpack.i.l.bf16 %v6151_v38 }
 0x369   :  { %v6440_v36 = vpop.permute.xlu0 %4301  ;;  %v1145_v40 = vsel %vm124_vm3, %v4008_v58, %v8792_v59 }
 0x36a   :  { %v6444_v42 = vpop.permute.xlu1 %4341  ;;  %v4585_v59 = vpack.i.bf16 %v1145_v40, %v1139_v50  ;;  %v8568_v40 = vunpack.i.h.bf16 %v6137_v2  ;;  %v4098_v50 = vunpack.i.l.bf16 %v6137_v2 }
 0x36b   :  { %4631 = vrot.lane.b32.xlu0 %v4630_v27, %s5190_s2  ;;  %v4013_v27 = vunpack.i.l.bf16 %v6058_v28 }
 0x36c   :  { %4571 = vrot.lane.b32.xlu1 %v4570_v32, %s5190_s2 }
 0x36d   :  { %v6448_v5 = vpop.permute.xlu0 %4306 }
 0x36e   :  { %v6450_v45 = vpop.permute.xlu1 %4346 }
 0x370   :  { %4576 = vrot.lane.b32.xlu1 %v4575_v24, %s5190_s2 }
 0x371   :  { %v6454_v19 = vpop.permute.xlu0 %4311 }
 0x372   :  { %8790 = vst [vmem:[#allocation65_spill] sm:$0xff] %v6454_v19  ;;  %v6456_v9 = vpop.permute.xlu1 %4351 }
 0x373   :  { %8791 = vst [vmem:[#allocation66_spill] sm:$0xff] %v6456_v9 }
 0x374   :  { %4581 = vrot.lane.b32.xlu1 %v4580_v30, %s5190_s2  ;;  %v8795_v30 = vunpack.i.h.bf16 %v6058_v28  ;;  %v8798_v28 = vunpack.i.l.bf16 %v6111_v1 }
 0x375   :  { %v6470_v32 = vpop.permute.xlu0 %4316 }
 0x376   :  { %8794 = vst [vmem:[#allocation67_spill] sm:$0xff] %v6470_v32  ;;  %v4319_v24 = vunpack.i.h.bf16 %v6470_v32  ;;  %v6475_v58 = vpop.permute.xlu1 %4371  ;;  %v1225_v53 = vsel %vm152_vm4, %v4013_v27, %v8795_v30  ;;  %v2199_v32 = vsel %vm468_vm9, %v3913_v14, %v8797_v49  ;;  %v8799_v30 = vunpack.i.l.bf16 %v5985_v46 }
 0x377   :  { %v8801_v14 = vunpack.i.h.bf16 %v6129_v25  ;;  %v8803_v46 = vunpack.i.h.bf16 %v6040_v11 }
 0x378   :  { %v2205_v27 = vsel %vm468_vm9, %v4319_v24, %v8798_v28  ;;  %4586 = vrot.lane.b32.xlu1 %v4585_v59, %s5190_s2  ;;  %v1219_v47 = vsel %vm152_vm4, %v3775_v6, %v8799_v30  ;;  %v8805_v30 = vunpack.i.h.bf16 %v6092_v4  ;;  %v8810_v4 = vunpack.i.l.bf16 %v6165_v62 }
 0x379   :  { %v6499_v44 = vpop.permute.xlu0 %4356  ;;  %v3432_v55 = vpack.c.bf16 %v2205_v27, %v2199_v32  ;;  %v2212_v49 = vsel %vm468_vm9, %v8801_v14, %v8800_v39  ;;  %v4590_v59 = vpack.i.bf16 %v1225_v53, %v1219_v47  ;;  %v1067_v6 = vsel %vm96_vm0, %v4038_v18, %v8803_v46 }
 0x37a   :  { %v4359_v1 = vunpack.i.h.bf16 %v6499_v44  ;;  %v6508_v24 = vpop.permute.xlu1 %4396  ;;  %v3434_v28 = vpack.c.bf16 %v2218_v17, %v2212_v49  ;;  %v8804_v32 = vunpack.i.h.bf16 %v6042_v26  ;;  %v4078_v39 = vunpack.i.l.bf16 %v6097_v60 }
 0x37b   :  { %8802 = vst [vmem:[#allocation68_spill] sm:$0xff] %v6508_v24  ;;  %3433 = vmatpush1.bf16.msra.mxu1 %v3432_v55  ;;  %v1072_v14 = vsel %vm96_vm0, %v4098_v50, %v8568_v40  ;;  %v4109_v47 = vunpack.i.h.bf16 %v6146_v8  ;;  %v8570_v46 = vunpack.i.l.bf16 %v6199_v12 }
 0x37c   :  { %v1066_v27 = vsel %vm96_vm0, %v8804_v32, %v4038_v18  ;;  %v1071_v17 = vsel %vm96_vm0, %v4359_v1, %v4098_v50  ;;  %4591 = vrot.lane.b32.xlu1 %v4590_v59, %s5190_s2  ;;  %3435 = vmatprep.subr.bf16.mxu1 %v3434_v28  ;;  %v1641_v53 = vsel %vm306_vm1, %v8805_v30, %v4078_v39  ;;  %v8806_v50 = vunpack.i.h.bf16 %v6097_v60 }
 0x37d   :  { %v6525_v49 = vpop.permute.xlu0 %4361  ;;  %v4635_v18 = vpack.i.bf16 %v1072_v14, %v1071_v17  ;;  %v1153_v55 = vsel %vm124_vm3, %v4109_v47, %v8569_v13  ;;  %v4595_v40 = vpack.i.bf16 %v1067_v6, %v1066_v27  ;;  %v8572_v59 = vunpack.i.l.bf16 %v6158_v41 }
 0x37e   :  { %v6531_v32 = vpop.permute.xlu1 %4406  ;;  %v1642_v1 = vsel %vm306_vm1, %v4078_v39, %v8806_v50  ;;  %v8807_v28 = vunpack.i.l.bf16 %v6146_v8  ;;  %v4169_v17 = vunpack.i.h.bf16 %v6193_v21  ;;  %v4119_v27 = vunpack.i.h.bf16 %v6153_v0 }
 0x37f   :  { %4636 = vrot.lane.b32.xlu0 %v4635_v18, %s5190_s2  ;;  %v4118_v30 = vunpack.i.l.bf16 %v6153_v0  ;;  %v4129_v50 = vunpack.i.h.bf16 %v6165_v62  ;;  %v4610_v6 = vpack.i.bf16 %v1642_v1, %v1641_v53  ;;  %v4193_v1 = vunpack.i.l.bf16 %v6223_v23 }
 0x380   :  { %v1152_v14 = vsel %vm124_vm3, %v8807_v28, %v4109_v47  ;;  %4596 = vrot.lane.b32.xlu1 %v4595_v40, %s5190_s2  ;;  %v1648_v47 = vsel %vm306_vm1, %v4169_v17, %v8570_v46  ;;  %v1233_v40 = vsel %vm152_vm4, %v4119_v27, %v8572_v59  ;;  %v8817_v60 = vunpack.i.l.bf16 %v6172_v31 }
 0x381   :  { %v6549_v13 = vpop.permute.xlu0 %4366  ;;  %v4640_v39 = vpack.i.bf16 %v1153_v55, %v1152_v14  ;;  %v8579_v55 = vunpack.i.l.bf16 %v6160_v16  ;;  %v8808_v14 = vunpack.i.l.bf16 %v6193_v21  ;;  %v1232_v46 = vsel %vm152_vm4, %v4118_v30, %v4119_v27 }
 0x382   :  { %v6556_v28 = vpop.permute.xlu1 %4411  ;;  %v4369_v0 = vunpack.i.h.bf16 %v6549_v13  ;;  %v4645_v27 = vpack.i.bf16 %v1233_v40, %v1232_v46 }
 0x383   :  { %4641 = vrot.lane.b32.xlu0 %v4640_v39, %s5190_s2  ;;  %v1647_v18 = vsel %vm306_vm1, %v8808_v14, %v4169_v17  ;;  %v1301_v39 = vsel %vm184_vm5, %v8810_v4, %v4129_v50  ;;  %v1302_v48 = vsel %vm184_vm5, %v4129_v50, %v8579_v55  ;;  %v8811_v14 = vld [vmem:[#allocation46_spill] sm:$0xff]  ;;  %v8814_v50 = vld [vmem:[#allocation35_spill] sm:$0xff]  ;;  %v8815_v17 = vunpack.i.h.bf16 %v6223_v23 }
 0x384   :  { %4611 = vrot.lane.b32.xlu1 %v4610_v6, %s5190_s2  ;;  %v4650_v59 = vpack.i.bf16 %v1648_v47, %v1647_v18  ;;  %v1231_v12 = vsel %vm152_vm4, %v4369_v0, %v4118_v30  ;;  %v8813_v18 = vld [vmem:[#allocation38_spill] sm:$0xff]  ;;  %v4655_v53 = vpack.i.bf16 %v1302_v48, %v1301_v39  ;;  %v8821_v55 = vunpack.i.h.bf16 %v8811_v14  ;;  %v8825_v0 = vld [vmem:[#allocation40_spill] sm:$0xff] }
 0x385   :  { %v6571_v24 = vpop.permute.xlu0 %4376  ;;  %v4139_v47 = vunpack.i.h.bf16 %v8813_v18  ;;  %v1237_v46 = vsel %vm152_vm4, %v4193_v1, %v8815_v17  ;;  %v8823_v17 = vld [vmem:[#allocation49_spill] sm:$0xff] }
 0x386   :  { %8809 = vst [vmem:[#allocation69_spill] sm:$0xff] %v6571_v24  ;;  %v6580_v6 = vpop.permute.xlu1 %4416  ;;  %v4705_v4 = vpack.i.bf16 %v1237_v46, %v1231_v12  ;;  %v8822_v24 = vld [vmem:[#allocation48_spill] sm:$0xff]  ;;  %v4223_v48 = vunpack.i.l.bf16 %v8823_v17  ;;  %v4149_v12 = vunpack.i.h.bf16 %v8825_v0 }
 0x387   :  { %4651 = vrot.lane.b32.xlu0 %v4650_v59, %s5190_s2  ;;  %v1408_v30 = vsel %vm219_vm6, %v4139_v47, %v8817_v60  ;;  %v8818_v59 = vld [vmem:[#allocation41_spill] sm:$0xff]  ;;  %v8824_v60 = vunpack.i.l.bf16 %v8813_v18 }
 0x388   :  { %4646 = vrot.lane.b32.xlu1 %v4645_v27, %s5190_s2  ;;  %v8820_v27 = vunpack.i.l.bf16 %v8812_v34 }
 0x389   :  { %v6593_v40 = vpop.permute.xlu0 %4381  ;;  %v1407_v39 = vsel %vm219_vm6, %v8824_v60, %v4139_v47  ;;  %v8830_v47 = vld [vmem:[#allocation43_spill] sm:$0xff]  ;;  %v8834_v60 = vld [vmem:[#allocation42_spill] sm:$0xff] }
 0x38a   :  { %8816 = vst [vmem:[#allocation46_spill] sm:$0xff] %v6593_v40  ;;  %v6599_v9 = vpop.permute.xlu1 %4426  ;;  %v1078_v19 = vsel %vm96_vm0, %v8821_v55, %v8820_v27  ;;  %v8826_v55 = vunpack.i.l.bf16 %v8814_v50  ;;  %v8827_v27 = vunpack.i.h.bf16 %v6137_v2  ;;  %v4660_v31 = vpack.i.bf16 %v1408_v30, %v1407_v39 }
 0x38b   :  { %8819 = vst [vmem:[#allocation47_spill] sm:$0xff] %v6599_v9  ;;  %4656 = vrot.lane.b32.xlu0 %v4655_v53, %s5190_s2  ;;  %v8829_v53 = vunpack.i.l.bf16 %v8818_v59  ;;  %v8832_v2 = vunpack.i.h.bf16 %v8823_v17  ;;  %v4258_v30 = vunpack.i.l.bf16 %v6300_v56  ;;  %v8833_v39 = vunpack.i.l.bf16 %v8825_v0 }
 0x38c   :  { %4706 = vrot.lane.b32.xlu1 %v4705_v4, %s5190_s2  ;;  %v1073_v40 = vsel %vm96_vm0, %v8827_v27, %v8826_v55  ;;  %v8831_v4 = vunpack.i.h.bf16 %v8822_v24 }
 0x38d   :  { %v6621_v1 = vpop.permute.xlu0 %4386  ;;  %v1488_v9 = vsel %vm250_vm7, %v4149_v12, %v8829_v53  ;;  %v4710_v46 = vpack.i.bf16 %v1078_v19, %v1073_v40  ;;  %v1159_v55 = vsel %vm124_vm3, %v4223_v48, %v8832_v2  ;;  %v1487_v53 = vsel %vm250_vm7, %v8833_v39, %v4149_v12 }
 0x38e   :  { %8828 = vst [vmem:[#allocation38_spill] sm:$0xff] %v6621_v1  ;;  %v6627_v16 = vpop.permute.xlu1 %4431  ;;  %v1158_v41 = vsel %vm124_vm3, %v8831_v4, %v4223_v48  ;;  %v4159_v19 = vunpack.i.h.bf16 %v8834_v60  ;;  %v4214_v4 = vunpack.i.h.bf16 %v6271_v20  ;;  %v4665_v48 = vpack.i.bf16 %v1488_v9, %v1487_v53  ;;  %v8840_v53 = vld [vmem:[#allocation52_spill] sm:$0xff]  ;;  %v8842_v20 = vld [vmem:[#allocation54_spill] sm:$0xff] }
 0x38f   :  { %4661 = vrot.lane.b32.xlu0 %v4660_v31, %s5190_s2  ;;  %v8836_v2 = vunpack.i.l.bf16 %v8830_v47  ;;  %v4720_v17 = vpack.i.bf16 %v1159_v55, %v1158_v41  ;;  %v8838_v40 = vunpack.i.h.bf16 %v6300_v56  ;;  %v4233_v41 = vunpack.i.l.bf16 %v8840_v53 }
 0x390   :  { %4711 = vrot.lane.b32.xlu1 %v4710_v46, %s5190_s2  ;;  %v1653_v39 = vsel %vm306_vm1, %v4214_v4, %v4258_v30  ;;  %v4243_v47 = vunpack.i.l.bf16 %v8842_v20 }
 0x391   :  { %v6645_v1 = vpop.permute.xlu0 %4391  ;;  %v1568_v27 = vsel %vm278_vm8, %v4159_v19, %v8836_v2  ;;  %v1654_v46 = vsel %vm306_vm1, %v4258_v30, %v8838_v40  ;;  %v4234_v2 = vunpack.i.h.bf16 %v8840_v53  ;;  %v4093_v53 = vunpack.i.l.bf16 %v6129_v25 }
 0x392   :  { %8835 = vst [vmem:[#allocation35_spill] sm:$0xff] %v6645_v1  ;;  %v6650_v31 = vpop.permute.xlu1 %4436  ;;  %v8839_v1 = vunpack.i.l.bf16 %v8834_v60  ;;  %v4730_v30 = vpack.i.bf16 %v1654_v46, %v1653_v39 }
 0x393   :  { %8837 = vst [vmem:[#allocation41_spill] sm:$0xff] %v6650_v31  ;;  %4666 = vrot.lane.b32.xlu0 %v4665_v48, %s5190_s2  ;;  %v8844_v48 = vunpack.i.l.bf16 %v6295_v29 }
 0x394   :  { %v1567_v9 = vsel %vm278_vm8, %v8839_v1, %v4159_v19  ;;  %4721 = vrot.lane.b32.xlu1 %v4720_v17, %s5190_s2  ;;  %v8845_v17 = vld [vmem:[#allocation51_spill] sm:$0xff] }
 0x395   :  { %v6664_v55 = vpop.permute.xlu0 %4401  ;;  %v4670_v12 = vpack.i.bf16 %v1568_v27, %v1567_v9  ;;  %v1307_v1 = vsel %vm184_vm5, %v4234_v2, %v8844_v48  ;;  %v4199_v19 = vunpack.i.h.bf16 %v8845_v17  ;;  %v1306_v27 = vsel %vm184_vm5, %v4233_v41, %v4234_v2  ;;  %v8849_v17 = vld [vmem:[#allocation56_spill] sm:$0xff] }
 0x396   :  { %8841 = vst [vmem:[#allocation48_spill] sm:$0xff] %v6664_v55  ;;  %v6667_v56 = vpop.permute.xlu1 %4441  ;;  %v8846_v9 = vunpack.i.l.bf16 %v6193_v21  ;;  %v4735_v48 = vpack.i.bf16 %v1307_v1, %v1306_v27  ;;  %v4248_v29 = vunpack.i.l.bf16 %v8849_v17  ;;  %v8850_v21 = vunpack.i.h.bf16 %v6129_v25 }
 0x397   :  { %8843 = vst [vmem:[#allocation40_spill] sm:$0xff] %v6667_v56  ;;  %4671 = vrot.lane.b32.xlu0 %v4670_v12, %s5190_s2  ;;  %v1413_v46 = vsel %vm219_vm6, %v4199_v19, %v4243_v47  ;;  %v8848_v12 = vunpack.i.h.bf16 %v8842_v20  ;;  %v8851_v1 = vunpack.i.l.bf16 %v6165_v62  ;;  %v8854_v25 = vunpack.i.h.bf16 %v8849_v17  ;;  %v8855_v62 = vld [vmem:[#allocation58_spill] sm:$0xff] }
 0x398   :  { %4731 = vrot.lane.b32.xlu1 %v4730_v30, %s5190_s2  ;;  %v4675_v55 = vpack.i.bf16 %v4214_v4, %v8846_v9  ;;  %v2211_v4 = vsel %vm468_vm9, %v4093_v53, %v8850_v21  ;;  %v8852_v9 = vld [vmem:[#allocation53_spill] sm:$0xff]  ;;  %v4253_v21 = vunpack.i.l.bf16 %v8855_v62 }
 0x399   :  { %v6680_v39 = vpop.permute.xlu0 %4421  ;;  %v1414_v56 = vsel %vm219_vm6, %v4243_v47, %v8848_v12  ;;  %v4680_v27 = vpack.i.bf16 %v4233_v41, %v8851_v1  ;;  %v4204_v20 = vunpack.i.h.bf16 %v8852_v9  ;;  %v8853_v47 = vunpack.i.l.bf16 %v6319_v52 }
 0x39a   :  { %v6683_v40 = vpop.permute.xlu1 %4446  ;;  %v1494_v53 = vsel %vm250_vm7, %v4248_v29, %v8854_v25  ;;  %v8604_v41 = vunpack.i.h.bf16 %v8855_v62  ;;  %v8856_v52 = vunpack.i.l.bf16 %v8813_v18  ;;  %v8858_v18 = vld [vmem:[#allocation20_spill] sm:$0xff]  ;;  %v8606_v9 = vunpack.i.l.bf16 %v6440_v36 }
 0x39b   :  { %8847 = vst [vmem:[#allocation42_spill] sm:$0xff] %v6683_v40  ;;  %v4449_v2 = vunpack.i.h.bf16 %v6683_v40  ;;  %4676 = vrot.lane.b32.xlu0 %v4675_v55, %s5190_s2  ;;  %v4740_v55 = vpack.i.bf16 %v1414_v56, %v1413_v46  ;;  %v8857_v56 = vld [vmem:[#allocation55_spill] sm:$0xff] }
 0x39c   :  { %4736 = vrot.lane.b32.xlu1 %v4735_v48, %s5190_s2  ;;  %v1493_v48 = vsel %vm250_vm7, %v4204_v20, %v4248_v29  ;;  %v4209_v46 = vunpack.i.h.bf16 %v8857_v56 }
 0x39d   :  { %v2217_v12 = vsel %vm468_vm9, %v4449_v2, %v8853_v47  ;;  %v6702_v30 = vpop.permute.xlu0 %4451  ;;  %v4685_v2 = vpack.i.bf16 %v4199_v19, %v8856_v52  ;;  %v4745_v47 = vpack.i.bf16 %v1494_v53, %v1493_v48  ;;  %v8859_v19 = vunpack.i.l.bf16 %v8825_v0 }
 0x39e   :  { %v6704_v40 = vpop.permute.xlu1 %1057  ;;  %v3436_v31 = vpack.c.bf16 %v2217_v12, %v2211_v4  ;;  %v1573_v29 = vsel %vm278_vm8, %v4209_v46, %v4253_v21  ;;  %v1574_v12 = vsel %vm278_vm8, %v4253_v21, %v8604_v41  ;;  %v4364_v48 = vunpack.i.h.bf16 %v6525_v49 }
 0x39f   :  { %4681 = vrot.lane.b32.xlu0 %v4680_v27, %s5190_s2  ;;  %v8605_v27 = vunpack.i.l.bf16 %v6415_v43  ;;  %v4750_v52 = vpack.i.bf16 %v1574_v12, %v1573_v29  ;;  %v4183_v29 = vunpack.i.l.bf16 %v8811_v14  ;;  %v8861_v12 = vunpack.i.l.bf16 %v8834_v60 }
 0x3a0   :  { %4741 = vrot.lane.b32.xlu1 %v4740_v55, %s5190_s2  ;;  %3437 = vmatpush1.bf16.msra.mxu1 %v3436_v31  ;;  %v3954_v31 = vunpack.i.h.bf16 %v8858_v18  ;;  %v4690_v55 = vpack.i.bf16 %v4204_v20, %v8859_v19  ;;  %v8860_v20 = vunpack.i.l.bf16 %v8858_v18  ;;  %v3964_v19 = vunpack.i.h.bf16 %v6008_v37 }
 0x3a1   :  { %v6717_v4 = vpop.permute.xlu0 %4456  ;;  %v4695_v41 = vpack.i.bf16 %v4209_v46, %v8861_v12  ;;  %v8864_v60 = vunpack.i.h.bf16 %v8822_v24 }
 0x3a2   :  { %v6719_v1 = vpop.permute.xlu1 %1137  ;;  %v1294_v21 = vsel %vm184_vm5, %v3954_v31, %v8605_v27  ;;  %v1293_v0 = vsel %vm184_vm5, %v8860_v20, %v3954_v31  ;;  %v8863_v31 = vunpack.i.l.bf16 %v6428_v22 }
 0x3a3   :  { %4686 = vrot.lane.b32.xlu0 %v4685_v2, %s5190_s2  ;;  %v8609_v2 = vunpack.i.h.bf16 %v8812_v34  ;;  %v4770_v18 = vpack.i.bf16 %v1294_v21, %v1293_v0  ;;  %v3974_v21 = vunpack.i.h.bf16 %v6016_v15  ;;  %v8866_v0 = vunpack.i.h.bf16 %v8811_v14 }
 0x3a4   :  { %4746 = vrot.lane.b32.xlu1 %v4745_v47, %s5190_s2  ;;  %v4188_v47 = vunpack.i.l.bf16 %v8822_v24  ;;  %v1398_v20 = vsel %vm219_vm6, %v3964_v19, %v8863_v31  ;;  %v8867_v24 = vunpack.i.l.bf16 %v8812_v34 }
 0x3a5   :  { %v6731_v25 = vpop.permute.xlu0 %4461  ;;  %v1077_v12 = vsel %vm96_vm0, %v4183_v29, %v8866_v0  ;;  %v1478_v14 = vsel %vm250_vm7, %v3974_v21, %v8606_v9  ;;  %v8607_v29 = vunpack.i.l.bf16 %v6448_v5 }
 0x3a6   :  { %v6734_v53 = vpop.permute.xlu1 %1217  ;;  %v1157_v46 = vsel %vm124_vm3, %v4188_v47, %v8864_v60  ;;  %v8868_v47 = vld [vmem:[#allocation50_spill] sm:$0xff] }
 0x3a7   :  { %4691 = vrot.lane.b32.xlu0 %v4690_v55, %s5190_s2  ;;  %v8862_v55 = vunpack.i.l.bf16 %v6146_v8  ;;  %v8865_v8 = vunpack.i.l.bf16 %v6008_v37  ;;  %v4228_v37 = vunpack.i.l.bf16 %v8868_v47 }
 0x3a8   :  { %4751 = vrot.lane.b32.xlu1 %v4750_v52, %s5190_s2 }
 0x3a9   :  { %v6750_v27 = vpop.permute.xlu0 %4466  ;;  %v1151_v56 = vsel %vm124_vm3, %v4364_v48, %v8862_v55  ;;  %v1397_v48 = vsel %vm219_vm6, %v8865_v8, %v3964_v19  ;;  %v3984_v8 = vunpack.i.h.bf16 %v6024_v54 }
 0x3aa   :  { %v6756_v52 = vpop.permute.xlu1 %4486  ;;  %v4700_v31 = vpack.i.bf16 %v1157_v46, %v1151_v56  ;;  %v4775_v60 = vpack.i.bf16 %v1398_v20, %v1397_v48  ;;  %v8869_v56 = vunpack.i.l.bf16 %v6016_v15  ;;  %v8870_v20 = vunpack.i.h.bf16 %v6223_v23 }
 0x3ab   :  { %4696 = vrot.lane.b32.xlu0 %v4695_v41, %s5190_s2  ;;  %v1079_v41 = vsel %vm96_vm0, %v8867_v24, %v8609_v2  ;;  %v4279_v15 = vunpack.i.h.bf16 %v6359_v57  ;;  %v4003_v23 = vunpack.i.l.bf16 %v6042_v26 }
 0x3ac   :  { %4771 = vrot.lane.b32.xlu1 %v4770_v18, %s5190_s2  ;;  %v8608_v18 = vunpack.i.h.bf16 %v8868_v47  ;;  %v1477_v46 = vsel %vm250_vm7, %v8869_v56, %v3974_v21  ;;  %v4715_v24 = vpack.i.bf16 %v1077_v12, %v1079_v41  ;;  %v1238_v48 = vsel %vm152_vm4, %v8870_v20, %v4228_v37 }
 0x3ad   :  { %v6774_v55 = vpop.permute.xlu0 %4471  ;;  %v4278_v21 = vunpack.i.l.bf16 %v6359_v57  ;;  %v1558_v56 = vsel %vm278_vm8, %v3984_v8, %v8607_v29  ;;  %v8871_v12 = vunpack.i.l.bf16 %v6024_v54  ;;  %v8874_v54 = vld [vmem:[#allocation18_spill] sm:$0xff] }
 0x3ae   :  { %v6783_v19 = vpop.permute.xlu1 %4491  ;;  %v1239_v9 = vsel %vm152_vm4, %v4228_v37, %v8608_v18  ;;  %v8872_v18 = vld [vmem:[#allocation17_spill] sm:$0xff] }
 0x3af   :  { %4701 = vrot.lane.b32.xlu0 %v4700_v31, %s5190_s2  ;;  %v1557_v41 = vsel %vm278_vm8, %v8871_v12, %v3984_v8  ;;  %v1064_v29 = vsel %vm96_vm0, %v4278_v21, %v4279_v15  ;;  %v3934_v8 = vunpack.i.h.bf16 %v8874_v54  ;;  %v8875_v12 = vunpack.i.h.bf16 %v6042_v26 }
 0x3b0   :  { %4776 = vrot.lane.b32.xlu1 %v4775_v60, %s5190_s2  ;;  %v4780_v60 = vpack.i.bf16 %v1478_v14, %v1477_v46  ;;  %v4725_v14 = vpack.i.bf16 %v1239_v9, %v1238_v48  ;;  %v4283_v46 = vunpack.i.l.bf16 %v6382_v3  ;;  %v4785_v20 = vpack.i.bf16 %v1558_v56, %v1557_v41 }
 0x3b1   :  { %v6795_v0 = vpop.permute.xlu0 %4476  ;;  %v1065_v9 = vsel %vm96_vm0, %v4003_v23, %v8875_v12  ;;  %v8878_v26 = vunpack.i.l.bf16 %v8874_v54  ;;  %v4323_v12 = vunpack.i.l.bf16 %v6390_v10 }
 0x3b2   :  { %v6803_v31 = vpop.permute.xlu1 %4496  ;;  %v4755_v48 = vpack.i.bf16 %v1065_v9, %v4279_v15  ;;  %v1143_v41 = vsel %vm124_vm3, %v3934_v8, %v4283_v46  ;;  %v8879_v15 = vld [vmem:[#allocation19_spill] sm:$0xff]  ;;  %v4324_v9 = vunpack.i.h.bf16 %v6390_v10  ;;  %v8881_v10 = vunpack.i.h.bf16 %v6040_v11 }
 0x3b3   :  { %4716 = vrot.lane.b32.xlu0 %v4715_v24, %s5190_s2  ;;  %v8873_v24 = vunpack.i.h.bf16 %v8872_v18  ;;  %v4288_v18 = vunpack.i.l.bf16 %v6401_v51  ;;  %v1142_v23 = vsel %vm124_vm3, %v8878_v26, %v3934_v8  ;;  %v4294_v8 = vunpack.i.h.bf16 %v6415_v43 }
 0x3b4   :  { %4781 = vrot.lane.b32.xlu1 %v4780_v60, %s5190_s2  ;;  %v4284_v60 = vunpack.i.h.bf16 %v6382_v3  ;;  %v1068_v26 = vsel %vm96_vm0, %v8881_v10, %v4323_v12  ;;  %v8886_v10 = vld [vmem:[#allocation23_spill] sm:$0xff] }
 0x3b5   :  { %v6816_v37 = vpop.permute.xlu0 %4481  ;;  %v1063_v2 = vsel %vm96_vm0, %v8873_v24, %v4278_v21  ;;  %v4289_v24 = vunpack.i.h.bf16 %v6401_v51 }
 0x3b6   :  { %v6819_v57 = vpop.permute.xlu1 %4501  ;;  %v4790_v3 = vpack.i.bf16 %v1064_v29, %v1063_v2  ;;  %v4760_v2 = vpack.i.bf16 %v1143_v41, %v1142_v23  ;;  %v8612_v41 = vunpack.i.h.bf16 %v6409_v33 }
 0x3b7   :  { %4726 = vrot.lane.b32.xlu0 %v4725_v14, %s5190_s2  ;;  %v1144_v14 = vsel %vm124_vm3, %v4283_v46, %v4284_v60  ;;  %v1224_v54 = vsel %vm152_vm4, %v4288_v18, %v4289_v24 }
 0x3b8   :  { %4786 = vrot.lane.b32.xlu1 %v4785_v20, %s5190_s2  ;;  %v3944_v20 = vunpack.i.h.bf16 %v8879_v15  ;;  %v4795_v29 = vpack.i.bf16 %v4284_v60, %v1144_v14  ;;  %v1069_v60 = vsel %vm96_vm0, %v4323_v12, %v4324_v9  ;;  %v4800_v23 = vpack.i.bf16 %v4289_v24, %v1224_v54 }
 0x3b9   :  { %v6832_v56 = vpop.permute.xlu0 %4511 }
 0x3ba   :  { %8876 = vst [vmem:[#allocation52_spill] sm:$0xff] %v6832_v56  ;;  %v6836_v21 = vpop.permute.xlu1 %4506  ;;  %v1223_v51 = vsel %vm152_vm4, %v3944_v20, %v4288_v18  ;;  %v4328_v18 = vunpack.i.l.bf16 %v6409_v33 }
 0x3bb   :  { %8877 = vst [vmem:[#allocation56_spill] sm:$0xff] %v6836_v21  ;;  %4756 = vrot.lane.b32.xlu0 %v4755_v48, %s5190_s2  ;;  %v8880_v48 = vunpack.i.l.bf16 %v8879_v15  ;;  %v8883_v15 = vunpack.i.l.bf16 %v6415_v43  ;;  %v4334_v43 = vunpack.i.h.bf16 %v6423_v61 }
 0x3bc   :  { %4791 = vrot.lane.b32.xlu1 %v4790_v3, %s5190_s2  ;;  %v1149_v54 = vsel %vm124_vm3, %v4328_v18, %v8612_v41 }
 0x3bd   :  { %v6848_v56 = vpop.permute.xlu0 %4521  ;;  %v1222_v3 = vsel %vm152_vm4, %v8880_v48, %v3944_v20  ;;  %v1295_v11 = vsel %vm184_vm5, %v8883_v15, %v4294_v8  ;;  %v4810_v48 = vpack.i.bf16 %v1069_v60, %v1068_v26 }
 0x3be   :  { %v6851_v46 = vpop.permute.xlu1 %4516  ;;  %v4765_v14 = vpack.i.bf16 %v1223_v51, %v1222_v3  ;;  %v8887_v51 = vunpack.i.h.bf16 %v8886_v10  ;;  %v4333_v3 = vunpack.i.l.bf16 %v6423_v61  ;;  %v4805_v15 = vpack.i.bf16 %v4294_v8, %v1295_v11 }
 0x3bf   :  { %4761 = vrot.lane.b32.xlu0 %v4760_v2, %s5190_s2  ;;  %v4338_v2 = vunpack.i.l.bf16 %v6436_v7 }
 0x3c0   :  { %4796 = vrot.lane.b32.xlu1 %v4795_v29, %s5190_s2  ;;  %v8885_v29 = vld [vmem:[#allocation25_spill] sm:$0xff]  ;;  %v1148_v24 = vsel %vm124_vm3, %v8887_v51, %v4328_v18  ;;  %v8891_v51 = vld [vmem:[#allocation24_spill] sm:$0xff]  ;;  %v1229_v41 = vsel %vm152_vm4, %v4333_v3, %v4334_v43 }
 0x3c1   :  { %v6872_v20 = vpop.permute.xlu0 %4536  ;;  %v4059_v12 = vunpack.i.h.bf16 %v8885_v29  ;;  %v8890_v10 = vunpack.i.l.bf16 %v8885_v29  ;;  %v8892_v8 = vunpack.i.h.bf16 %v8891_v51  ;;  %v4343_v51 = vunpack.i.l.bf16 %v6444_v42 }
 0x3c2   :  { %v6867_v21 = vpop.permute.xlu1 %4526  ;;  %8884 = vst [vmem:[#allocation20_spill] sm:$0xff] %v6872_v20 }
 0x3c3   :  { %8882 = vst [vmem:[#allocation58_spill] sm:$0xff] %v6867_v21  ;;  %4766 = vrot.lane.b32.xlu0 %v4765_v14, %s5190_s2  ;;  %v1298_v18 = vsel %vm184_vm5, %v8890_v10, %v4059_v12  ;;  %v1228_v11 = vsel %vm152_vm4, %v8892_v8, %v4333_v3  ;;  %v8893_v21 = vld [vmem:[#allocation27_spill] sm:$0xff]  ;;  %v8616_v10 = vunpack.i.h.bf16 %v6444_v42  ;;  %v4358_v3 = vunpack.i.l.bf16 %v6499_v44 }
 0x3c4   :  { %4801 = vrot.lane.b32.xlu1 %v4800_v23, %s5190_s2  ;;  %v8888_v23 = vunpack.i.l.bf16 %v6475_v58 }
 0x3c5   :  { %v6903_v14 = vpop.permute.xlu0 %4561  ;;  %v1070_v44 = vsel %vm96_vm0, %v4324_v9, %v4358_v3 }
 0x3c6   :  { %v1299_v26 = vsel %vm184_vm5, %v4059_v12, %v8888_v23  ;;  %v6890_v60 = vpop.permute.xlu1 %4531  ;;  %v4815_v23 = vpack.i.bf16 %v1149_v54, %v1148_v24  ;;  %v8895_v12 = vunpack.i.h.bf16 %v6436_v7  ;;  %v4820_v24 = vpack.i.bf16 %v1229_v41, %v1228_v11 }
 0x3c7   :  { %8889 = vst [vmem:[#allocation50_spill] sm:$0xff] %v6890_v60  ;;  %4811 = vrot.lane.b32.xlu0 %v4810_v48, %s5190_s2  ;;  %v4825_v60 = vpack.i.bf16 %v1299_v26, %v1298_v18  ;;  %v8894_v48 = vunpack.i.h.bf16 %v8893_v21  ;;  %v8897_v54 = vunpack.i.h.bf16 %v6080_v35  ;;  %v8615_v18 = vunpack.i.h.bf16 %v6450_v45 }
 0x3c8   :  { %4806 = vrot.lane.b32.xlu1 %v4805_v15, %s5190_s2  ;;  %v1404_v15 = vsel %vm219_vm6, %v4338_v2, %v8895_v12  ;;  %v4104_v35 = vunpack.i.h.bf16 %v8814_v50  ;;  %v4845_v9 = vpack.i.bf16 %v4358_v3, %v1070_v44  ;;  %v4114_v3 = vunpack.i.h.bf16 %v6151_v38 }
 0x3c9   :  { %v1403_v29 = vsel %vm219_vm6, %v8894_v48, %v4338_v2  ;;  %v1483_v26 = vsel %vm250_vm7, %v8897_v54, %v4343_v51  ;;  %v1484_v2 = vsel %vm250_vm7, %v4343_v51, %v8616_v10  ;;  %v4348_v48 = vunpack.i.l.bf16 %v6450_v45  ;;  %v6930_v41 = vpop.permute.xlu0 %4601 }
 0x3ca   :  { %v6913_v8 = vpop.permute.xlu1 %4541  ;;  %v4830_v21 = vpack.i.bf16 %v1404_v15, %v1403_v29  ;;  %v4835_v11 = vpack.i.bf16 %v1484_v2, %v1483_v26  ;;  %v4363_v51 = vunpack.i.l.bf16 %v6525_v49 }
 0x3cb   :  { %8896 = vst [vmem:[#allocation17_spill] sm:$0xff] %v6913_v8  ;;  %4826 = vrot.lane.b32.xlu0 %v4825_v60, %s5190_s2  ;;  %v8619_v60 = vunpack.i.l.bf16 %v6531_v32  ;;  %v1564_v15 = vsel %vm278_vm8, %v4348_v48, %v8615_v18 }
 0x3cc   :  { %4816 = vrot.lane.b32.xlu1 %v4815_v23, %s5190_s2  ;;  %v8899_v23 = vunpack.i.h.bf16 %v6088_v63  ;;  %v8901_v63 = vunpack.i.l.bf16 %v8814_v50 }
 0x3cd   :  { %v6954_v2 = vpop.permute.xlu0 %4606 }
 0x3ce   :  { %v6926_v12 = vpop.permute.xlu1 %4546  ;;  %v1563_v29 = vsel %vm278_vm8, %v8899_v23, %v4348_v48  ;;  %v1074_v26 = vsel %vm96_vm0, %v8901_v63, %v4104_v35  ;;  %v8902_v48 = vunpack.i.h.bf16 %v6409_v33  ;;  %v4368_v23 = vunpack.i.l.bf16 %v6549_v13 }
 0x3cf   :  { %8898 = vst [vmem:[#allocation18_spill] sm:$0xff] %v6926_v12  ;;  %4831 = vrot.lane.b32.xlu0 %v4830_v21, %s5190_s2  ;;  %v8618_v21 = vunpack.i.l.bf16 %v6556_v28  ;;  %v4840_v49 = vpack.i.bf16 %v1564_v15, %v1563_v29  ;;  %v8904_v29 = vunpack.i.l.bf16 %v6151_v38  ;;  %v8905_v15 = vld [vmem:[#allocation36_spill] sm:$0xff]  ;;  %v4374_v13 = vunpack.i.h.bf16 %v6475_v58 }
 0x3d0   :  { %4821 = vrot.lane.b32.xlu1 %v4820_v24, %s5190_s2  ;;  %v1075_v24 = vsel %vm96_vm0, %v4104_v35, %v8619_v60  ;;  %v1150_v44 = vsel %vm124_vm3, %v8902_v48, %v4363_v51  ;;  %v8617_v35 = vunpack.i.l.bf16 %v6580_v6  ;;  %v8909_v61 = vunpack.i.l.bf16 %v8905_v15  ;;  %v8913_v60 = vld [vmem:[#allocation39_spill] sm:$0xff] }
 0x3d1   :  { %v1155_v50 = vsel %vm124_vm3, %v4114_v3, %v8618_v21  ;;  %v1154_v33 = vsel %vm124_vm3, %v8904_v29, %v4114_v3  ;;  %v4850_v63 = vpack.i.bf16 %v4363_v51, %v1150_v44  ;;  %v8908_v3 = vld [vmem:[#allocation37_spill] sm:$0xff]  ;;  %v8910_v51 = vunpack.i.l.bf16 %v6475_v58 }
 0x3d2   :  { %v6942_v54 = vpop.permute.xlu1 %4551  ;;  %v4134_v29 = vunpack.i.h.bf16 %v8908_v3  ;;  %v4453_v21 = vunpack.i.l.bf16 %v6702_v30  ;;  %v8914_v58 = vunpack.i.l.bf16 %v8908_v3 }
 0x3d3   :  { %8900 = vst [vmem:[#allocation19_spill] sm:$0xff] %v6942_v54  ;;  %4836 = vrot.lane.b32.xlu0 %v4835_v11, %s5190_s2  ;;  %v4865_v11 = vpack.i.bf16 %v1075_v24, %v1074_v26  ;;  %v1230_v24 = vsel %vm152_vm4, %v4334_v43, %v4368_v23  ;;  %v8620_v26 = vunpack.i.l.bf16 %v6680_v39  ;;  %v1300_v44 = vsel %vm184_vm5, %v8910_v51, %v4374_v13 }
 0x3d4   :  { %4846 = vrot.lane.b32.xlu1 %v4845_v9, %s5190_s2  ;;  %v4124_v9 = vunpack.i.h.bf16 %v8905_v15  ;;  %v8940_v54 = vunpack.i.l.bf16 %v6428_v22 }
 0x3d6   :  { %v6960_v18 = vpop.permute.xlu1 %4556  ;;  %v1235_v38 = vsel %vm152_vm4, %v4124_v9, %v8617_v35  ;;  %v1234_v43 = vsel %vm152_vm4, %v8909_v61, %v4124_v9  ;;  %v1304_v35 = vsel %vm184_vm5, %v4134_v29, %v8620_v26  ;;  %v4144_v9 = vunpack.i.h.bf16 %v8913_v60 }
 0x3d7   :  { %8903 = vst [vmem:[#allocation25_spill] sm:$0xff] %v6960_v18  ;;  %4841 = vrot.lane.b32.xlu0 %v4840_v49, %s5190_s2  ;;  %v4870_v49 = vpack.i.bf16 %v1155_v50, %v1154_v33  ;;  %v4855_v50 = vpack.i.bf16 %v4368_v23, %v1230_v24  ;;  %v8911_v33 = vld [vmem:[#allocation47_spill] sm:$0xff]  ;;  %v4875_v15 = vpack.i.bf16 %v1235_v38, %v1234_v43  ;;  %v8916_v38 = vunpack.i.h.bf16 %v8812_v34 }
 0x3d8   :  { %4866 = vrot.lane.b32.xlu1 %v4865_v11, %s5190_s2  ;;  %v6982_v11 = vpop.permute.xlu0 %4616  ;;  %v8621_v10 = vunpack.i.l.bf16 %v8911_v33  ;;  %v1303_v23 = vsel %vm184_vm5, %v8914_v58, %v4134_v29  ;;  %v4860_v24 = vpack.i.bf16 %v4374_v13, %v1300_v44  ;;  %v8623_v29 = vunpack.i.h.bf16 %v6717_v4 }
 0x3d9   :  { %8907 = vst [vmem:[#allocation24_spill] sm:$0xff] %v6982_v11  ;;  %v4880_v26 = vpack.i.bf16 %v1304_v35, %v1303_v23  ;;  %v1080_v43 = vsel %vm96_vm0, %v8916_v38, %v4453_v21  ;;  %v8918_v35 = vunpack.i.l.bf16 %v8913_v60  ;;  %v8919_v23 = vld [vmem:[#allocation49_spill] sm:$0xff]  ;;  %v4463_v60 = vunpack.i.l.bf16 %v6731_v25 }
 0x3da   :  { %v6977_v48 = vpop.permute.xlu1 %4566  ;;  %v1410_v61 = vsel %vm219_vm6, %v4144_v9, %v8621_v10  ;;  %v8920_v38 = vunpack.i.h.bf16 %v8919_v23  ;;  %v4299_v18 = vunpack.i.h.bf16 %v6428_v22 }
 0x3db   :  { %8906 = vst [vmem:[#allocation23_spill] sm:$0xff] %v6977_v48  ;;  %4851 = vrot.lane.b32.xlu0 %v4850_v63, %s5190_s2  ;;  %v8622_v63 = vunpack.i.h.bf16 %v6702_v30  ;;  %v1409_v34 = vsel %vm219_vm6, %v8918_v35, %v4144_v9 }
 0x3dc   :  { %4871 = vrot.lane.b32.xlu1 %v4870_v49, %s5190_s2  ;;  %v7010_v51 = vpop.permute.xlu0 %4621  ;;  %v4885_v58 = vpack.i.bf16 %v1410_v61, %v1409_v34  ;;  %v8923_v61 = vld [vmem:[#allocation41_spill] sm:$0xff]  ;;  %v8926_v34 = vld [vmem:[#allocation43_spill] sm:$0xff] }
 0x3dd   :  { %8915 = vst [vmem:[#allocation36_spill] sm:$0xff] %v7010_v51  ;;  %v1081_v3 = vsel %vm96_vm0, %v4453_v21, %v8622_v63  ;;  %v4164_v23 = vunpack.i.h.bf16 %v8926_v34  ;;  %v8979_v51 = vld [vmem:[#allocation21_spill] sm:$0xff] }
 0x3de   :  { %v6999_v49 = vpop.permute.xlu1 %4571  ;;  %v4925_v21 = vpack.i.bf16 %v1081_v3, %v1080_v43  ;;  %v8928_v43 = vunpack.i.h.bf16 %v6731_v25 }
 0x3df   :  { %8912 = vst [vmem:[#allocation27_spill] sm:$0xff] %v6999_v49  ;;  %4856 = vrot.lane.b32.xlu0 %v4855_v50, %s5190_s2  ;;  %v4458_v50 = vunpack.i.l.bf16 %v6717_v4 }
 0x3e0   :  { %4876 = vrot.lane.b32.xlu1 %v4875_v15, %s5190_s2  ;;  %v4154_v15 = vunpack.i.h.bf16 %v8818_v59  ;;  %v7043_v3 = vpop.permute.xlu0 %4626 }
 0x3e1   :  { %v1160_v10 = vsel %vm124_vm3, %v8920_v38, %v4458_v50  ;;  %v1161_v63 = vsel %vm124_vm3, %v4458_v50, %v8623_v29  ;;  %8924 = vst [vmem:[#allocation39_spill] sm:$0xff] %v7043_v3  ;;  %v8925_v50 = vunpack.i.l.bf16 %v8818_v59  ;;  %v7051_v29 = vld [vmem:[#allocation6 + $0x8] sm:$0xff] }
 0x3e2   :  { %v7020_v13 = vpop.permute.xlu1 %4576  ;;  %v4930_v38 = vpack.i.bf16 %v1161_v63, %v1160_v10  ;;  %2708 = vmatprep.mubr.f32.mxu1 %v7051_v29  ;;  %v4409_v10 = vunpack.i.h.bf16 %v6531_v32  ;;  %v8930_v63 = vunpack.i.l.bf16 %v8923_v61 }
 0x3e3   :  { %8917 = vst [vmem:[#allocation37_spill] sm:$0xff] %v7020_v13  ;;  %4861 = vrot.lane.b32.xlu0 %v4860_v24, %s5190_s2  ;;  %v1489_v35 = vsel %vm250_vm7, %v8925_v50, %v4154_v15  ;;  %v8927_v24 = vunpack.i.h.bf16 %v8868_v47  ;;  %v8933_v13 = vunpack.i.l.bf16 %v6756_v52 }
 0x3e4   :  { %4881 = vrot.lane.b32.xlu1 %v4880_v26, %s5190_s2  ;;  %v8922_v26 = vunpack.i.l.bf16 %v6627_v16  ;;  %v1570_v47 = vsel %vm278_vm8, %v4164_v23, %v8930_v63 }
 0x3e6   :  { %v7037_v44 = vpop.permute.xlu1 %4581  ;;  %v1490_v9 = vsel %vm250_vm7, %v4154_v15, %v8922_v26  ;;  %v1240_v26 = vsel %vm152_vm4, %v8927_v24, %v4463_v60  ;;  %v8929_v15 = vld [vmem:[#allocation59_spill] sm:$0xff]  ;;  %v8931_v24 = vunpack.i.l.bf16 %v8926_v34 }
 0x3e7   :  { %8921 = vst [vmem:[#allocation47_spill] sm:$0xff] %v7037_v44  ;;  %4926 = vrot.lane.b32.xlu0 %v4925_v21, %s5190_s2  ;;  %v1241_v44 = vsel %vm152_vm4, %v4463_v60, %v8928_v43  ;;  %v4890_v59 = vpack.i.bf16 %v1490_v9, %v1489_v35  ;;  %v4239_v50 = vunpack.i.h.bf16 %v8929_v15  ;;  %v4468_v43 = vunpack.i.l.bf16 %v6750_v27  ;;  %v7075_v35 = vpop.permute.xlu0 %4631 }
 0x3e8   :  { %4886 = vrot.lane.b32.xlu1 %v4885_v58, %s5190_s2  ;;  %v1569_v60 = vsel %vm278_vm8, %v8931_v24, %v4164_v23  ;;  %8932 = vst [vmem:[#allocation49_spill] sm:$0xff] %v7075_v35  ;;  %v4935_v21 = vpack.i.bf16 %v1241_v44, %v1240_v26  ;;  %v8934_v34 = vunpack.i.l.bf16 %v8929_v15  ;;  %v8935_v24 = vunpack.i.l.bf16 %v6531_v32  ;;  %v8936_v15 = vld [vmem:[#allocation26_spill] sm:$0xff] }
 0x3e9   :  { %v1309_v63 = vsel %vm184_vm5, %v4239_v50, %v8933_v13  ;;  %v4414_v35 = vunpack.i.h.bf16 %v6556_v28  ;;  %v4473_v26 = vunpack.i.l.bf16 %v6774_v55  ;;  %v1399_v13 = vsel %vm219_vm6, %v8940_v54, %v4299_v18 }
 0x3ea   :  { %v7060_v58 = vpop.permute.xlu1 %4586  ;;  %v1308_v23 = vsel %vm184_vm5, %v8934_v34, %v4239_v50  ;;  %v1076_v9 = vsel %vm96_vm0, %v8935_v24, %v4409_v10  ;;  %v4018_v50 = vunpack.i.l.bf16 %v8936_v15  ;;  %v8939_v24 = vunpack.i.h.bf16 %v6750_v27 }
 0x3eb   :  { %4931 = vrot.lane.b32.xlu0 %v4930_v38, %s5190_s2  ;;  %v4940_v44 = vpack.i.bf16 %v1309_v63, %v1308_v23  ;;  %v8941_v15 = vunpack.i.l.bf16 %v6556_v28  ;;  %v8942_v63 = vunpack.i.h.bf16 %v8849_v17  ;;  %v8943_v54 = vunpack.i.h.bf16 %v6774_v55 }
 0x3ec   :  { %4891 = vrot.lane.b32.xlu1 %v4890_v59, %s5190_s2  ;;  %v4895_v59 = vpack.i.bf16 %v1570_v47, %v1569_v60  ;;  %v8937_v60 = vld [vmem:[#allocation54_spill] sm:$0xff]  ;;  %v4900_v47 = vpack.i.bf16 %v4409_v10, %v1076_v9  ;;  %v8944_v28 = vunpack.i.l.bf16 %v6848_v56  ;;  %v8945_v9 = vunpack.i.h.bf16 %v6851_v46 }
 0x3ed   :  { %v8938_v32 = vunpack.i.h.bf16 %v8937_v60  ;;  %v1156_v60 = vsel %vm124_vm3, %v8941_v15, %v4414_v35  ;;  %v1495_v22 = vsel %vm250_vm7, %v8942_v63, %v4473_v26  ;;  %v1496_v10 = vsel %vm250_vm7, %v4473_v26, %v8943_v54 }
 0x3ee   :  { %v7081_v38 = vpop.permute.xlu1 %4591  ;;  %v2224_v23 = vsel %vm468_vm9, %v8945_v9, %v8944_v28  ;;  %v4563_v17 = vunpack.i.l.bf16 %v6903_v14  ;;  %v4419_v54 = vunpack.i.h.bf16 %v6580_v6  ;;  %v4564_v28 = vunpack.i.h.bf16 %v6903_v14 }
 0x3ef   :  { %4936 = vrot.lane.b32.xlu0 %v4935_v21, %s5190_s2  ;;  %v1415_v34 = vsel %vm219_vm6, %v8938_v32, %v4468_v43  ;;  %v1416_v21 = vsel %vm219_vm6, %v4468_v43, %v8939_v24  ;;  %v4910_v12 = vpack.i.bf16 %v4414_v35, %v1156_v60  ;;  %v8949_v35 = vunpack.i.h.bf16 %v8855_v62 }
 0x3f0   :  { %4896 = vrot.lane.b32.xlu1 %v4895_v59, %s5190_s2  ;;  %v1400_v59 = vsel %vm219_vm6, %v4299_v18, %v4018_v50  ;;  %v4945_v18 = vpack.i.bf16 %v1416_v21, %v1415_v34  ;;  %v4478_v34 = vunpack.i.l.bf16 %v6795_v0 }
 0x3f1   :  { %v7103_v3 = vpop.permute.xlu0 %4636  ;;  %v4905_v15 = vpack.i.bf16 %v1400_v59, %v1399_v13 }
 0x3f2   :  { %v7108_v49 = vpop.permute.xlu1 %4596  ;;  %v1575_v60 = vsel %vm278_vm8, %v8949_v35, %v4478_v34 }
 0x3f3   :  { %v8632_v32 = vunpack.i.h.bf16 %v7108_v49  ;;  %v8633_v43 = vunpack.i.l.bf16 %v7108_v49  ;;  %4941 = vrot.lane.b32.xlu0 %v4940_v44, %s5190_s2  ;;  %v4538_v44 = vunpack.i.l.bf16 %v6872_v20 }
 0x3f4   :  { %4901 = vrot.lane.b32.xlu1 %v4900_v47, %s5190_s2  ;;  %v8636_v47 = vunpack.i.h.bf16 %v6795_v0 }
 0x3f5   :  { %v7132_v24 = vpop.permute.xlu0 %4641  ;;  %v2230_v26 = vsel %vm468_vm9, %v8633_v43, %v8632_v32  ;;  %v4950_v32 = vpack.i.bf16 %v1496_v10, %v1495_v22  ;;  %v2391_v43 = vsel %vm468_vm9, %v4563_v17, %v4538_v44 }
 0x3f6   :  { %v7141_v21 = vpop.permute.xlu1 %4611  ;;  %v3438_v63 = vpack.c.bf16 %v2230_v26, %v2224_v23  ;;  %v8948_v23 = vunpack.i.h.bf16 %v6872_v20  ;;  %v1576_v22 = vsel %vm278_vm8, %v4478_v34, %v8636_v47  ;;  %v8953_v34 = vld [vmem:[#allocation69_spill] sm:$0xff] }
 0x3f7   :  { %8946 = vst [vmem:[#allocation41_spill] sm:$0xff] %v7141_v21  ;;  %v8634_v9 = vunpack.i.h.bf16 %v7141_v21  ;;  %v4613_v50 = vunpack.i.l.bf16 %v7141_v21  ;;  %4946 = vrot.lane.b32.xlu0 %v4945_v18, %s5190_s2 }
 0x3f8   :  { %4906 = vrot.lane.b32.xlu1 %v4905_v15, %s5190_s2  ;;  %3439 = vmatprep.subr.bf16.mxu1 %v3438_v63  ;;  %v2392_v14 = vsel %vm468_vm9, %v4538_v44, %v8948_v23  ;;  %v8951_v15 = vunpack.i.l.bf16 %v6580_v6  ;;  %v4424_v63 = vunpack.i.h.bf16 %v6680_v39  ;;  %v8954_v6 = vunpack.i.h.bf16 %v6702_v30 }
 0x3f9   :  { %v2397_v13 = vsel %vm468_vm9, %v4564_v28, %v4613_v50  ;;  %v7151_v59 = vpop.permute.xlu0 %4651  ;;  %v2398_v26 = vsel %vm468_vm9, %v4613_v50, %v8634_v9  ;;  %v4955_v50 = vpack.i.bf16 %v1576_v22, %v1575_v60  ;;  %v4378_v28 = vunpack.i.l.bf16 %v8953_v34 }
 0x3fa   :  { %8947 = vst [vmem:[#allocation43_spill] sm:$0xff] %v7151_v59  ;;  %v3496_v10 = vpack.c.bf16 %v2397_v13, %v2391_v43  ;;  %v7165_v18 = vpop.permute.xlu1 %4646  ;;  %v3494_v17 = vpack.c.bf16 %v2398_v26, %v2392_v14  ;;  %v1236_v44 = vsel %vm152_vm4, %v8951_v15, %v4419_v54  ;;  %v4379_v43 = vunpack.i.h.bf16 %v8953_v34 }
 0x3fb   :  { %8950 = vst [vmem:[#allocation59_spill] sm:$0xff] %v7165_v18  ;;  %4951 = vrot.lane.b32.xlu0 %v4950_v32, %s5190_s2  ;;  %v4915_v13 = vpack.i.bf16 %v4419_v54, %v1236_v44  ;;  %v1082_v23 = vsel %vm96_vm0, %v8954_v6, %v6704_v40  ;;  %v8955_v32 = vld [vmem:[#allocation65_spill] sm:$0xff]  ;;  %v8635_v60 = vunpack.i.l.bf16 %v7165_v18  ;;  %v8957_v54 = vld [vmem:[#allocation22_spill] sm:$0xff]  ;;  %v8959_v15 = vunpack.i.h.bf16 %v6436_v7 }
 0x3fc   :  { %4911 = vrot.lane.b32.xlu1 %v4910_v12, %s5190_s2  ;;  %3495 = vmatprep.subr.bf16.mxu0 %v3494_v17  ;;  %v8637_v26 = vunpack.i.l.bf16 %v8955_v32  ;;  %v8956_v12 = vunpack.i.l.bf16 %v6680_v39  ;;  %v3994_v30 = vunpack.i.h.bf16 %v8957_v54  ;;  %v1406_v34 = vsel %vm219_vm6, %v4378_v28, %v4379_v43  ;;  %v8962_v43 = vld [vmem:[#allocation51_spill] sm:$0xff] }
 0x3fd   :  { %3497 = vmatpush1.bf16.msra.mxu0 %v3496_v10  ;;  %v7173_v62 = vpop.permute.xlu0 %4656  ;;  %v4960_v10 = vpack.i.bf16 %v6704_v40, %v1082_v23  ;;  %v1405_v44 = vsel %vm219_vm6, %v8959_v15, %v4378_v28  ;;  %v8960_v23 = vld [vmem:[#allocation66_spill] sm:$0xff]  ;;  %v8961_v7 = vunpack.i.l.bf16 %v8957_v54  ;;  %v4198_v28 = vunpack.i.l.bf16 %v8962_v43  ;;  %v8967_v43 = vld [vmem:[#allocation32_spill] sm:$0xff]  ;;  %v8975_v15 = vld [vmem:[#allocation29_spill] sm:$0xff] }
 0x3fe   :  { %8952 = vst [vmem:[#allocation26_spill] sm:$0xff] %v7173_v62  ;;  %v7181_v14 = vpop.permute.xlu1 %4706  ;;  %v1305_v35 = vsel %vm184_vm5, %v8956_v12, %v4424_v63  ;;  %v1638_v40 = vsel %vm306_vm1, %v3994_v30, %v8637_v26 }
 0x3ff   :  { %v4708_v22 = vunpack.i.l.bf16 %v7181_v14  ;;  %4956 = vrot.lane.b32.xlu0 %v4955_v50, %s5190_s2  ;;  %v4920_v50 = vpack.i.bf16 %v4424_v63, %v1305_v35  ;;  %v1637_v63 = vsel %vm306_vm1, %v8961_v7, %v3994_v30  ;;  %v8963_v35 = vld [vmem:[#allocation40_spill] sm:$0xff]  ;;  %v8966_v30 = vunpack.i.l.bf16 %v8911_v33 }
 0x400   :  { %4916 = vrot.lane.b32.xlu1 %v4915_v13, %s5190_s2  ;;  %v4429_v13 = vunpack.i.h.bf16 %v8911_v33  ;;  %v4970_v12 = vpack.i.bf16 %v1638_v40, %v1637_v63  ;;  %v8971_v40 = vunpack.i.h.bf16 %v8960_v23  ;;  %v8972_v33 = vunpack.i.l.bf16 %v8963_v35 }
 0x401   :  { %v7196_v17 = vsel %vm468_vm9, %v4708_v22, %v8635_v60  ;;  %v7198_v39 = vpop.permute.xlu0 %4661  ;;  %v4353_v22 = vunpack.i.l.bf16 %v8960_v23  ;;  %v4965_v60 = vpack.i.bf16 %v1406_v34, %v1405_v44  ;;  %v8968_v34 = vld [vmem:[#allocation64_spill] sm:$0xff] }
 0x402   :  { %8958 = vst [vmem:[#allocation54_spill] sm:$0xff] %v7198_v39  ;;  %v7204_v6 = vpop.permute.xlu1 %4711  ;;  %v1412_v54 = vsel %vm219_vm6, %v4429_v13, %v4198_v28  ;;  %v1411_v7 = vsel %vm219_vm6, %v8966_v30, %v4429_v13  ;;  %v4653_v30 = vunpack.i.l.bf16 %v7151_v59  ;;  %v4028_v39 = vunpack.i.l.bf16 %v8975_v15 }
 0x403   :  { %4961 = vrot.lane.b32.xlu0 %v4960_v10, %s5190_s2  ;;  %v8964_v10 = vunpack.i.h.bf16 %v6717_v4  ;;  %v8969_v4 = vld [vmem:[#allocation31_spill] sm:$0xff]  ;;  %v1644_v63 = vsel %vm306_vm1, %v4353_v22, %v8971_v40  ;;  %v8978_v15 = vunpack.i.l.bf16 %v8968_v34 }
 0x404   :  { %4921 = vrot.lane.b32.xlu1 %v4920_v50, %s5190_s2  ;;  %v8965_v50 = vld [vmem:[#allocation44_spill] sm:$0xff]  ;;  %v8970_v21 = vunpack.i.h.bf16 %v8969_v4 }
 0x405   :  { %v7219_v9 = vpop.permute.xlu0 %4666  ;;  %v1162_v47 = vsel %vm124_vm3, %v8964_v10, %v6719_v1  ;;  %v4174_v20 = vunpack.i.h.bf16 %v8965_v50  ;;  %v8974_v4 = vld [vmem:[#allocation28_spill] sm:$0xff] }
 0x406   :  { %v7225_v26 = vpop.permute.xlu1 %4721  ;;  %v1643_v10 = vsel %vm306_vm1, %v8970_v21, %v4353_v22  ;;  %v4023_v21 = vunpack.i.l.bf16 %v8974_v4  ;;  %v4985_v22 = vpack.i.bf16 %v1412_v54, %v1411_v7  ;;  %v8980_v54 = vunpack.i.h.bf16 %v8979_v51 }
 0x407   :  { %4966 = vrot.lane.b32.xlu0 %v4965_v60, %s5190_s2  ;;  %v1650_v13 = vsel %vm306_vm1, %v4174_v20, %v8972_v33  ;;  %v4975_v60 = vpack.i.bf16 %v6719_v1, %v1162_v47  ;;  %v4304_v33 = vunpack.i.h.bf16 %v6440_v36  ;;  %v4980_v28 = vpack.i.bf16 %v1644_v63, %v1643_v10 }
 0x408   :  { %4971 = vrot.lane.b32.xlu1 %v4970_v12, %s5190_s2  ;;  %v8977_v12 = vunpack.i.l.bf16 %v8965_v50  ;;  %v2202_v50 = vsel %vm468_vm9, %v8980_v54, %v8978_v15  ;;  %v8982_v7 = vunpack.i.l.bf16 %v8967_v43  ;;  %v8983_v1 = vunpack.i.h.bf16 %v6731_v25 }
 0x409   :  { %v7248_v44 = vpop.permute.xlu0 %4671  ;;  %v8984_v63 = vunpack.i.h.bf16 %v7151_v59  ;;  %v4483_v15 = vunpack.i.l.bf16 %v6816_v37  ;;  %v1480_v48 = vsel %vm250_vm7, %v4304_v33, %v4023_v21  ;;  %v4434_v59 = vunpack.i.h.bf16 %v6627_v16 }
 0x40a   :  { %8973 = vst [vmem:[#allocation69_spill] sm:$0xff] %v7248_v44  ;;  %v7252_v62 = vpop.permute.xlu1 %4731  ;;  %v1649_v40 = vsel %vm306_vm1, %v8977_v12, %v4174_v20  ;;  %v8981_v20 = vunpack.i.h.bf16 %v8967_v43  ;;  %v4309_v43 = vunpack.i.h.bf16 %v6448_v5 }
 0x40b   :  { %8976 = vst [vmem:[#allocation65_spill] sm:$0xff] %v7252_v62  ;;  %v4733_v47 = vunpack.i.l.bf16 %v7252_v62  ;;  %4976 = vrot.lane.b32.xlu0 %v4975_v60, %s5190_s2  ;;  %v4990_v4 = vpack.i.bf16 %v1650_v13, %v1649_v40  ;;  %v1242_v60 = vsel %vm152_vm4, %v8983_v1, %v6734_v53  ;;  %v2404_v51 = vsel %vm468_vm9, %v4653_v30, %v8984_v63  ;;  %v8988_v63 = vld [vmem:[#allocation48_spill] sm:$0xff] }
 0x40c   :  { %4986 = vrot.lane.b32.xlu1 %v4985_v22, %s5190_s2  ;;  %v2208_v12 = vsel %vm468_vm9, %v8982_v7, %v8981_v20  ;;  %v8985_v22 = vunpack.i.h.bf16 %v7252_v62  ;;  %v8987_v1 = vunpack.i.l.bf16 %v6440_v36  ;;  %v8990_v36 = vld [vmem:[#allocation61_spill] sm:$0xff]  ;;  %v4995_v21 = vpack.i.bf16 %v6734_v53, %v1242_v60 }
 0x40d   :  { %v4677_v10 = vpop.permute.xlu0 %4676  ;;  %v8995_v53 = vunpack.i.l.bf16 %v6627_v16  ;;  %v4314_v16 = vunpack.i.h.bf16 %v8955_v32 }
 0x40e   :  { %v2410_v40 = vsel %vm468_vm9, %v4733_v47, %v8985_v22  ;;  %v7284_v54 = vpop.permute.xlu1 %4736  ;;  %v4679_v20 = vunpack.i.h.bf16 %v4677_v10  ;;  %v4678_v7 = vunpack.i.l.bf16 %v4677_v10  ;;  %v1479_v13 = vsel %vm250_vm7, %v8987_v1, %v4304_v33  ;;  %v8989_v22 = vld [vmem:[#allocation53_spill] sm:$0xff] }
 0x40f   :  { %8986 = vst [vmem:[#allocation22_spill] sm:$0xff] %v7284_v54  ;;  %v3498_v25 = vpack.c.bf16 %v2410_v40, %v2404_v51  ;;  %4981 = vrot.lane.b32.xlu0 %v4980_v28, %s5190_s2  ;;  %v4203_v62 = vunpack.i.l.bf16 %v8989_v22  ;;  %v8655_v51 = vunpack.i.h.bf16 %v8990_v36  ;;  %v3502_v1 = vpack.c.bf16 %v2208_v12, %v2202_v50  ;;  %v8991_v22 = vld [vmem:[#allocation60_spill] sm:$0xff]  ;;  %v1661_v50 = vld [vmem:[#allocation6 + $0x10] sm:$0xff] }
 0x410   :  { %v2409_v54 = vsel %vm468_vm9, %v4679_v20, %v4733_v47  ;;  %v2403_v10 = vsel %vm468_vm9, %v4678_v7, %v4653_v30  ;;  %4991 = vrot.lane.b32.xlu1 %v4990_v4, %s5190_s2  ;;  %v4489_v28 = vunpack.i.h.bf16 %v6756_v52  ;;  %v8992_v8 = vunpack.i.h.bf16 %v8991_v22  ;;  %v8997_v12 = vld [vmem:[#allocation45_spill] sm:$0xff] }
 0x411   :  { %3499 = vmatprep.subr.bf16.mxu0 %v3498_v25  ;;  %v3500_v33 = vpack.c.bf16 %v2409_v54, %v2403_v10  ;;  %v7300_v40 = vpop.permute.xlu0 %4681  ;;  %v8993_v47 = vunpack.i.h.bf16 %v6816_v37  ;;  %v5005_v20 = vpack.i.bf16 %v1480_v48, %v1479_v13  ;;  %v1492_v7 = vsel %vm250_vm7, %v4434_v59, %v4203_v62 }
 0x412   :  { %v1655_v18 = vsel %vm306_vm1, %v8992_v8, %v4483_v15  ;;  %v7309_v4 = vpop.permute.xlu1 %4741  ;;  %v1491_v60 = vsel %vm250_vm7, %v8995_v53, %v4434_v59  ;;  %v8996_v8 = vunpack.i.l.bf16 %v8988_v63  ;;  %v8998_v54 = vunpack.i.h.bf16 %v8997_v12  ;;  %v9000_v59 = vld [vmem:[#allocation46_spill] sm:$0xff] }
 0x413   :  { %v1656_v30 = vsel %vm306_vm1, %v4483_v15, %v8993_v47  ;;  %8994 = vst [vmem:[#allocation66_spill] sm:$0xff] %v7309_v4  ;;  %4996 = vrot.lane.b32.xlu0 %v4995_v21, %s5190_s2  ;;  %3501 = vmatpush1.bf16.msra.mxu0 %v3500_v33  ;;  %v8999_v25 = vunpack.i.l.bf16 %v6448_v5  ;;  %v1560_v62 = vsel %vm278_vm8, %v4309_v43, %v4028_v39  ;;  %v4383_v13 = vunpack.i.l.bf16 %v9000_v59  ;;  %v9002_v47 = vld [vmem:[#allocation30_spill] sm:$0xff] }
 0x414   :  { %v2214_v15 = vsel %vm468_vm9, %v8998_v54, %v8996_v8  ;;  %5006 = vrot.lane.b32.xlu1 %v5005_v20, %s5190_s2  ;;  %3503 = vmatprep.subr.bf16.mxu0 %v3502_v1  ;;  %v4384_v10 = vunpack.i.h.bf16 %v9000_v59  ;;  %v5000_v33 = vpack.i.bf16 %v1656_v30, %v1655_v18  ;;  %v9001_v5 = vunpack.i.l.bf16 %v8990_v36  ;;  %v9004_v18 = vld [vmem:[#allocation34_spill] sm:$0xff]  ;;  %v9005_v30 = vld [vmem:[#allocation33_spill] sm:$0xff] }
 0x415   :  { %v1559_v48 = vsel %vm278_vm8, %v8999_v25, %v4309_v43  ;;  %v7329_v21 = vpop.permute.xlu0 %4686  ;;  %v4033_v39 = vunpack.i.l.bf16 %v9002_v47  ;;  %v9003_v43 = vunpack.i.l.bf16 %v6756_v52  ;;  %v5020_v1 = vpack.i.bf16 %v1492_v7, %v1491_v60  ;;  %v1664_v25 = vld [vmem:[#allocation6 + $0x28] sm:$0xff] }
 0x416   :  { %v2220_v22 = vsel %vm468_vm9, %v9001_v5, %v8655_v51  ;;  %v7340_v8 = vpop.permute.xlu1 %4746  ;;  %3394 = vmatmul.mubr.msk.f32.vlgmr.msra.gmra.mrb[16].mxu0 %vm2631_vm11, %v1661_v50  ;;  %v9006_v12 = vpack.c.bf16 %v9004_v18, %v9005_v30  ;;  %v5025_v54 = vpack.i.bf16 %v1560_v62, %v1559_v48  ;;  %v9007_v59 = vunpack.i.l.bf16 %v8955_v32  ;;  %v9015_v18 = vld [vmem:[#allocation38_spill] sm:$0xff] }
 0x417   :  { %v1310_v53 = vsel %vm184_vm5, %v9003_v43, %v4489_v28  ;;  %v3506_v20 = vpack.c.bf16 %v2220_v22, %v2214_v15  ;;  %5001 = vrot.lane.b32.xlu0 %v5000_v33, %s5190_s2  ;;  %v1640_v5 = vsel %vm306_vm1, %v4314_v16, %v4033_v39  ;;  %v9008_v47 = vunpack.i.h.bf16 %v6444_v42  ;;  %v9011_v43 = vld [vmem:[#allocation55_spill] sm:$0xff] }
 0x418   :  { %3505 = vmatpush1.bf16.msra.mxu0 %v9006_v12  ;;  %v1639_v52 = vsel %vm306_vm1, %v9007_v59, %v4314_v16  ;;  %5021 = vrot.lane.b32.xlu1 %v5020_v1, %s5190_s2  ;;  %v1486_v60 = vsel %vm250_vm7, %v4383_v13, %v4384_v10  ;;  %v5010_v50 = vpack.i.bf16 %v4489_v28, %v1310_v53  ;;  %v4494_v15 = vunpack.i.h.bf16 %v6783_v19  ;;  %v9013_v10 = vld [vmem:[#allocation62_spill] sm:$0xff] }
 0x419   :  { %v1485_v7 = vsel %vm250_vm7, %v9008_v47, %v4383_v13  ;;  %3507 = vmatprep.subr.bf16.mxu0 %v3506_v20  ;;  %v4493_v48 = vunpack.i.l.bf16 %v6783_v19  ;;  %v4692_v62 = vpop.permute.xlu0 %4691  ;;  %v9009_v32 = vmov 0.0   ;;  %v8652_v33 = vunpack.i.l.bf16 %v7219_v9  ;;  %v9012_v19 = vld [vmem:[#allocation63_spill] sm:$0xff] }
 0x41a   :  { %2803 = vmatprep.mubr.f32.mxu0 %v9009_v32  ;;  %v8654_v16 = vunpack.i.l.bf16 %v7340_v8  ;;  %v7361_v42 = vpop.permute.xlu1 %4751  ;;  %v4694_v22 = vunpack.i.h.bf16 %v4692_v62  ;;  %v4693_v39 = vunpack.i.l.bf16 %v4692_v62  ;;  %v4208_v13 = vunpack.i.l.bf16 %v9011_v43  ;;  %v1667_v20 = vld [vmem:[#allocation6 + $0x40] sm:$0xff] }
 0x41b   :  { %9010 = vst [vmem:[#allocation51_spill] sm:$0xff] %v7361_v42  ;;  %3395 = vmatmul.mubr.msk.f32.gmra.mrb[18].mxu0 %vm2631_vm11, %v1664_v25  ;;  %v4439_v28 = vunpack.i.h.bf16 %v8923_v61  ;;  %5011 = vrot.lane.b32.xlu0 %v5010_v50, %s5190_s2  ;;  %v9014_v53 = vpack.c.bf16 %v9012_v19, %v9013_v10  ;;  %v5040_v1 = vpack.i.bf16 %v1640_v5, %v1639_v52  ;;  %v4389_v30 = vunpack.i.h.bf16 %v9015_v18  ;;  %v1670_v10 = vld [vmem:[#allocation6 + $0x58] sm:$0xff] }
 0x41c   :  { %v7374_v12 = vsel %vm468_vm9, %v4694_v22, %v8654_v16  ;;  %v7379_v25 = vsel %vm468_vm9, %v4693_v39, %v8652_v33  ;;  %5026 = vrot.lane.b32.xlu1 %v5025_v54, %s5190_s2  ;;  %v5015_v59 = vpack.i.bf16 %v1486_v60, %v1485_v7  ;;  %2809 = vmatprep.mubr.f32.mxu0 %v9009_v32  ;;  %v4388_v52 = vunpack.i.l.bf16 %v9015_v18 }
 0x41d   :  { %3509 = vmatpush1.bf16.msra.mxu0 %v9014_v53  ;;  %v9016_v5 = vunpack.i.h.bf16 %v6750_v27  ;;  %v1418_v50 = vsel %vm219_vm6, %v4493_v48, %v4494_v15  ;;  %v4697_v22 = vpop.permute.xlu0 %4696  ;;  %v8651_v39 = vunpack.i.l.bf16 %v7248_v44  ;;  %v8653_v43 = vunpack.i.l.bf16 %v7361_v42 }
 0x41e   :  { %v7392_v54 = vpop.permute.xlu1 %4771  ;;  %v4699_v7 = vunpack.i.h.bf16 %v4697_v22  ;;  %v4698_v60 = vunpack.i.l.bf16 %v4697_v22  ;;  %v1572_v27 = vsel %vm278_vm8, %v4439_v28, %v4208_v13  ;;  %v9017_v19 = vunpack.i.l.bf16 %v8923_v61  ;;  %v9020_v61 = vld [vmem:[#allocation57_spill] sm:$0xff] }
 0x41f   :  { %v1417_v47 = vsel %vm219_vm6, %v9016_v5, %v4493_v48  ;;  %3396 = vmatmul.mubr.msk.f32.gmra.mrb[20].mxu0 %vm2631_vm11, %v1667_v20  ;;  %v4444_v48 = vunpack.i.h.bf16 %v8963_v35  ;;  %5016 = vrot.lane.b32.xlu0 %v5015_v59, %s5190_s2  ;;  %v9021_v20 = vunpack.i.h.bf16 %v6450_v45  ;;  %v4714_v59 = vunpack.i.h.bf16 %v7204_v6 }
 0x420   :  { %v1571_v15 = vsel %vm278_vm8, %v9017_v19, %v4439_v28  ;;  %2815 = vmatprep.mubr.f32.mxu0 %v9009_v32  ;;  %v7405_v53 = vsel %vm468_vm9, %v4699_v7, %v8653_v43  ;;  %v7410_v13 = vsel %vm468_vm9, %v4698_v60, %v8651_v39  ;;  %5041 = vrot.lane.b32.xlu1 %v5040_v1, %s5190_s2  ;;  %v4213_v28 = vunpack.i.l.bf16 %v9020_v61 }
 0x421   :  { %9018 = vst [vmem:[#allocation40_spill] sm:$0xff] %v7405_v53  ;;  %9019 = vst [vmem:[#allocation44_spill] sm:$0xff] %v7410_v13  ;;  %v1565_v18 = vsel %vm278_vm8, %v9021_v20, %v4388_v52  ;;  %v7419_v5 = vpop.permute.xlu0 %4701  ;;  %v5030_v22 = vpack.i.bf16 %v1418_v50, %v1417_v47  ;;  %v1566_v7 = vsel %vm278_vm8, %v4388_v52, %v4389_v30  ;;  %v4499_v19 = vunpack.i.h.bf16 %v6803_v31  ;;  %v9024_v30 = vld [vmem:[#allocation35_spill] sm:$0xff] }
 0x422   :  { %v4498_v60 = vunpack.i.l.bf16 %v6803_v31  ;;  %v7424_v62 = vpop.permute.xlu1 %4776  ;;  %v5055_v1 = vpack.i.bf16 %v1572_v27, %v1571_v15  ;;  %v1652_v45 = vsel %vm306_vm1, %v4444_v48, %v4213_v28  ;;  %v9023_v61 = vunpack.i.l.bf16 %v8963_v35 }
 0x423   :  { %9022 = vst [vmem:[#allocation64_spill] sm:$0xff] %v7424_v62  ;;  %3397 = vmatmul.mubr.msk.f32.gmra.mrb[22].mxu0 %vm2631_vm11, %v1670_v10  ;;  %5031 = vrot.lane.b32.xlu0 %v5030_v22, %s5190_s2  ;;  %v4394_v52 = vunpack.i.h.bf16 %v9024_v30  ;;  %v4393_v47 = vunpack.i.l.bf16 %v9024_v30  ;;  %v4504_v31 = vunpack.i.h.bf16 %v6819_v57  ;;  %v4503_v50 = vunpack.i.l.bf16 %v6819_v57 }
 0x424   :  { %v1651_v20 = vsel %vm306_vm1, %v9023_v61, %v4444_v48  ;;  %2886 = vmatprep.mubr.f32.mxu0 %v7051_v29  ;;  %5056 = vrot.lane.b32.xlu1 %v5055_v1, %s5190_s2  ;;  %v5035_v15 = vpack.i.bf16 %v1566_v7, %v1565_v18  ;;  %v8657_v35 = vunpack.i.h.bf16 %v8968_v34  ;;  %v9025_v48 = vunpack.i.h.bf16 %v6774_v55 }
 0x425   :  { %v7438_v27 = vpop.permute.xlu0 %4716  ;;  %v1498_v29 = vsel %vm250_vm7, %v4498_v60, %v4499_v19  ;;  %v5060_v22 = vpack.i.bf16 %v1652_v45, %v1651_v20  ;;  %v9027_v57 = vunpack.i.h.bf16 %v8960_v23  ;;  %v1646_v61 = vsel %vm306_vm1, %v4393_v47, %v4394_v52  ;;  %v9029_v19 = vld [vmem:[#allocation56_spill] sm:$0xff] }
 0x426   :  { %v1497_v10 = vsel %vm250_vm7, %v9025_v48, %v4498_v60  ;;  %v7445_v28 = vpop.permute.xlu1 %4781  ;;  %v9028_v18 = vunpack.i.h.bf16 %v6795_v0  ;;  %v1578_v55 = vsel %vm278_vm8, %v4503_v50, %v4504_v31  ;;  %v4508_v60 = vunpack.i.l.bf16 %v9029_v19 }
 0x427   :  { %9026 = vst [vmem:[#allocation31_spill] sm:$0xff] %v7445_v28  ;;  %5036 = vrot.lane.b32.xlu0 %v5035_v15, %s5190_s2  ;;  %v1645_v1 = vsel %vm306_vm1, %v9027_v57, %v4393_v47  ;;  %v5045_v45 = vpack.i.bf16 %v1498_v29, %v1497_v10  ;;  %v9031_v23 = vunpack.i.l.bf16 %v8968_v34  ;;  %v4509_v0 = vunpack.i.h.bf16 %v9029_v19 }
 0x428   :  { %v1577_v7 = vsel %vm278_vm8, %v9028_v18, %v4503_v50  ;;  %5061 = vrot.lane.b32.xlu1 %v5060_v22, %s5190_s2  ;;  %v4709_v52 = vunpack.i.h.bf16 %v7181_v14  ;;  %v9034_v50 = vld [vmem:[#allocation67_spill] sm:$0xff]  ;;  %v8658_v48 = vunpack.i.l.bf16 %v7438_v27  ;;  %v5050_v10 = vpack.i.bf16 %v1646_v61, %v1645_v1 }
 0x429   :  { %v7458_v30 = vpop.permute.xlu0 %4726  ;;  %v7465_v20 = vsel %vm468_vm9, %v9031_v23, %v8657_v35  ;;  %v5065_v29 = vpack.i.bf16 %v1578_v55, %v1577_v7  ;;  %v4518_v22 = vunpack.i.l.bf16 %v6851_v46  ;;  %v8659_v57 = vunpack.i.h.bf16 %v6930_v41 }
 0x42a   :  { %9030 = vst [vmem:[#allocation28_spill] sm:$0xff] %v7458_v30  ;;  %9032 = vst [vmem:[#allocation29_spill] sm:$0xff] %v7465_v20  ;;  %v7469_v47 = vpop.permute.xlu1 %4786  ;;  %v8656_v31 = vunpack.i.l.bf16 %v7458_v30  ;;  %v4603_v18 = vunpack.i.l.bf16 %v6930_v41  ;;  %v9035_v19 = vunpack.i.h.bf16 %v6816_v37  ;;  %v8661_v1 = vunpack.i.l.bf16 %v7204_v6 }
 0x42b   :  { %9033 = vst [vmem:[#allocation21_spill] sm:$0xff] %v7469_v47  ;;  %5046 = vrot.lane.b32.xlu0 %v5045_v45, %s5190_s2  ;;  %v1658_v55 = vsel %vm306_vm1, %v4508_v60, %v4509_v0  ;;  %v4639_v16 = vunpack.i.h.bf16 %v7103_v3  ;;  %v9037_v0 = vunpack.i.h.bf16 %v6851_v46  ;;  %v4638_v61 = vunpack.i.l.bf16 %v7103_v3 }
 0x42c   :  { %v7481_v14 = vsel %vm468_vm9, %v4709_v52, %v8656_v31  ;;  %v1657_v23 = vsel %vm306_vm1, %v9035_v19, %v4508_v60  ;;  %v4719_v52 = vunpack.i.h.bf16 %v7438_v27  ;;  %v9036_v19 = vld [vmem:[#allocation58_spill] sm:$0xff]  ;;  %v2242_v60 = vsel %vm468_vm9, %v4714_v59, %v8658_v48 }
 0x42d   :  { %v7490_v7 = vpop.permute.xlu0 %4756  ;;  %v4528_v43 = vunpack.i.l.bf16 %v9036_v19  ;;  %v2223_v51 = vsel %vm468_vm9, %v4518_v22, %v9037_v0  ;;  %v9038_v31 = vunpack.i.l.bf16 %v7108_v49  ;;  %v2254_v15 = vsel %vm468_vm9, %v4603_v18, %v8659_v57  ;;  %v9040_v57 = vld [vmem:[#allocation50_spill] sm:$0xff] }
 0x42e   :  { %v7495_v39 = vpop.permute.xlu1 %4791  ;;  %v4759_v37 = vunpack.i.h.bf16 %v7490_v7  ;;  %v4588_v45 = vunpack.i.l.bf16 %v7060_v58  ;;  %v2236_v46 = vsel %vm468_vm9, %v4639_v16, %v8661_v1  ;;  %v4723_v22 = vunpack.i.l.bf16 %v7225_v26 }
 0x42f   :  { %5051 = vrot.lane.b32.xlu0 %v5050_v10, %s5190_s2  ;;  %v4589_v10 = vunpack.i.h.bf16 %v7060_v58  ;;  %v3442_v0 = vpack.c.bf16 %v2242_v60, %v2236_v46  ;;  %v4533_v58 = vunpack.i.l.bf16 %v9040_v57  ;;  %v4608_v3 = vunpack.i.l.bf16 %v6954_v2 }
 0x430   :  { %v2229_v35 = vsel %vm468_vm9, %v4759_v37, %v9038_v31  ;;  %v2241_v31 = vsel %vm468_vm9, %v4719_v52, %v4714_v59  ;;  %v2235_v59 = vsel %vm468_vm9, %v4638_v61, %v4639_v16  ;;  %v4643_v60 = vunpack.i.l.bf16 %v7132_v24 }
 0x431   :  { %v3440_v33 = vpack.c.bf16 %v2229_v35, %v2223_v51  ;;  %v7517_v48 = vpop.permute.xlu0 %4761  ;;  %v9041_v35 = vunpack.i.h.bf16 %v9036_v19  ;;  %v2247_v46 = vsel %vm468_vm9, %v4588_v45, %v4528_v43  ;;  %v3444_v32 = vpack.c.bf16 %v2241_v31, %v2235_v59 }
 0x432   :  { %v7525_v37 = vpop.permute.xlu1 %4796  ;;  %v2253_v13 = vsel %vm468_vm9, %v4589_v10, %v4603_v18  ;;  %v4703_v53 = vunpack.i.l.bf16 %v7419_v5  ;;  %v9043_v16 = vunpack.i.h.bf16 %v7225_v26  ;;  %v9045_v45 = vunpack.i.h.bf16 %v6848_v56 }
 0x433   :  { %9039 = vst [vmem:[#allocation48_spill] sm:$0xff] %v7525_v37  ;;  %5066 = vrot.lane.b32.xlu0 %v5065_v29, %s5190_s2  ;;  %3441 = vmatpush1.bf16.msra.mxu1 %v3440_v33  ;;  %v2248_v1 = vsel %vm468_vm9, %v4528_v43, %v9041_v35  ;;  %v5070_v29 = vpack.i.bf16 %v1658_v55, %v1657_v23  ;;  %v4704_v35 = vunpack.i.h.bf16 %v7419_v5  ;;  %v9047_v5 = vunpack.i.h.bf16 %v9040_v57 }
 0x434   :  { %3443 = vmatprep.subr.bf16.mxu1 %v3442_v0  ;;  %v3446_v33 = vpack.c.bf16 %v2254_v15, %v2248_v1  ;;  %v2266_v61 = vsel %vm468_vm9, %v4723_v22, %v9043_v16  ;;  %v9044_v0 = vld [vmem:[#allocation68_spill] sm:$0xff]  ;;  %v9046_v15 = vunpack.i.l.bf16 %v6848_v56  ;;  %v9048_v10 = vunpack.i.h.bf16 %v7132_v24 }
 0x435   :  { %v7539_v51 = vpop.permute.xlu0 %4766  ;;  %v4399_v52 = vunpack.i.h.bf16 %v9044_v0  ;;  %v4398_v43 = vunpack.i.l.bf16 %v9044_v0  ;;  %v2272_v23 = vsel %vm468_vm9, %v4533_v58, %v9047_v5  ;;  %v9049_v59 = vunpack.i.h.bf16 %v6954_v2 }
 0x436   :  { %v7544_v37 = vpop.permute.xlu1 %4801  ;;  %v2225_v18 = vsel %vm468_vm9, %v9046_v15, %v9045_v45  ;;  %v2260_v31 = vsel %vm468_vm9, %v4643_v60, %v9048_v10  ;;  %v3448_v0 = vpack.c.bf16 %v2253_v13, %v2247_v46  ;;  %v2265_v5 = vsel %vm468_vm9, %v4704_v35, %v4723_v22 }
 0x437   :  { %9042 = vst [vmem:[#allocation53_spill] sm:$0xff] %v7544_v37  ;;  %5071 = vrot.lane.b32.xlu0 %v5070_v29, %s5190_s2  ;;  %3445 = vmatpush1.bf16.msra.mxu1 %v3444_v32  ;;  %v2278_v16 = vsel %vm468_vm9, %v4608_v3, %v9049_v59  ;;  %v4594_v32 = vunpack.i.h.bf16 %v7081_v38  ;;  %v4593_v29 = vunpack.i.l.bf16 %v7081_v38  ;;  %v3450_v15 = vpack.c.bf16 %v2266_v61, %v2260_v31  ;;  %v9052_v61 = vld [vmem:[#allocation59_spill] sm:$0xff] }
 0x438   :  { %3447 = vmatprep.subr.bf16.mxu1 %v3446_v33  ;;  %v2259_v33 = vsel %vm468_vm9, %v4703_v53, %v4643_v60  ;;  %v9053_v22 = vunpack.i.h.bf16 %v7108_v49  ;;  %v9054_v60 = vunpack.i.l.bf16 %v7495_v39  ;;  %v9055_v35 = vunpack.i.h.bf16 %v6848_v56 }
 0x439   :  { %v7570_v45 = vpop.permute.xlu0 %4811  ;;  %v3452_v13 = vpack.c.bf16 %v2265_v5, %v2259_v33  ;;  %v2271_v56 = vsel %vm468_vm9, %v4593_v29, %v4533_v58  ;;  %v9059_v5 = vunpack.i.h.bf16 %v8968_v34  ;;  %v7629_v29 = vsel %vm468_vm9, %v4398_v43, %v4399_v52 }
 0x43a   :  { %9050 = vst [vmem:[#allocation61_spill] sm:$0xff] %v7570_v45  ;;  %v7574_v1 = vpop.permute.xlu1 %4806  ;;  %v8667_v10 = vunpack.i.h.bf16 %v7570_v45  ;;  %v4813_v55 = vunpack.i.l.bf16 %v7570_v45  ;;  %v2226_v59 = vsel %vm468_vm9, %v9055_v35, %v9054_v60  ;;  %v2277_v60 = vsel %vm468_vm9, %v4594_v32, %v4608_v3 }
 0x43b   :  { %9051 = vst [vmem:[#allocation60_spill] sm:$0xff] %v7574_v1  ;;  %v8666_v38 = vunpack.i.l.bf16 %v7574_v1  ;;  %3449 = vmatpush1.bf16.msra.mxu1 %v3448_v0  ;;  %v9056_v0 = vunpack.i.h.bf16 %v7392_v54  ;;  %v3454_v45 = vpack.c.bf16 %v2278_v16, %v2272_v23  ;;  %v9064_v3 = vunpack.i.h.bf16 %v7458_v30  ;;  %v9066_v16 = vld [vmem:[#allocation42_spill] sm:$0xff] }
 0x43c   :  { %v2231_v53 = vsel %vm468_vm9, %v9053_v22, %v4813_v55  ;;  %3451 = vmatprep.subr.bf16.mxu1 %v3450_v15  ;;  %v2232_v46 = vsel %vm468_vm9, %v4813_v55, %v8667_v10  ;;  %v9058_v55 = vunpack.i.l.bf16 %v9034_v50  ;;  %v9065_v50 = vunpack.i.l.bf16 %v7458_v30  ;;  %v5094_v1 = vld [vmem:[%s8499_s3 + $0x10] sm:$0xff] }
 0x43d   :  { %v7599_v49 = vsel %vm468_vm9, %v9056_v0, %v8666_v38  ;;  %v3512_v22 = vpack.c.bf16 %v2231_v53, %v2225_v18  ;;  %v7601_v15 = vpop.permute.xlu0 %4826  ;;  %v3510_v31 = vpack.c.bf16 %v2232_v46, %v2226_v59  ;;  %v9060_v0 = vld [vmem:[#allocation32_spill] sm:$0xff]  ;;  %v9063_v59 = vld [vmem:[#allocation17_spill] sm:$0xff]  ;;  %v4404_v23 = vunpack.i.h.bf16 %v8988_v63 }
 0x43e   :  { %9057 = vst [vmem:[#allocation45_spill] sm:$0xff] %v7599_v49  ;;  %v7605_v35 = vpop.permute.xlu1 %4816  ;;  %v7612_v33 = vsel %vm468_vm9, %v9059_v5, %v9058_v55  ;;  %v9061_v38 = vunpack.i.h.bf16 %v9060_v0  ;;  %v4543_v58 = vunpack.i.l.bf16 %v9063_v59  ;;  %v2290_v34 = vsel %vm468_vm9, %v9065_v50, %v9064_v3 }
 0x43f   :  { %3453 = vmatpush1.bf16.msra.mxu1 %v3452_v13  ;;  %3511 = vmatprep.subr.bf16.mxu0 %v3510_v31  ;;  %v4448_v32 = vunpack.i.l.bf16 %v9066_v16  ;;  %v3456_v55 = vpack.c.bf16 %v2277_v60, %v2271_v56  ;;  %v9069_v31 = vunpack.i.h.bf16 %v9052_v61  ;;  %v9070_v5 = vunpack.i.l.bf16 %v9052_v61 }
 0x440   :  { %v7617_v18 = vsel %vm468_vm9, %v9061_v38, %v4398_v43  ;;  %3455 = vmatprep.subr.bf16.mxu1 %v3454_v45  ;;  %3513 = vmatpush1.bf16.msra.mxu0 %v3512_v22  ;;  %v9067_v38 = vld [vmem:[#allocation23_spill] sm:$0xff]  ;;  %v9071_v3 = vunpack.i.h.bf16 %v6982_v11  ;;  %v9072_v50 = vunpack.i.l.bf16 %v6982_v11  ;;  %v5191_v22 = vmov 2   ;;  %v9073_v43 = vld [vmem:[#allocation22_spill] sm:$0xff] }
 0x441   :  { %9062 = vst [vmem:[#allocation46_spill] sm:$0xff] %v7617_v18  ;;  %v4568_v53 = vunpack.i.l.bf16 %v9067_v38  ;;  %v7632_v13 = vpop.permute.xlu0 %4831  ;;  %v2284_v0 = vsel %vm468_vm9, %v9070_v5, %v9069_v31  ;;  %5075 = vset.pattern.permute.xlu1 %v5191_v22  ;;  %v4569_v52 = vunpack.i.h.bf16 %v9067_v38  ;;  %v4738_v60 = vunpack.i.l.bf16 %v9073_v43  ;;  %v5092_v31 = vld [vmem:[%s8499_s3] sm:$0xff]  ;;  %5076 = vset.pattern.permute.xlu0 %v5191_v22 }
 0x442   :  { %9068 = vst [vmem:[#allocation30_spill] sm:$0xff] %v7632_v13  ;;  %v2302_v45 = vsel %vm468_vm9, %v9072_v50, %v9071_v3  ;;  %v7647_v16 = vpop.permute.xlu1 %4821  ;;  %v3458_v10 = vpack.c.bf16 %v2290_v34, %v2284_v0  ;;  %3203 = vperm.xlu1 %5075, %v5092_v31   ;;  %v9074_v5 = vld [vmem:[#allocation52_spill] sm:$0xff]  ;;  %v9076_v38 = vunpack.i.h.bf16 %v9063_v59  ;;  %v9077_v31 = vld [vmem:[#allocation26_spill] sm:$0xff]  ;;  %v9079_v22 = vunpack.i.l.bf16 %v6982_v11 }
 0x443   :  { %v4514_v46 = vunpack.i.h.bf16 %v9074_v5  ;;  %v4513_v3 = vunpack.i.l.bf16 %v9074_v5  ;;  %v9075_v50 = vld [vmem:[#allocation36_spill] sm:$0xff]  ;;  %3457 = vmatpush1.bf16.msra.mxu1 %v3456_v55  ;;  %v4658_v61 = vunpack.i.l.bf16 %v9077_v31  ;;  %v2295_v5 = vsel %vm468_vm9, %v4568_v53, %v4543_v58 }
 0x444   :  { %v2296_v56 = vsel %vm468_vm9, %v4543_v58, %v9076_v38  ;;  %v5093_v34 = vld [vmem:[%s8499_s3 + $0x8] sm:$0xff]  ;;  %v4623_v0 = vunpack.i.l.bf16 %v9075_v50  ;;  %3459 = vmatprep.subr.bf16.mxu1 %v3458_v10  ;;  %v2301_v30 = vsel %vm468_vm9, %v4569_v52, %v9079_v22  ;;  %v4684_v10 = vunpack.i.h.bf16 %v7300_v40  ;;  %v9082_v52 = vld [vmem:[#allocation18_spill] sm:$0xff] }
 0x445   :  { %3207 = vperm.xlu0 %5076, %v5093_v34   ;;  %v7665_v49 = vpop.permute.xlu0 %4836  ;;  %v3462_v55 = vpack.c.bf16 %v2302_v45, %v2296_v56  ;;  %v3296_v34 = vld [vmem:[%s8499_s3] sm:$0x1]  ;;  %v4683_v58 = vunpack.i.l.bf16 %v7300_v40  ;;  %v9080_v45 = vunpack.i.h.bf16 %v9073_v43  ;;  %v9081_v38 = vunpack.i.l.bf16 %v8988_v63 }
 0x446   :  { %9078 = vst [vmem:[#allocation34_spill] sm:$0xff] %v7665_v49  ;;  %v7679_v53 = vpop.permute.xlu1 %4846  ;;  %3211 = vperm.xlu1 %5075, %v5094_v1   ;;  %v4548_v40 = vunpack.i.l.bf16 %v9082_v52  ;;  %v9083_v11 = vpack.c.bf16 %v7481_v14, %v7196_v17  ;;  %v5192_v43 = vmov 3   ;;  %v9085_v1 = vunpack.i.h.bf16 %v9077_v31  ;;  %v9088_v17 = vld [vmem:[#allocation27_spill] sm:$0xff] }
 0x447   :  { %v2314_v56 = vsel %vm468_vm9, %v4738_v60, %v9080_v45  ;;  %v7690_v49 = vsel %vm468_vm9, %v9081_v38, %v4404_v23  ;;  %v7698_v45 = vsel %vm468_vm9, %v4404_v23, %v4448_v32  ;;  %v9086_v38 = vunpack.i.h.bf16 %v9075_v50 }
 0x448   :  { %3461 = vmatpush1.bf16.msra.mxu1 %v9083_v11  ;;  %9084 = vst [vmem:[#allocation33_spill] sm:$0xff] %v7698_v45  ;;  %v2308_v63 = vsel %vm468_vm9, %v4658_v61, %v9085_v1  ;;  %v7707_v20 = vsel %vm468_vm9, %v4513_v3, %v4514_v46  ;;  %v4574_v11 = vunpack.i.h.bf16 %v9088_v17  ;;  %v4573_v14 = vunpack.i.l.bf16 %v9088_v17  ;;  %v5095_v46 = vld [vmem:[%s8499_s3 + $0x18] sm:$0xff]  ;;  %s5194_s3 = smov [#allocation8]  }
 0x449   :  { %5077 = vset.pattern.permute.xlu0 %v5192_v43  ;;  %3463 = vmatprep.subr.bf16.mxu1 %v3462_v55  ;;  %v2326_v22 = vsel %vm468_vm9, %v4623_v0, %v9086_v38  ;;  %9087 = vst [vmem:[#allocation55_spill] sm:$0xff] %v7707_v20  ;;  %v7711_v23 = vpop.permute.xlu0 %4841  ;;  %v3464_v32 = vpack.c.bf16 %v2301_v30, %v2295_v5  ;;  %v4743_v1 = vunpack.i.l.bf16 %v7309_v4  ;;  %v9091_v5 = vld [vmem:[#allocation19_spill] sm:$0xff]  ;;  %v4688_v45 = vunpack.i.l.bf16 %v7329_v21  ;;  %s3366_s10 = sshll.u32 %s5194_s3, 4  ;;  %s3367_s10 = int_to_ptr.vmem [resolvable:$true] %s3366_s10 }
 0x44a   :  { %3299 = vperm.xlu0 %5077, %v3296_v34   ;;  %9089 = vst [vmem:[#allocation63_spill] sm:$0xff] %v7711_v23  ;;  %v3466_v43 = vpack.c.bf16 %v2314_v56, %v2308_v63  ;;  %v2313_v31 = vsel %vm468_vm9, %v4684_v10, %v4738_v60  ;;  %v2307_v38 = vsel %vm468_vm9, %v4683_v58, %v4658_v61  ;;  %v7717_v50 = vpop.permute.xlu1 %4866  ;;  %v9090_v34 = vunpack.i.h.bf16 %v8990_v36  ;;  %v9093_v58 = vld [vmem:[#allocation54_spill] sm:$0xff]  ;;  %s5145_s11 = scalar_lea.vmem %s3367_s10, 96  ;;  %p5150_p3 = scmp.lt.s32.totalorder %s3367_s10, %s3367_s10 }
 0x44b   :  { %3215 = vperm.xlu1 %5075, %v5095_v46   ;;  %v9092_v63 = vunpack.i.h.bf16 %v9082_v52  ;;  %v4553_v10 = vunpack.i.l.bf16 %v9091_v5  ;;  %v4663_v46 = vunpack.i.l.bf16 %v9093_v58  ;;  %v3468_v55 = vpack.c.bf16 %v2313_v31, %v2307_v38  ;;  %v9100_v38 = vld [vmem:[#allocation47_spill] sm:$0xff]  ;;  %p5146_p2 = scmp.ne.s32.totalorder %s3367_s10, %s5145_s11  ;;  %p5151_p4 = scmp.lt.s32.totalorder %s5145_s11, %s5145_s11 }
 0x44c   :  { %v7725_v30 = vsel %vm468_vm9, %v9090_v34, %v4513_v3  ;;  %3465 = vmatpush1.bf16.msra.mxu1 %v3464_v32  ;;  %v9094_v3 = vld [vmem:[#allocation39_spill] sm:$0xff]  ;;  %v2319_v32 = vsel %vm468_vm9, %v4573_v14, %v4548_v40  ;;  %v4689_v61 = vunpack.i.h.bf16 %v7329_v21  ;;  %v4583_v21 = vunpack.i.l.bf16 %v9100_v38 }
 0x44d   :  { %v2320_v60 = vsel %vm468_vm9, %v4548_v40, %v9092_v63  ;;  %3467 = vmatprep.subr.bf16.mxu1 %v3466_v43  ;;  %v4628_v56 = vunpack.i.l.bf16 %v9094_v3  ;;  %v7739_v23 = vpop.permute.xlu0 %4851  ;;  %v2325_v63 = vsel %vm468_vm9, %v4574_v11, %v4623_v0  ;;  %v9096_v43 = vunpack.i.h.bf16 %v7309_v4  ;;  %v9098_v40 = vld [vmem:[#allocation37_spill] sm:$0xff]  ;;  %p5152_p5 = por %p5151_p4, %p5150_p3 }
 0x44e   :  { %v3470_v36 = vpack.c.bf16 %v2326_v22, %v2320_v60  ;;  %9095 = vst [vmem:[#allocation62_spill] sm:$0xff] %v7739_v23  ;;  %v7744_v17 = vpop.permute.xlu1 %4871  ;;  %v9097_v60 = vld [vmem:[#allocation49_spill] sm:$0xff]  ;;  %v4579_v31 = vunpack.i.h.bf16 %v9098_v40  ;;  %v4578_v14 = vunpack.i.l.bf16 %v9098_v40  ;;  %v4584_v23 = vunpack.i.h.bf16 %v9100_v38 }
 0x44f   :  { %v2338_v22 = vsel %vm468_vm9, %v4743_v1, %v9096_v43  ;;  %v4633_v20 = vunpack.i.l.bf16 %v9097_v60  ;;  %v9099_v0 = vld [vmem:[#allocation25_spill] sm:$0xff]  ;;  %v9101_v4 = vunpack.i.h.bf16 %v9093_v58  ;;  %v3472_v13 = vpack.c.bf16 %v2325_v63, %v2319_v32  ;;  %p5153_p6 = pnand %p5152_p5, %p5146_p2 }
 0x450   :  { %3469 = vmatpush1.bf16.msra.mxu1 %v3468_v55  ;;  %v4558_v34 = vunpack.i.l.bf16 %v9099_v0  ;;  %v9103_v40 = vunpack.i.h.bf16 %v9094_v3  ;;  %v8690_v11 = vunpack.i.h.bf16 %v7340_v8  ;;  %v2337_v37 = vsel %vm468_vm9, %v4689_v61, %v4743_v1 }
 0x451   :  { %3471 = vmatprep.subr.bf16.mxu1 %v3470_v36  ;;  %v2332_v43 = vsel %vm468_vm9, %v4663_v46, %v9101_v4  ;;  %v7760_v18 = vpop.permute.xlu0 %4856  ;;  %v2331_v36 = vsel %vm468_vm9, %v4688_v45, %v4663_v46  ;;  %v8689_v38 = vunpack.i.h.bf16 %v7361_v42  ;;  %v2343_v4 = vsel %vm468_vm9, %v4578_v14, %v4553_v10 }
 0x452   :  { %9102 = vst [vmem:[#allocation38_spill] sm:$0xff] %v7760_v18  ;;  %v3474_v57 = vpack.c.bf16 %v2338_v22, %v2332_v43  ;;  %v2350_v55 = vsel %vm468_vm9, %v4628_v56, %v9103_v40  ;;  %v7769_v58 = vpop.permute.xlu1 %4876  ;;  %v2349_v18 = vsel %vm468_vm9, %v4579_v31, %v4628_v56  ;;  %v9104_v32 = vunpack.i.h.bf16 %v9091_v5 }
 0x453   :  { %v9105_v22 = vunpack.i.h.bf16 %v9097_v60  ;;  %v7782_v45 = vsel %vm468_vm9, %v4583_v21, %v4558_v34  ;;  %v7785_v1 = vsel %vm468_vm9, %v4584_v23, %v4633_v20  ;;  %v8691_v61 = vunpack.i.h.bf16 %v7219_v9 }
 0x454   :  { %3473 = vmatpush1.bf16.msra.mxu1 %v3472_v13  ;;  %v2344_v63 = vsel %vm468_vm9, %v4553_v10, %v9104_v32  ;;  %v8692_v56 = vunpack.i.h.bf16 %v7248_v44  ;;  %v3476_v13 = vpack.c.bf16 %v2337_v37, %v2331_v36  ;;  %v9106_v31 = vunpack.i.h.bf16 %v9099_v0 }
 0x455   :  { %v7779_v43 = vsel %vm468_vm9, %v4633_v20, %v9105_v22  ;;  %3475 = vmatprep.subr.bf16.mxu1 %v3474_v57  ;;  %v7789_v46 = vpop.permute.xlu0 %4861  ;;  %v3478_v10 = vpack.c.bf16 %v2350_v55, %v2344_v63  ;;  %v4773_v40 = vunpack.i.l.bf16 %v7392_v54  ;;  %v9107_v23 = vunpack.i.l.bf16 %v7340_v8 }
 0x456   :  { %v2368_v14 = vsel %vm468_vm9, %v4558_v34, %v9106_v31  ;;  %v7797_v20 = vpop.permute.xlu1 %4881  ;;  %v9108_v55 = vunpack.i.l.bf16 %v7361_v42  ;;  %v8693_v32 = vunpack.i.h.bf16 %v7605_v35  ;;  %v4818_v63 = vunpack.i.l.bf16 %v7605_v35 }
 0x457   :  { %v2362_v57 = vsel %vm468_vm9, %v9107_v23, %v8690_v11  ;;  %v3486_v37 = vpack.c.bf16 %v7779_v43, %v2368_v14  ;;  %v3480_v22 = vpack.c.bf16 %v2349_v18, %v2343_v4  ;;  %v8696_v31 = vunpack.i.h.bf16 %v7717_v50 }
 0x458   :  { %v7810_v34 = vsel %vm468_vm9, %v9108_v55, %v8689_v38  ;;  %3477 = vmatpush1.bf16.msra.mxu1 %v3476_v13  ;;  %v4868_v43 = vunpack.i.l.bf16 %v7717_v50  ;;  %v9109_v14 = vunpack.i.l.bf16 %v7219_v9  ;;  %v9110_v55 = vunpack.i.l.bf16 %v7248_v44 }
 0x459   :  { %3479 = vmatprep.subr.bf16.mxu1 %v3478_v10  ;;  %v4763_v18 = vunpack.i.l.bf16 %v7517_v48  ;;  %v7830_v4 = vpop.permute.xlu0 %4926  ;;  %v9111_v21 = vunpack.i.h.bf16 %v9063_v59  ;;  %v4783_v59 = vunpack.i.l.bf16 %v7445_v28 }
 0x45a   :  { %v2356_v23 = vsel %vm468_vm9, %v9109_v14, %v8691_v61  ;;  %v2380_v38 = vsel %vm468_vm9, %v9110_v55, %v8692_v56  ;;  %v7838_v14 = vpop.permute.xlu1 %4886  ;;  %v8695_v61 = vunpack.i.h.bf16 %v7830_v4  ;;  %v4928_v55 = vunpack.i.l.bf16 %v7830_v4 }
 0x45b   :  { %v3482_v11 = vpack.c.bf16 %v2362_v57, %v2356_v23  ;;  %v3490_v10 = vpack.c.bf16 %v7810_v34, %v2380_v38  ;;  %v7836_v36 = vsel %vm468_vm9, %v9111_v21, %v4773_v40  ;;  %v9112_v56 = vunpack.i.h.bf16 %v7392_v54 }
 0x45c   :  { %v4778_v38 = vunpack.i.l.bf16 %v7424_v62  ;;  %3481 = vmatpush1.bf16.msra.mxu1 %v3480_v22  ;;  %v2256_v21 = vsel %vm468_vm9, %v4818_v63, %v8693_v32  ;;  %v9113_v34 = vunpack.i.l.bf16 %v7204_v6  ;;  %v9114_v54 = vunpack.i.l.bf16 %v7438_v27 }
 0x45d   :  { %v7845_v13 = vsel %vm468_vm9, %v4773_v40, %v9112_v56  ;;  %3483 = vmatprep.subr.bf16.mxu1 %v3482_v11  ;;  %v2238_v40 = vsel %vm468_vm9, %v4868_v43, %v8696_v31  ;;  %v2244_v22 = vsel %vm468_vm9, %v4928_v55, %v8695_v61  ;;  %v7866_v57 = vpop.permute.xlu0 %4931  ;;  %v9118_v31 = vunpack.i.h.bf16 %v9082_v52 }
 0x45e   :  { %v2237_v23 = vsel %vm468_vm9, %v9113_v34, %v4868_v43  ;;  %v2243_v56 = vsel %vm468_vm9, %v9114_v54, %v4928_v55  ;;  %v3514_v6 = vpack.c.bf16 %v2244_v22, %v2238_v40  ;;  %v9115_v34 = vunpack.i.h.bf16 %v7517_v48  ;;  %v7873_v42 = vpop.permute.xlu1 %4891 }
 0x45f   :  { %v3516_v32 = vpack.c.bf16 %v2243_v56, %v2237_v23  ;;  %v4873_v54 = vunpack.i.l.bf16 %v7744_v17  ;;  %v4933_v55 = vunpack.i.l.bf16 %v7866_v57  ;;  %v4788_v23 = vunpack.i.l.bf16 %v7469_v47 }
 0x460   :  { %v2250_v27 = vsel %vm468_vm9, %v4763_v18, %v9115_v34  ;;  %v9116_v56 = vunpack.i.h.bf16 %v6930_v41  ;;  %v9117_v22 = vpack.c.bf16 %v7374_v12, %v7379_v25  ;;  %3515 = vmatprep.subr.bf16.mxu0 %v3514_v6  ;;  %v7888_v11 = vsel %vm468_vm9, %v9118_v31, %v4778_v38 }
 0x461   :  { %v3518_v34 = vpack.c.bf16 %v2256_v21, %v2250_v27  ;;  %v8697_v43 = vunpack.i.h.bf16 %v7647_v16  ;;  %v4823_v61 = vunpack.i.l.bf16 %v7647_v16  ;;  %3517 = vmatpush1.bf16.msra.mxu0 %v3516_v32  ;;  %v9119_v41 = vunpack.i.h.bf16 %v7866_v57  ;;  %v7903_v21 = vpop.permute.xlu0 %4936 }
 0x462   :  { %v2255_v40 = vsel %vm468_vm9, %v9116_v56, %v4818_v63  ;;  %3485 = vmatpush1.bf16.msra.mxu1 %v9117_v22  ;;  %v9120_v12 = vunpack.i.h.bf16 %v9091_v5  ;;  %v9121_v52 = vunpack.i.h.bf16 %v9036_v19  ;;  %9122 = vst [vmem:[#allocation57_spill] sm:$0xff] %v7903_v21  ;;  %v9123_v6 = vunpack.i.h.bf16 %v7424_v62  ;;  %v7917_v22 = vpop.permute.xlu1 %4896 }
 0x463   :  { %3487 = vmatprep.subr.bf16.mxu1 %v3486_v37  ;;  %v2268_v63 = vsel %vm468_vm9, %v4933_v55, %v9119_v41  ;;  %3519 = vmatprep.subr.bf16.mxu0 %v3518_v34  ;;  %v9124_v32 = vunpack.i.h.bf16 %v7445_v28  ;;  %v8698_v5 = vunpack.i.h.bf16 %v7539_v51  ;;  %v4768_v56 = vunpack.i.l.bf16 %v7539_v51  ;;  %v8014_v28 = vld [vmem:[#allocation6 + $0x18] sm:$0xff] }
 0x464   :  { %v7898_v25 = vsel %vm468_vm9, %v9120_v12, %v4783_v59  ;;  %v2249_v31 = vsel %vm468_vm9, %v9121_v52, %v4763_v18  ;;  %v7908_v37 = vsel %vm468_vm9, %v4778_v38, %v9123_v6  ;;  %v9125_v18 = vunpack.i.h.bf16 %v7744_v17 }
 0x465   :  { %v7913_v27 = vsel %vm468_vm9, %v4783_v59, %v9124_v32  ;;  %v3520_v19 = vpack.c.bf16 %v2255_v40, %v2249_v31  ;;  %v9126_v41 = vunpack.i.h.bf16 %v9099_v0  ;;  %v9127_v12 = vunpack.i.h.bf16 %v7225_v26 }
 0x466   :  { %v2262_v34 = vsel %vm468_vm9, %v4873_v54, %v9125_v18  ;;  %v9128_v52 = vpack.c.bf16 %v7785_v1, %v7782_v45  ;;  %v9129_v31 = vunpack.i.h.bf16 %v7469_v47  ;;  %v4794_v32 = vunpack.i.h.bf16 %v7495_v39  ;;  %v9130_v1 = vld [vmem:[#allocation48_spill] sm:$0xff] }
 0x467   :  { %v7925_v38 = vsel %vm468_vm9, %v9126_v41, %v4788_v23  ;;  %v2267_v59 = vsel %vm468_vm9, %v9127_v12, %v4933_v55  ;;  %v3522_v40 = vpack.c.bf16 %v2268_v63, %v2262_v34  ;;  %v4938_v18 = vunpack.i.l.bf16 %v7903_v21  ;;  %3521 = vmatpush1.bf16.msra.mxu0 %v3520_v19  ;;  %v7950_v41 = vpop.permute.xlu0 %4941  ;;  %v9148_v47 = vld [vmem:[#allocation28_spill] sm:$0xff] }
 0x468   :  { %3489 = vmatpush1.bf16.msra.mxu1 %v9128_v52  ;;  %v7936_v6 = vsel %vm468_vm9, %v4788_v23, %v9129_v31  ;;  %v2280_v26 = vsel %vm468_vm9, %v4823_v61, %v8697_v43  ;;  %v4758_v45 = vunpack.i.l.bf16 %v7490_v7  ;;  %v4799_v55 = vunpack.i.h.bf16 %v9130_v1  ;;  %v7954_v52 = vpop.permute.xlu1 %4901 }
 0x469   :  { %3491 = vmatprep.subr.bf16.mxu1 %v3490_v10  ;;  %v4798_v63 = vunpack.i.l.bf16 %v9130_v1  ;;  %v9131_v23 = vunpack.i.h.bf16 %v7132_v24  ;;  %3523 = vmatprep.subr.bf16.mxu0 %v3522_v40  ;;  %v4878_v19 = vunpack.i.l.bf16 %v7769_v58  ;;  %v2274_v7 = vsel %vm468_vm9, %v4768_v56, %v8698_v5  ;;  %v9133_v40 = vld [vmem:[#allocation40_spill] sm:$0xff] }
 0x46a   :  { %v9132_v31 = vunpack.i.h.bf16 %v6954_v2  ;;  %v4848_v1 = vunpack.i.l.bf16 %v7679_v53  ;;  %v3526_v10 = vpack.c.bf16 %v2280_v26, %v2274_v7  ;;  %v4943_v62 = vunpack.i.l.bf16 %v7950_v41 }
 0x46b   :  { %v2261_v34 = vsel %vm468_vm9, %v9131_v23, %v4873_v54  ;;  %v4849_v54 = vunpack.i.h.bf16 %v7679_v53  ;;  %v9134_v23 = vld [vmem:[#allocation44_spill] sm:$0xff]  ;;  %v9138_v53 = vpack.c.bf16 %v7629_v29, %v7612_v33  ;;  %v7993_v2 = vpop.permute.xlu0 %4946  ;;  %v2228_v33 = vsel %vm468_vm9, %v4794_v32, %v4758_v45  ;;  %v9150_v45 = vld [vmem:[#allocation46_spill] sm:$0xff] }
 0x46c   :  { %v3524_v12 = vpack.c.bf16 %v2267_v59, %v2261_v34  ;;  %v2279_v24 = vsel %vm468_vm9, %v9132_v31, %v4823_v61  ;;  %v9135_v43 = vpack.c.bf16 %v9133_v40, %v9134_v23  ;;  %v7967_v59 = vld [vmem:[#allocation6] sm:$0xff]  ;;  %v9137_v34 = vunpack.i.l.bf16 %v7495_v39  ;;  %v9142_v40 = vld [vmem:[#allocation53_spill] sm:$0xff] }
 0x46d   :  { %9136 = vst [vmem:[#allocation35_spill] sm:$0xff] %v7967_v59  ;;  %v4828_v61 = vunpack.i.l.bf16 %v7601_v15  ;;  %v7979_v31 = vld [vmem:[#allocation6 + $0x20] sm:$0xff]  ;;  %v9141_v39 = vunpack.i.h.bf16 %v7517_v48  ;;  %v4803_v23 = vunpack.i.l.bf16 %v9142_v40  ;;  %v4804_v29 = vunpack.i.h.bf16 %v9142_v40  ;;  %v9151_v40 = vld [vmem:[#allocation29_spill] sm:$0xff] }
 0x46e   :  { %3493 = vmatpush1.bf16.msra.mxu1 %v9135_v43  ;;  %v7972_v0 = vsel %vm468_vm9, %v9137_v34, %v4794_v32  ;;  %3525 = vmatpush1.bf16.msra.mxu0 %v3524_v12  ;;  %9139 = vst [vmem:[#allocation56_spill] sm:$0xff] %v7979_v31  ;;  %v9140_v43 = vunpack.i.h.bf16 %v7903_v21  ;;  %v9143_v34 = vld [vmem:[#allocation50_spill] sm:$0xff]  ;;  %v9146_v48 = vunpack.i.h.bf16 %v7769_v58 }
 0x46f   :  { %3575 = vmatprep.subr.bf16.mxu1 %v9138_v53  ;;  %v7987_v7 = vsel %vm468_vm9, %v9141_v39, %v4798_v63  ;;  %v9144_v5 = vunpack.i.h.bf16 %v9143_v34  ;;  %3527 = vmatprep.subr.bf16.mxu0 %v3526_v10  ;;  %v8004_v34 = vsel %vm468_vm9, %v4798_v63, %v4799_v55  ;;  %v9149_v10 = vunpack.i.h.bf16 %v9148_v47  ;;  %v9153_v47 = vld [vmem:[#allocation55_spill] sm:$0xff]  ;;  %v9159_v63 = vld [vmem:[#allocation61_spill] sm:$0xff] }
 0x470   :  { %v2292_v26 = vsel %vm468_vm9, %v4938_v18, %v9140_v43  ;;  %v7997_v43 = vpop.permute.xlu1 %4906  ;;  %v2286_v39 = vsel %vm468_vm9, %v4878_v19, %v9146_v48  ;;  %v2234_v48 = vsel %vm468_vm9, %v4848_v1, %v4849_v54 }
 0x471   :  { %v2273_v12 = vsel %vm468_vm9, %v9144_v5, %v4768_v56  ;;  %9145 = vst [vmem:[#allocation67_spill] sm:$0xff] %v7997_v43  ;;  %2709 = vmatmul.mubr.f32.vlgmr.msra.gmra.mrb[8].mxu1 %v7967_v59  ;;  %v9147_v5 = vld [vmem:[#allocation30_spill] sm:$0xff]  ;;  %v2291_v32 = vsel %vm468_vm9, %v9149_v10, %v4938_v18  ;;  %v9154_v18 = vld [vmem:[#allocation33_spill] sm:$0xff]  ;;  %v9161_v59 = vld [vmem:[#allocation59_spill] sm:$0xff]  ;;  %v3582_v44 = vpack.c.bf16 %v2234_v48, %v2228_v33 }
 0x472   :  { %v3528_v53 = vpack.c.bf16 %v2279_v24, %v2273_v12  ;;  %v4833_v56 = vunpack.i.l.bf16 %v9147_v5  ;;  %v9152_v24 = vpack.c.bf16 %v9150_v45, %v9151_v40  ;;  %2714 = vmatprep.mubr.f32.mxu1 %v7979_v31  ;;  %v3530_v12 = vpack.c.bf16 %v2292_v26, %v2286_v39  ;;  %v8023_v45 = vld [vmem:[#allocation6 + $0x38] sm:$0xff] }
 0x473   :  { %v9155_v10 = vpack.c.bf16 %v9153_v47, %v9154_v18  ;;  %v9156_v40 = vunpack.i.h.bf16 %v7601_v15  ;;  %v9157_v39 = vunpack.i.h.bf16 %v7539_v51  ;;  %v9160_v31 = vunpack.i.h.bf16 %v9159_v63  ;;  %v9163_v63 = vld [vmem:[#allocation24_spill] sm:$0xff]  ;;  %v9168_v33 = vld [vmem:[#allocation34_spill] sm:$0xff] }
 0x474   :  { %3577 = vmatpush1.bf16.msra.mxu1 %v9152_v24  ;;  %3529 = vmatpush1.bf16.msra.mxu0 %v3528_v53  ;;  %v9158_v24 = vld [vmem:[#allocation60_spill] sm:$0xff]  ;;  %v9162_v47 = vunpack.i.h.bf16 %v9161_v59  ;;  %v4883_v51 = vunpack.i.l.bf16 %v7797_v20  ;;  %v9164_v21 = vunpack.i.h.bf16 %v9163_v63  ;;  %v4838_v48 = vunpack.i.l.bf16 %v9168_v33 }
 0x475   :  { %3579 = vmatprep.subr.bf16.mxu1 %v9155_v10  ;;  %v2304_v26 = vsel %vm468_vm9, %v4828_v61, %v9156_v40  ;;  %v8031_v54 = vsel %vm468_vm9, %v9157_v39, %v4803_v23  ;;  %v4809_v55 = vunpack.i.h.bf16 %v9158_v24  ;;  %v2233_v53 = vsel %vm468_vm9, %v9160_v31, %v4848_v1  ;;  %v8040_v10 = vpop.permute.xlu0 %4951  ;;  %3531 = vmatprep.subr.bf16.mxu0 %v3530_v12  ;;  %v8044_v39 = vpop.permute.xlu1 %4911  ;;  %v9165_v59 = vld [vmem:[#allocation36_spill] sm:$0xff] }
 0x476   :  { %v2285_v18 = vsel %vm468_vm9, %v9162_v47, %v4878_v19  ;;  %v8709_v40 = vunpack.i.h.bf16 %v7797_v20  ;;  %2715 = vmatmul.mubr.f32.gmra.mrb[10].mxu1 %v8014_v28  ;;  %v2303_v1 = vsel %vm468_vm9, %v9164_v21, %v4828_v61  ;;  %v9166_v31 = vunpack.i.h.bf16 %v9165_v59  ;;  %v8060_v47 = vld [vmem:[#allocation6 + $0x30] sm:$0xff] }
 0x477   :  { %v3532_v43 = vpack.c.bf16 %v2291_v32, %v2285_v18  ;;  %v9167_v12 = vpack.c.bf16 %v7725_v30, %v7690_v49  ;;  %2720 = vmatprep.mubr.f32.mxu1 %v8023_v45  ;;  %v3534_v32 = vpack.c.bf16 %v2304_v26, %v7845_v13  ;;  %v8063_v21 = vld [vmem:[#allocation6 + $0x50] sm:$0xff]  ;;  %v9169_v61 = vunpack.i.h.bf16 %v7950_v41 }
 0x478   :  { %v8053_v19 = vsel %vm468_vm9, %v9166_v31, %v4833_v56  ;;  %v9170_v63 = vunpack.i.h.bf16 %v9147_v5  ;;  %v8072_v30 = vsel %vm468_vm9, %v4803_v23, %v4804_v29  ;;  %v3584_v13 = vpack.c.bf16 %v2233_v53, %v7972_v0  ;;  %v9171_v59 = vld [vmem:[#allocation62_spill] sm:$0xff] }
 0x479   :  { %3581 = vmatpush1.bf16.msra.mxu1 %v9167_v12  ;;  %3533 = vmatpush1.bf16.msra.mxu0 %v3532_v43  ;;  %v2316_v18 = vsel %vm468_vm9, %v4943_v62, %v9169_v61  ;;  %v8710_v26 = vunpack.i.h.bf16 %v9168_v33  ;;  %v4854_v43 = vunpack.i.h.bf16 %v9171_v59  ;;  %v8078_v31 = vpop.permute.xlu0 %4956  ;;  %v3536_v12 = vpack.c.bf16 %v2303_v1, %v7836_v36 }
 0x47a   :  { %3583 = vmatprep.subr.bf16.mxu1 %v3582_v44  ;;  %v2328_v49 = vsel %vm468_vm9, %v4833_v56, %v9170_v63  ;;  %v4853_v44 = vunpack.i.l.bf16 %v9171_v59  ;;  %3535 = vmatprep.subr.bf16.mxu0 %v3534_v32  ;;  %v3544_v61 = vpack.c.bf16 %v8053_v19, %v7888_v11  ;;  %v8083_v56 = vpop.permute.xlu1 %4916  ;;  %v2310_v0 = vsel %vm468_vm9, %v4883_v51, %v8709_v40  ;;  %v9173_v32 = vld [vmem:[#allocation22_spill] sm:$0xff]  ;;  %v8099_v19 = vld [vmem:[#allocation6 + $0x48] sm:$0xff] }
 0x47b   :  { %2721 = vmatmul.mubr.f32.gmra.mrb[12].mxu1 %v8060_v47  ;;  %v9172_v23 = vunpack.i.l.bf16 %v9158_v24  ;;  %v4903_v53 = vunpack.i.l.bf16 %v7954_v52  ;;  %v9174_v36 = vunpack.i.h.bf16 %v9173_v32  ;;  %v3538_v11 = vpack.c.bf16 %v2316_v18, %v2310_v0  ;;  %9175 = vst [vmem:[#allocation58_spill] sm:$0xff] %v8099_v19 }
 0x47c   :  { %2726 = vmatprep.mubr.f32.mxu1 %v8063_v21  ;;  %v3542_v63 = vpack.c.bf16 %v2328_v49, %v7908_v37  ;;  %v9176_v59 = vunpack.i.h.bf16 %v9094_v3  ;;  %v4948_v32 = vunpack.i.l.bf16 %v7993_v2  ;;  %v2258_v3 = vsel %vm468_vm9, %v4853_v44, %v4854_v43 }
 0x47d   :  { %v8092_v29 = vsel %vm468_vm9, %v9172_v23, %v4809_v55  ;;  %v2315_v1 = vsel %vm468_vm9, %v9174_v36, %v4943_v62  ;;  %3585 = vmatpush1.bf16.msra.mxu1 %v3584_v13  ;;  %v4904_v55 = vunpack.i.h.bf16 %v7954_v52  ;;  %v8713_v23 = vunpack.i.h.bf16 %v7993_v2  ;;  %3537 = vmatpush1.bf16.msra.mxu0 %v3536_v12  ;;  %v9177_v62 = vld [vmem:[#allocation26_spill] sm:$0xff]  ;;  %v4962_v36 = vpop.permute.xlu0 %4961 }
 0x47e   :  { %v8105_v24 = vsel %vm468_vm9, %v9176_v59, %v4838_v48  ;;  %v9178_v13 = vunpack.i.h.bf16 %v9177_v62  ;;  %3539 = vmatprep.subr.bf16.mxu0 %v3538_v11  ;;  %v8118_v37 = vsel %vm468_vm9, %v4838_v48, %v8710_v26  ;;  %v4888_v52 = vunpack.i.l.bf16 %v7838_v14  ;;  %v8121_v59 = vpop.permute.xlu1 %4921  ;;  %v9179_v11 = vld [vmem:[#allocation63_spill] sm:$0xff]  ;;  %v5096_v26 = vld [vmem:[#allocation6 + $0x8] sm:$0xff] }
 0x47f   :  { %v4964_v12 = vunpack.i.h.bf16 %v4962_v36  ;;  %v4963_v62 = vunpack.i.l.bf16 %v4962_v36  ;;  %2727 = vmatmul.mubr.f32.gmra.mrb[14].mxu1 %v8099_v19  ;;  %v4843_v43 = vunpack.i.l.bf16 %v9179_v11  ;;  %v9180_v40 = vunpack.i.h.bf16 %v7717_v50 }
 0x480   :  { %v2309_v18 = vsel %vm468_vm9, %v9178_v13, %v4883_v51  ;;  %3064 = vmatprep.mubr.f32.mxu1 %v5096_v26  ;;  %v2240_v36 = vsel %vm468_vm9, %v4903_v53, %v4904_v55  ;;  %v2340_v51 = vsel %vm468_vm9, %v4948_v32, %v8713_v23  ;;  %v9182_v13 = vunpack.i.h.bf16 %v7605_v35  ;;  %v9184_v55 = vld [vmem:[#allocation66_spill] sm:$0xff] }
 0x481   :  { %v3540_v49 = vpack.c.bf16 %v2315_v1, %v2309_v18  ;;  %v2239_v48 = vsel %vm468_vm9, %v9180_v40, %v4903_v53  ;;  %v9181_v1 = vunpack.i.h.bf16 %v7830_v4  ;;  %v2246_v0 = vsel %vm468_vm9, %v4963_v62, %v4964_v12  ;;  %v8142_v19 = vpop.permute.xlu0 %4966 }
 0x482   :  { %v2257_v50 = vsel %vm468_vm9, %v9182_v13, %v4853_v44  ;;  %v3586_v4 = vpack.c.bf16 %v2246_v0, %v2240_v36  ;;  %v3590_v26 = vpack.c.bf16 %v2258_v3, %v8004_v34  ;;  %v9185_v12 = vunpack.i.h.bf16 %v9184_v55  ;;  %v8150_v23 = vpop.permute.xlu1 %4971 }
 0x483   :  { %v2245_v18 = vsel %vm468_vm9, %v9181_v1, %v4963_v62  ;;  %3541 = vmatpush1.bf16.msra.mxu0 %v3540_v49  ;;  %v9183_v49 = vld [vmem:[#allocation38_spill] sm:$0xff]  ;;  %v9186_v35 = vunpack.i.h.bf16 %v7838_v14  ;;  %v4913_v13 = vunpack.i.l.bf16 %v8044_v39  ;;  %v4953_v34 = vunpack.i.l.bf16 %v8040_v10 }
 0x484   :  { %v3588_v40 = vpack.c.bf16 %v2245_v18, %v2239_v48  ;;  %3543 = vmatprep.subr.bf16.mxu0 %v3542_v63  ;;  %v4859_v1 = vunpack.i.h.bf16 %v9183_v49  ;;  %v4858_v53 = vunpack.i.l.bf16 %v9183_v49  ;;  %v2339_v62 = vsel %vm468_vm9, %v9185_v12, %v4948_v32  ;;  %3587 = vmatprep.subr.bf16.mxu1 %v3586_v4 }
 0x485   :  { %v2334_v44 = vsel %vm468_vm9, %v4888_v52, %v9186_v35  ;;  %v4954_v63 = vunpack.i.h.bf16 %v8040_v10  ;;  %v9187_v3 = vunpack.i.h.bf16 %v9097_v60  ;;  %v4914_v32 = vunpack.i.h.bf16 %v8044_v39 }
 0x486   :  { %v3546_v0 = vpack.c.bf16 %v2340_v51, %v2334_v44  ;;  %3589 = vmatpush1.bf16.msra.mxu1 %v3588_v40  ;;  %v3550_v18 = vpack.c.bf16 %v8118_v37, %v7913_v27  ;;  %v9188_v36 = vunpack.i.h.bf16 %v9179_v11  ;;  %v3592_v4 = vpack.c.bf16 %v2257_v50, %v7987_v7  ;;  %v9189_v51 = vld [vmem:[#allocation54_spill] sm:$0xff]  ;;  %v8178_v40 = vpop.permute.xlu1 %4986 }
 0x487   :  { %v8161_v48 = vsel %vm468_vm9, %v9187_v3, %v4843_v43  ;;  %3545 = vmatpush1.bf16.msra.mxu0 %v3544_v61  ;;  %v9190_v55 = vunpack.i.h.bf16 %v9189_v51  ;;  %v4894_v12 = vunpack.i.h.bf16 %v7873_v42  ;;  %v4893_v39 = vunpack.i.l.bf16 %v7873_v42  ;;  %v4977_v61 = vpop.permute.xlu0 %4976  ;;  %3591 = vmatprep.subr.bf16.mxu1 %v3590_v26 }
 0x488   :  { %v8169_v49 = vsel %vm468_vm9, %v4843_v43, %v9188_v36  ;;  %3547 = vmatprep.subr.bf16.mxu0 %v3546_v0  ;;  %v4863_v27 = vunpack.i.l.bf16 %v7789_v46  ;;  %v4979_v43 = vunpack.i.h.bf16 %v4977_v61  ;;  %v4978_v35 = vunpack.i.l.bf16 %v4977_v61 }
 0x489   :  { %v2333_v60 = vsel %vm468_vm9, %v9190_v55, %v4888_v52  ;;  %v9191_v7 = vunpack.i.h.bf16 %v7647_v16  ;;  %v9192_v52 = vunpack.i.h.bf16 %v7744_v17  ;;  %v2364_v0 = vsel %vm468_vm9, %v4953_v34, %v4954_v63 }
 0x48a   :  { %v3548_v37 = vpack.c.bf16 %v2339_v62, %v2333_v60  ;;  %v2282_v26 = vsel %vm468_vm9, %v4858_v53, %v4859_v1  ;;  %v9193_v62 = vunpack.i.h.bf16 %v7866_v57  ;;  %3593 = vmatpush1.bf16.msra.mxu1 %v3592_v4  ;;  %v2264_v16 = vsel %vm468_vm9, %v4913_v13, %v4914_v32  ;;  %v8209_v4 = vpop.permute.xlu1 %4991 }
 0x48b   :  { %v2281_v50 = vsel %vm468_vm9, %v9191_v7, %v4858_v53  ;;  %v2263_v44 = vsel %vm468_vm9, %v9192_v52, %v4913_v13  ;;  %v2270_v36 = vsel %vm468_vm9, %v4978_v35, %v4979_v43  ;;  %v4864_v17 = vunpack.i.h.bf16 %v7789_v46  ;;  %v8196_v55 = vpop.permute.xlu0 %4981  ;;  %v9197_v7 = vld [vmem:[#allocation45_spill] sm:$0xff] }
 0x48c   :  { %v2269_v3 = vsel %vm468_vm9, %v9193_v62, %v4978_v35  ;;  %3549 = vmatpush1.bf16.msra.mxu0 %v3548_v37  ;;  %v3594_v60 = vpack.c.bf16 %v2270_v36, %v2264_v16  ;;  %v2358_v1 = vsel %vm468_vm9, %v4893_v39, %v4894_v12  ;;  %v9194_v57 = vunpack.i.h.bf16 %v7601_v15  ;;  %v9200_v16 = vld [vmem:[#allocation57_spill] sm:$0xff] }
 0x48d   :  { %v3596_v51 = vpack.c.bf16 %v2269_v3, %v2263_v44  ;;  %3551 = vmatprep.subr.bf16.mxu0 %v3550_v18  ;;  %v9195_v13 = vunpack.i.h.bf16 %v7340_v8  ;;  %v3554_v46 = vpack.c.bf16 %v2364_v0, %v2358_v1  ;;  %v3598_v61 = vpack.c.bf16 %v2282_v26, %v8072_v30 }
 0x48e   :  { %v8204_v53 = vsel %vm468_vm9, %v9194_v57, %v4863_v27  ;;  %v4919_v18 = vunpack.i.h.bf16 %v8083_v56  ;;  %v4918_v37 = vunpack.i.l.bf16 %v8083_v56  ;;  %v4959_v43 = vunpack.i.h.bf16 %v8078_v31  ;;  %3595 = vmatprep.subr.bf16.mxu1 %v3594_v60 }
 0x48f   :  { %v2363_v32 = vsel %vm468_vm9, %v9195_v13, %v4953_v34  ;;  %v4958_v15 = vunpack.i.l.bf16 %v8078_v31  ;;  %v3560_v35 = vpack.c.bf16 %v8161_v48, %v7925_v38  ;;  %v3600_v8 = vpack.c.bf16 %v2281_v50, %v8031_v54  ;;  %3597 = vmatpush1.bf16.msra.mxu1 %v3596_v51  ;;  %v4997_v38 = vpop.permute.xlu0 %4996  ;;  %v8232_v48 = vpop.permute.xlu1 %5006  ;;  %v9202_v13 = vld [vmem:[#allocation69_spill] sm:$0xff]  ;;  %v5099_v31 = vld [vmem:[#allocation6 + $0x40] sm:$0xff] }
 0x490   :  { %v9196_v34 = vpack.c.bf16 %v8105_v24, %v7898_v25  ;;  %v3558_v30 = vpack.c.bf16 %v8169_v49, %v7936_v6  ;;  %v3608_v56 = vpack.c.bf16 %v8204_v53, %v9197_v7  ;;  %v9198_v52 = vunpack.i.h.bf16 %v7219_v9  ;;  %3599 = vmatprep.subr.bf16.mxu1 %v3598_v61  ;;  %v9204_v61 = vld [vmem:[#allocation51_spill] sm:$0xff] }
 0x491   :  { %v4899_v0 = vunpack.i.h.bf16 %v7917_v22  ;;  %v2306_v54 = vsel %vm468_vm9, %v4863_v27, %v4864_v17  ;;  %v4898_v25 = vunpack.i.l.bf16 %v7917_v22  ;;  %v4999_v6 = vunpack.i.h.bf16 %v4997_v38 }
 0x492   :  { %3553 = vmatpush1.bf16.msra.mxu0 %v9196_v34  ;;  %v2357_v44 = vsel %vm468_vm9, %v9198_v52, %v4893_v39  ;;  %v4998_v49 = vunpack.i.l.bf16 %v4997_v38  ;;  %v9199_v50 = vunpack.i.h.bf16 %v7769_v58  ;;  %v4923_v39 = vunpack.i.l.bf16 %v8121_v59  ;;  %v9206_v38 = vld [vmem:[#allocation67_spill] sm:$0xff] }
 0x493   :  { %3555 = vmatprep.subr.bf16.mxu0 %v3554_v46  ;;  %v3556_v24 = vpack.c.bf16 %v2363_v32, %v2357_v44  ;;  %v2288_v26 = vsel %vm468_vm9, %v4918_v37, %v4919_v18  ;;  %v2388_v62 = vsel %vm468_vm9, %v4958_v15, %v4959_v43  ;;  %v4984_v27 = vunpack.i.h.bf16 %v8196_v55  ;;  %3601 = vmatpush1.bf16.msra.mxu1 %v3600_v8  ;;  %v8250_v57 = vpop.permute.xlu0 %5001 }
 0x494   :  { %v2287_v9 = vsel %vm468_vm9, %v9199_v50, %v4918_v37  ;;  %v4983_v3 = vunpack.i.l.bf16 %v8196_v55  ;;  %v9201_v36 = vunpack.i.h.bf16 %v9200_v16  ;;  %v2294_v58 = vsel %vm468_vm9, %v4998_v49, %v4999_v6  ;;  %v8266_v6 = vpop.permute.xlu1 %5021 }
 0x495   :  { %v4974_v51 = vunpack.i.h.bf16 %v8150_v23  ;;  %v4973_v60 = vunpack.i.l.bf16 %v8150_v23  ;;  %v3602_v53 = vpack.c.bf16 %v2294_v58, %v2288_v26  ;;  %v9203_v32 = vunpack.i.h.bf16 %v9202_v13 }
 0x496   :  { %v2293_v17 = vsel %vm468_vm9, %v9201_v36, %v4998_v49  ;;  %3557 = vmatpush1.bf16.msra.mxu0 %v3556_v24  ;;  %v9205_v18 = vunpack.i.h.bf16 %v9204_v61  ;;  %v2382_v8 = vsel %vm468_vm9, %v4898_v25, %v4899_v0  ;;  %v3606_v34 = vpack.c.bf16 %v2306_v54, %v8092_v29  ;;  %v9208_v36 = vld [vmem:[#allocation41_spill] sm:$0xff] }
 0x497   :  { %v3604_v1 = vpack.c.bf16 %v2293_v17, %v2287_v9  ;;  %3559 = vmatprep.subr.bf16.mxu0 %v3558_v30  ;;  %v2381_v46 = vsel %vm468_vm9, %v9203_v32, %v4898_v25  ;;  %v4924_v7 = vunpack.i.h.bf16 %v8121_v59  ;;  %v4969_v52 = vunpack.i.h.bf16 %v8142_v19  ;;  %3603 = vmatprep.subr.bf16.mxu1 %v3602_v53  ;;  %v5012_v50 = vpop.permute.xlu0 %5011 }
 0x498   :  { %v2387_v37 = vsel %vm468_vm9, %v9205_v18, %v4958_v15  ;;  %v4968_v30 = vunpack.i.l.bf16 %v8142_v19  ;;  %v3562_v44 = vpack.c.bf16 %v2388_v62, %v2382_v8  ;;  %v4909_v24 = vunpack.i.h.bf16 %v9206_v38  ;;  %v9211_v18 = vld [vmem:[#allocation20_spill] sm:$0xff] }
 0x499   :  { %v5004_v15 = vunpack.i.h.bf16 %v8250_v57  ;;  %v5003_v49 = vunpack.i.l.bf16 %v8250_v57  ;;  %3605 = vmatpush1.bf16.msra.mxu1 %v3604_v1  ;;  %v2400_v29 = vsel %vm468_vm9, %v4983_v3, %v4984_v27  ;;  %v4908_v59 = vunpack.i.l.bf16 %v9206_v38 }
 0x49a   :  { %3561 = vmatpush1.bf16.msra.mxu0 %v3560_v35  ;;  %v3564_v54 = vpack.c.bf16 %v2387_v37, %v2381_v46  ;;  %v9207_v19 = vunpack.i.h.bf16 %v7797_v20  ;;  %3607 = vmatprep.subr.bf16.mxu1 %v3606_v34  ;;  %v2394_v9 = vsel %vm468_vm9, %v4973_v60, %v4974_v51  ;;  %v4994_v35 = vunpack.i.h.bf16 %v8209_v4 }
 0x49b   :  { %3563 = vmatprep.subr.bf16.mxu0 %v3562_v44  ;;  %v4993_v26 = vunpack.i.l.bf16 %v8209_v4  ;;  %v5014_v62 = vunpack.i.h.bf16 %v5012_v50  ;;  %v5013_v16 = vunpack.i.l.bf16 %v5012_v50  ;;  %v9209_v17 = vunpack.i.h.bf16 %v9208_v36  ;;  %v8301_v44 = vpop.permute.xlu1 %5026  ;;  %v9216_v50 = vld [vmem:[#allocation35_spill] sm:$0xff] }
 0x49c   :  { %v2311_v25 = vsel %vm468_vm9, %v9207_v19, %v4923_v39  ;;  %v3566_v20 = vpack.c.bf16 %v2400_v29, %v2394_v9  ;;  %v2312_v1 = vsel %vm468_vm9, %v4923_v39, %v4924_v7  ;;  %v2330_v53 = vsel %vm468_vm9, %v4968_v30, %v4969_v52  ;;  %v5017_v39 = vpop.permute.xlu0 %5016  ;;  %v9214_v19 = vld [vmem:[#allocation65_spill] sm:$0xff]  ;;  %v5100_v4 = vld [vmem:[#allocation6 + $0x58] sm:$0xff] }
 0x49d   :  { %v2399_v58 = vsel %vm468_vm9, %v9209_v17, %v4983_v3  ;;  %v9210_v13 = vunpack.i.h.bf16 %v7950_v41  ;;  %3609 = vmatpush1.bf16.msra.mxu1 %v3608_v56  ;;  %v2318_v46 = vsel %vm468_vm9, %v5013_v16, %v5014_v62  ;;  %v2412_v61 = vsel %vm468_vm9, %v5003_v49, %v5004_v15 }
 0x49e   :  { %3565 = vmatpush1.bf16.msra.mxu0 %v3564_v54  ;;  %v9212_v37 = vunpack.i.h.bf16 %v9211_v18  ;;  %v3610_v34 = vpack.c.bf16 %v2318_v46, %v2312_v1  ;;  %v2324_v41 = vsel %vm468_vm9, %v4908_v59, %v4909_v24  ;;  %v9213_v7 = vunpack.i.h.bf16 %v9147_v5 }
 0x49f   :  { %v2317_v32 = vsel %vm468_vm9, %v9210_v13, %v5013_v16  ;;  %3567 = vmatprep.subr.bf16.mxu0 %v3566_v20  ;;  %v2406_v38 = vsel %vm468_vm9, %v4993_v26, %v4994_v35  ;;  %v3614_v29 = vpack.c.bf16 %v2330_v53, %v2324_v41  ;;  %v4988_v54 = vunpack.i.l.bf16 %v8178_v40 }
 0x4a0   :  { %v2393_v3 = vsel %vm468_vm9, %v9212_v37, %v4973_v60  ;;  %v3612_v8 = vpack.c.bf16 %v2317_v32, %v2311_v25  ;;  %v2329_v56 = vsel %vm468_vm9, %v9213_v7, %v4968_v30  ;;  %v4989_v60 = vunpack.i.h.bf16 %v8178_v40  ;;  %3611 = vmatprep.subr.bf16.mxu1 %v3610_v34  ;;  %v9217_v30 = vld [vmem:[#allocation64_spill] sm:$0xff]  ;;  %v5042_v37 = vpop.permute.xlu1 %5041 }
 0x4a1   :  { %v3568_v52 = vpack.c.bf16 %v2399_v58, %v2393_v3  ;;  %v9215_v25 = vunpack.i.h.bf16 %v9214_v19  ;;  %2887 = vmatmul.mubr.f32.vlgmr.msra.gmra.mrb[24].mxu0 %v9216_v50  ;;  %v3570_v5 = vpack.c.bf16 %v2412_v61, %v2406_v38  ;;  %v9218_v9 = vunpack.i.h.bf16 %v9217_v30  ;;  %v9219_v58 = vld [vmem:[#allocation43_spill] sm:$0xff] }
 0x4a2   :  { %v5019_v16 = vunpack.i.h.bf16 %v5017_v39  ;;  %v5018_v36 = vunpack.i.l.bf16 %v5017_v39  ;;  %3613 = vmatpush1.bf16.msra.mxu1 %v3612_v8  ;;  %v9220_v20 = vunpack.i.h.bf16 %v9219_v58  ;;  %v5009_v1 = vunpack.i.h.bf16 %v8232_v48  ;;  %v9225_v19 = vld [vmem:[#allocation31_spill] sm:$0xff]  ;;  %v9227_v58 = vld [vmem:[#allocation58_spill] sm:$0xff] }
 0x4a3   :  { %v2411_v24 = vsel %vm468_vm9, %v9215_v25, %v5003_v49  ;;  %v2323_v62 = vsel %vm468_vm9, %v9218_v9, %v4908_v59  ;;  %3569 = vmatpush1.bf16.msra.mxu0 %v3568_v52  ;;  %v5032_v49 = vpop.permute.xlu0 %5031  ;;  %3615 = vmatprep.subr.bf16.mxu1 %v3614_v29  ;;  %v5008_v53 = vunpack.i.l.bf16 %v8232_v48  ;;  %v9221_v59 = vld [vmem:[#allocation56_spill] sm:$0xff]  ;;  %v9222_v61 = vunpack.i.h.bf16 %v7838_v14 }
 0x4a4   :  { %v3616_v17 = vpack.c.bf16 %v2329_v56, %v2323_v62  ;;  %v2405_v40 = vsel %vm468_vm9, %v9220_v20, %v4993_v26  ;;  %3571 = vmatprep.subr.bf16.mxu0 %v3570_v5  ;;  %v5034_v32 = vunpack.i.h.bf16 %v5032_v49  ;;  %v5033_v46 = vunpack.i.l.bf16 %v5032_v49  ;;  %2892 = vmatprep.mubr.f32.mxu0 %v9221_v59  ;;  %v5057_v9 = vpop.permute.xlu1 %5056 }
 0x4a5   :  { %v3572_v13 = vpack.c.bf16 %v2411_v24, %v2405_v40  ;;  %v2335_v18 = vsel %vm468_vm9, %v9222_v61, %v4988_v54  ;;  %2893 = vmatmul.mubr.f32.gmra.mrb[26].mxu0 %v8014_v28  ;;  %v2336_v26 = vsel %vm468_vm9, %v4988_v54, %v4989_v60  ;;  %v9223_v3 = vunpack.i.h.bf16 %v7993_v2 }
 0x4a6   :  { %3617 = vmatpush1.bf16.msra.mxu1 %v3616_v17  ;;  %v2342_v48 = vsel %vm468_vm9, %v5033_v46, %v5034_v32  ;;  %v2354_v39 = vsel %vm468_vm9, %v5018_v36, %v5019_v16  ;;  %2898 = vmatprep.mubr.f32.mxu0 %v8023_v45  ;;  %v2348_v7 = vsel %vm468_vm9, %v5008_v53, %v5009_v1  ;;  %v5024_v56 = vunpack.i.h.bf16 %v8266_v6 }
 0x4a7   :  { %v2341_v8 = vsel %vm468_vm9, %v9223_v3, %v5033_v46  ;;  %3573 = vmatpush1.bf16.msra.mxu0 %v3572_v13  ;;  %v5037_v41 = vpop.permute.xlu0 %5036  ;;  %v3618_v14 = vpack.c.bf16 %v2342_v48, %v2336_v26  ;;  %v5023_v52 = vunpack.i.l.bf16 %v8266_v6  ;;  %v9224_v2 = vunpack.i.h.bf16 %v9168_v33 }
 0x4a8   :  { %v3620_v34 = vpack.c.bf16 %v2341_v8, %v2335_v18  ;;  %v3622_v29 = vpack.c.bf16 %v2354_v39, %v2348_v7  ;;  %v5039_v60 = vunpack.i.h.bf16 %v5037_v41  ;;  %v5038_v54 = vunpack.i.l.bf16 %v5037_v41  ;;  %v5062_v48 = vpop.permute.xlu1 %5061 }
 0x4a9   :  { %v2353_v38 = vsel %vm468_vm9, %v9224_v2, %v5018_v36  ;;  %2899 = vmatmul.mubr.f32.gmra.mrb[28].mxu0 %v8060_v47  ;;  %3619 = vmatprep.subr.bf16.mxu1 %v3618_v14  ;;  %v9226_v25 = vunpack.i.h.bf16 %v9225_v19  ;;  %v5029_v5 = vunpack.i.h.bf16 %v8301_v44  ;;  %v5028_v33 = vunpack.i.l.bf16 %v8301_v44 }
 0x4aa   :  { %3621 = vmatpush1.bf16.msra.mxu1 %v3620_v34  ;;  %2904 = vmatprep.mubr.f32.mxu0 %v8063_v21  ;;  %v2359_v36 = vsel %vm468_vm9, %v4894_v12, %v5023_v52  ;;  %v5043_v17 = vunpack.i.l.bf16 %v5042_v37  ;;  %v2360_v20 = vsel %vm468_vm9, %v5023_v52, %v5024_v56  ;;  %v5044_v40 = vunpack.i.h.bf16 %v5042_v37  ;;  %v5097_v37 = vld [vmem:[#allocation6 + $0x10] sm:$0xff] }
 0x4ab   :  { %v2347_v24 = vsel %vm468_vm9, %v9226_v25, %v5008_v53  ;;  %v5047_v6 = vpop.permute.xlu0 %5046  ;;  %3623 = vmatprep.subr.bf16.mxu1 %v3622_v29  ;;  %v9228_v44 = vmov 0.0   ;;  %v2378_v53 = vsel %vm468_vm9, %v5038_v54, %v5039_v60  ;;  %v2372_v61 = vsel %vm468_vm9, %v5028_v33, %v5029_v5  ;;  %v5098_v29 = vld [vmem:[#allocation6 + $0x28] sm:$0xff] }
 0x4ac   :  { %v3624_v30 = vpack.c.bf16 %v2353_v38, %v2347_v24  ;;  %v5049_v62 = vunpack.i.h.bf16 %v5047_v6  ;;  %v5048_v16 = vunpack.i.l.bf16 %v5047_v6  ;;  %v2395_v10 = vsel %vm468_vm9, %v4974_v51, %v5043_v17  ;;  %v9230_v51 = vld [vmem:[#allocation21_spill] sm:$0xff] }
 0x4ad   :  { %2905 = vmatmul.mubr.f32.gmra.mrb[30].mxu0 %v9227_v58  ;;  %v5058_v18 = vunpack.i.l.bf16 %v5057_v9  ;;  %v3630_v3 = vpack.c.bf16 %v2378_v53, %v2372_v61  ;;  %v5059_v8 = vunpack.i.h.bf16 %v5057_v9  ;;  %v2396_v23 = vsel %vm468_vm9, %v5043_v17, %v5044_v40 }
 0x4ae   :  { %v2365_v1 = vsel %vm468_vm9, %v4954_v63, %v5048_v16  ;;  %3625 = vmatpush1.bf16.msra.mxu1 %v3624_v30  ;;  %2975 = vmatprep.mubr.f32.mxu0 %v9228_v44  ;;  %v2366_v49 = vsel %vm468_vm9, %v5048_v16, %v5049_v62  ;;  %v9229_v63 = vunpack.i.h.bf16 %v9179_v11  ;;  %v9231_v34 = vunpack.i.h.bf16 %v9230_v51 }
 0x4af   :  { %v3628_v42 = vpack.c.bf16 %v2365_v1, %v2359_v36  ;;  %v5052_v13 = vpop.permute.xlu0 %5051  ;;  %v3626_v12 = vpack.c.bf16 %v2366_v49, %v2360_v20  ;;  %v5063_v38 = vunpack.i.l.bf16 %v5062_v48  ;;  %v5064_v60 = vunpack.i.h.bf16 %v5062_v48 }
 0x4b0   :  { %v5054_v32 = vunpack.i.h.bf16 %v5052_v13  ;;  %v5053_v46 = vunpack.i.l.bf16 %v5052_v13  ;;  %v2377_v26 = vsel %vm468_vm9, %v9229_v63, %v5038_v54  ;;  %v2371_v41 = vsel %vm468_vm9, %v9231_v34, %v5028_v33 }
 0x4b1   :  { %3398 = vmatmul.mubr.msk.f32.vlgmr.msra.gmra.mrb[24].mxu0 %vm2631_vm11, %v5097_v37  ;;  %3627 = vmatprep.subr.bf16.mxu1 %v3626_v12  ;;  %v3632_v52 = vpack.c.bf16 %v2377_v26, %v2371_v41  ;;  %v2384_v19 = vsel %vm468_vm9, %v5058_v18, %v5059_v8  ;;  %v2407_v33 = vsel %vm468_vm9, %v4994_v35, %v5063_v38 }
 0x4b2   :  { %v2401_v39 = vsel %vm468_vm9, %v4984_v27, %v5053_v46  ;;  %3629 = vmatpush1.bf16.msra.mxu1 %v3628_v42  ;;  %2981 = vmatprep.mubr.f32.mxu0 %v9228_v44  ;;  %v2402_v11 = vsel %vm468_vm9, %v5053_v46, %v5054_v32  ;;  %v2383_v27 = vsel %vm468_vm9, %v4899_v0, %v5058_v18 }
 0x4b3   :  { %v3640_v14 = vpack.c.bf16 %v2401_v39, %v2395_v10  ;;  %v5067_v7 = vpop.permute.xlu0 %5066  ;;  %3631 = vmatprep.subr.bf16.mxu1 %v3630_v3  ;;  %v3638_v56 = vpack.c.bf16 %v2402_v11, %v2396_v23  ;;  %v2408_v30 = vsel %vm468_vm9, %v5063_v38, %v5064_v60 }
 0x4b4   :  { %v5069_v2 = vunpack.i.h.bf16 %v5067_v7  ;;  %v5068_v55 = vunpack.i.l.bf16 %v5067_v7 }
 0x4b5   :  { %3399 = vmatmul.mubr.msk.f32.gmra.mrb[26].mxu0 %vm2631_vm11, %v5098_v29  ;;  %3639 = vmatprep.subr.bf16.mxu0 %v3638_v56 }
 0x4b6   :  { %v2389_v54 = vsel %vm468_vm9, %v4959_v43, %v5068_v55  ;;  %3633 = vmatpush1.bf16.msra.mxu1 %v3632_v52  ;;  %3641 = vmatpush1.bf16.msra.mxu0 %v3640_v14  ;;  %v2390_v25 = vsel %vm468_vm9, %v5068_v55, %v5069_v2  ;;  %v9235_v55 = vld [vmem:[#allocation16_spill] sm:$0xff] }
 0x4b7   :  { %v3636_v24 = vpack.c.bf16 %v2389_v54, %v2383_v27  ;;  %v5072_v22 = vpop.permute.xlu0 %5071  ;;  %2987 = vmatprep.mubr.f32.mxu0 %v9228_v44  ;;  %v3634_v0 = vpack.c.bf16 %v2390_v25, %v2384_v19 }
 0x4b8   :  { %v5074_v5 = vunpack.i.h.bf16 %v5072_v22  ;;  %v5073_v6 = vunpack.i.l.bf16 %v5072_v22 }
 0x4b9   :  { %3400 = vmatmul.mubr.msk.f32.gmra.mrb[28].mxu0 %vm2631_vm11, %v5099_v31  ;;  %3635 = vmatprep.subr.bf16.mxu1 %v3634_v0 }
 0x4ba   :  { %v2413_v43 = vsel %vm468_vm9, %v5004_v15, %v5073_v6  ;;  %3637 = vmatpush1.bf16.msra.mxu1 %v3636_v24  ;;  %2993 = vmatprep.mubr.f32.mxu0 %v9228_v44  ;;  %v2414_v9 = vsel %vm468_vm9, %v5073_v6, %v5074_v5 }
 0x4bb   :  { %v3644_v62 = vpack.c.bf16 %v2413_v43, %v2407_v33  ;;  %v3642_v16 = vpack.c.bf16 %v2414_v9, %v2408_v30 }
 0x4bd   :  { %3401 = vmatmul.mubr.msk.f32.gmra.mrb[30].mxu0 %vm2631_vm11, %v5100_v4  ;;  %3065 = vmatmul.mubr.f32.vlgmr.msra.gmra.mrb[16].mxu1 %v9216_v50 }
 0x4be   :  { %3643 = vmatprep.subr.bf16.mxu0 %v3642_v16  ;;  %3070 = vmatprep.mubr.f32.mxu1 %v9221_v59 }
 0x4bf   :  { %3645 = vmatpush1.bf16.msra.mxu0 %v3644_v62  ;;  %3153 = vmatprep.mubr.f32.mxu0 %v9228_v44 }
 0x4c1   :  { %3071 = vmatmul.mubr.f32.gmra.mrb[18].mxu1 %v8014_v28  ;;  %v8413_v12 = vpop.permute.xlu1 %3203 }
 0x4c2   :  { %3402 = vmatmul.mubr.msk.f32.vlgmr.msra.gmra.mrb[32].mxu0 %vm2631_vm11, %v5097_v37  ;;  %3076 = vmatprep.mubr.f32.mxu1 %v8023_v45  ;;  %v9234_v37 = vld [vmem:[#allocation13_spill] sm:$0xff] }
 0x4c3   :  { %3159 = vmatprep.mubr.f32.mxu0 %v9228_v44 }
 0x4c4   :  { %v8415_v63 = vpop.permute.xlu0 %3207 }
 0x4c5   :  { %3077 = vmatmul.mubr.f32.gmra.mrb[20].mxu1 %v8060_v47  ;;  %v8419_v23 = vpop.permute.xlu1 %3211 }
 0x4c6   :  { %3403 = vmatmul.mubr.msk.f32.gmra.mrb[34].mxu0 %vm2631_vm11, %v5098_v29  ;;  %3082 = vmatprep.mubr.f32.mxu1 %v8063_v21  ;;  %v9232_v21 = vld [vmem:[#allocation14_spill] sm:$0xff] }
 0x4c7   :  { %3165 = vmatprep.mubr.f32.mxu0 %v9228_v44 }
 0x4c9   :  { %3083 = vmatmul.mubr.f32.gmra.mrb[22].mxu1 %v9227_v58 }
 0x4ca   :  { %3404 = vmatmul.mubr.msk.f32.gmra.mrb[36].mxu0 %vm2631_vm11, %v5099_v31  ;;  %v8429_v0 = vpop.permute.xlu1 %3215 }
 0x4cb   :  { %3171 = vmatprep.mubr.f32.mxu0 %v9228_v44  ;;  %v9233_v44 = vld [vmem:[#allocation12_spill] sm:$0xff] }
 0x4ce   :  { %3405 = vmatmul.mubr.msk.f32.gmra.mrb[38].mxu0 %vm2631_vm11, %v5100_v4 }
 0x4e9   :  { %v2799_v28 = vpop.f32.mrb[16].mxu0 }
 0x4ea   :  { %v2801_v45 = vpop.f32.mrb[17].mxu0 }
 0x4ee   :  { %v2805_v57 = vpop.f32.mrb[18].mxu0 }
 0x4ef   :  { %v2807_v15 = vpop.f32.mrb[19].mxu0 }
 0x4f2   :  { %v2811_v35 = vpop.f32.mrb[20].mxu0 }
 0x4f3   :  { %v2813_v47 = vpop.f32.mrb[21].mxu0 }
 0x4f6   :  { %v2817_v50 = vpop.f32.mrb[22].mxu0 }
 0x4f7   :  { %v2819_v59 = vpop.f32.mrb[23].mxu0 }
 0x544   :  { %v2710_v36 = vpop.f32.mrb[8].mxu1 }
 0x545   :  { %v2711_v17 = vadd.f32 %v2710_v36, %v9232_v21  ;;  %v2712_v20 = vpop.f32.mrb[9].mxu1 }
 0x546   :  { %v2713_v58 = vadd.f32 %v2712_v20, %v9232_v21 }
 0x547   :  { %v2800_v40 = vadd.f32 %v2799_v28, %v2711_v17 }
 0x548   :  { %v2802_v1 = vadd.f32 %v2801_v45, %v2713_v58 }
 0x549   :  { %v2716_v49 = vpop.f32.mrb[10].mxu1  ;;  %v3178_v32 = vmax.f32 %v2800_v40, 0.0 }
 0x54a   :  { %v2717_v53 = vadd.f32 %v2716_v49, %v9233_v44  ;;  %v2718_v42 = vpop.f32.mrb[11].mxu1  ;;  %v3179_v61 = vmax.f32 %v2802_v1, 0.0 }
 0x54b   :  { %v2719_v13 = vadd.f32 %v2718_v42, %v9233_v44  ;;  %v3218_v11 = vmul.f32 %v8413_v12, %v3178_v32 }
 0x54c   :  { %v2806_v46 = vadd.f32 %v2805_v57, %v2717_v53  ;;  %v3219_v41 = vmul.f32 %v8413_v12, %v3179_v61 }
 0x54d   :  { %v2808_v10 = vadd.f32 %v2807_v15, %v2719_v13 }
 0x54e   :  { %v2722_v18 = vpop.f32.mrb[12].mxu1  ;;  %v3184_v26 = vmax.f32 %v2806_v46, 0.0 }
 0x54f   :  { %v2723_v3 = vadd.f32 %v2722_v18, %v9234_v37  ;;  %v2724_v8 = vpop.f32.mrb[13].mxu1  ;;  %v3185_v48 = vmax.f32 %v2808_v10, 0.0 }
 0x550   :  { %v2725_v39 = vadd.f32 %v2724_v8, %v9234_v37  ;;  %v3224_v51 = vmul.f32 %v8415_v63, %v3184_v26 }
 0x551   :  { %v2812_v34 = vadd.f32 %v2811_v35, %v2723_v3  ;;  %v3225_v14 = vmul.f32 %v8415_v63, %v3185_v48 }
 0x552   :  { %v2814_v7 = vadd.f32 %v2813_v47, %v2725_v39  ;;  %v2728_v56 = vpop.f32.mrb[14].mxu1  ;;  %v3242_v52 = vadd.f32 %v3224_v51, %v3218_v11 }
 0x553   :  { %v3190_v2 = vmax.f32 %v2812_v34, 0.0  ;;  %v2729_v27 = vadd.f32 %v2728_v56, %v9235_v55  ;;  %v2730_v38 = vpop.f32.mrb[15].mxu1  ;;  %v3251_v29 = vadd.f32 %v3225_v14, %v3219_v41 }
 0x554   :  { %v3191_v60 = vmax.f32 %v2814_v7, 0.0  ;;  %v2731_v54 = vadd.f32 %v2730_v38, %v9235_v55 }
 0x555   :  { %v3230_v19 = vmul.f32 %v8419_v23, %v3190_v2  ;;  %v2818_v25 = vadd.f32 %v2817_v50, %v2729_v27 }
 0x556   :  { %v3231_v24 = vmul.f32 %v8419_v23, %v3191_v60  ;;  %v2820_v22 = vadd.f32 %v2819_v59, %v2731_v54  ;;  %v8433_v59 = vpop.permute.xlu0 %3299 }
 0x557   :  { %v3196_v5 = vmax.f32 %v2818_v25, 0.0  ;;  %v3243_v6 = vadd.f32 %v3242_v52, %v3230_v19 }
 0x558   :  { %v3197_v33 = vmax.f32 %v2820_v22, 0.0  ;;  %v3252_v31 = vadd.f32 %v3251_v29, %v3231_v24 }
 0x559   :  { %v3236_v43 = vmul.f32 %v8429_v0, %v3196_v5 }
 0x55a   :  { %v3237_v30 = vmul.f32 %v8429_v0, %v3197_v33 }
 0x55b   :  { %v3244_v9 = vadd.f32 %v3243_v6, %v3236_v43 }
 0x55c   :  { %v3253_v62 = vadd.f32 %v3252_v31, %v3237_v30 }
 0x55d   :  { %v3245_v16 = vrot.slane %v3244_v9, 4 }
 0x55e   :  { %v3254_v4 = vrot.slane %v3253_v62, 4 }
 0x55f   :  { %v3246_v28 = vadd.f32 %v3245_v16, %v3244_v9 }
 0x560   :  { %v3255_v45 = vadd.f32 %v3254_v4, %v3253_v62 }
 0x561   :  { %v3247_v57 = vrot.slane %v3246_v28, 2 }
 0x562   :  { %v3256_v15 = vrot.slane %v3255_v45, 2 }
 0x563   :  { %v3248_v35 = vadd.f32 %v3247_v57, %v3246_v28 }
 0x564   :  { %v3257_v47 = vadd.f32 %v3256_v15, %v3255_v45 }
 0x565   :  { %v3249_v50 = vrot.slane %v3248_v35, 1 }
 0x566   :  { %v3258_v36 = vrot.slane %v3257_v47, 1 }
 0x567   :  { %v3250_v17 = vadd.f32 %v3249_v50, %v3248_v35 }
 0x568   :  { %v3259_v20 = vadd.f32 %v3258_v36, %v3257_v47 }
 0x569   :  { %v8436_v58 = vadd.f32 %v8433_v59, %v3250_v17 }
 0x56a   :  { %v8439_v40 = vadd.f32 %v8433_v59, %v3259_v20 }
 0x56c   :  { %v3314_v1 = vcombine.low %v8436_v58, %v8439_v40 }
 0x584   :  { %v2977_v49 = vpop.f32.mrb[24].mxu0 }
 0x585   :  { %v3662_v53 = vadd.f32 %v2977_v49, %v9232_v21  ;;  %v2979_v42 = vpop.f32.mrb[25].mxu0 }
 0x586   :  { %v3663_v13 = vadd.f32 %v2979_v42, %v9232_v21 }
 0x587   :  { %v3180_v46 = vmax.f32 %v3662_v53, 0.0 }
 0x588   :  { %v2983_v32 = vpop.f32.mrb[26].mxu0  ;;  %v3181_v18 = vmax.f32 %v3663_v13, 0.0 }
 0x589   :  { %v3664_v61 = vadd.f32 %v2983_v32, %v9233_v44  ;;  %v2985_v10 = vpop.f32.mrb[27].mxu0  ;;  %v3220_v39 = vmul.f32 %v8413_v12, %v3180_v46 }
 0x58a   :  { %v3665_v26 = vadd.f32 %v2985_v10, %v9233_v44  ;;  %v3221_v41 = vmul.f32 %v8413_v12, %v3181_v18 }
 0x58b   :  { %v3186_v3 = vmax.f32 %v3664_v61, 0.0 }
 0x58c   :  { %v3187_v8 = vmax.f32 %v3665_v26, 0.0  ;;  %v2989_v48 = vpop.f32.mrb[28].mxu0 }
 0x58d   :  { %v3226_v11 = vmul.f32 %v8415_v63, %v3186_v3  ;;  %v3666_v51 = vadd.f32 %v2989_v48, %v9234_v37  ;;  %v2991_v34 = vpop.f32.mrb[29].mxu0 }
 0x58e   :  { %v3227_v14 = vmul.f32 %v8415_v63, %v3187_v8  ;;  %v3667_v7 = vadd.f32 %v2991_v34, %v9234_v37  ;;  %v5193_v34 = vmov 1966171168  }
 0x58f   :  { %v3260_v56 = vadd.f32 %v3226_v11, %v3220_v39  ;;  %v3192_v52 = vmax.f32 %v3666_v51, 0.0 }
 0x590   :  { %v3269_v2 = vadd.f32 %v3227_v14, %v3221_v41  ;;  %v3193_v27 = vmax.f32 %v3667_v7, 0.0  ;;  %v2995_v38 = vpop.f32.mrb[30].mxu0  ;;  %v3066_v29 = vpop.f32.mrb[16].mxu1  ;;  %v3318_v41 = vunpack.c.l.s4 %v5193_v34  ;;  %v9237_v34 = vlaneseq }
 0x591   :  { %v3232_v60 = vmul.f32 %v8419_v23, %v3192_v52  ;;  %v3668_v54 = vadd.f32 %v2995_v38, %v9235_v55  ;;  %v2997_v19 = vpop.f32.mrb[31].mxu0  ;;  %v3068_v25 = vpop.f32.mrb[17].mxu1  ;;  %v3067_v31 = vadd.f32 %v3066_v29, %v9232_v21 }
 0x592   :  { %v3233_v24 = vmul.f32 %v8419_v23, %v3193_v27  ;;  %v3669_v22 = vadd.f32 %v2997_v19, %v9235_v55  ;;  %v3069_v62 = vadd.f32 %v3068_v25, %v9232_v21  ;;  %vm3357_vm12 = vcmp.lt.s32.totalorder %v9237_v34, 768 }
 0x593   :  { %v3261_v5 = vadd.f32 %v3260_v56, %v3232_v60  ;;  %v3198_v6 = vmax.f32 %v3668_v54, 0.0 }
 0x594   :  { %v3270_v33 = vadd.f32 %v3269_v2, %v3233_v24  ;;  %v3199_v43 = vmax.f32 %v3669_v22, 0.0  ;;  %v3072_v30 = vpop.f32.mrb[18].mxu1 }
 0x595   :  { %v3238_v9 = vmul.f32 %v8429_v0, %v3198_v6  ;;  %v3155_v16 = vpop.f32.mrb[32].mxu0  ;;  %v3074_v4 = vpop.f32.mrb[19].mxu1  ;;  %v3073_v50 = vadd.f32 %v3072_v30, %v9233_v44 }
 0x596   :  { %v3239_v28 = vmul.f32 %v8429_v0, %v3199_v43  ;;  %v3156_v45 = vadd.f32 %v3155_v16, %v3067_v31  ;;  %v3157_v57 = vpop.f32.mrb[33].mxu0  ;;  %v3075_v20 = vadd.f32 %v3074_v4, %v9233_v44 }
 0x597   :  { %v3262_v15 = vadd.f32 %v3261_v5, %v3238_v9  ;;  %v3158_v35 = vadd.f32 %v3157_v57, %v3069_v62 }
 0x598   :  { %v3271_v47 = vadd.f32 %v3270_v33, %v3239_v28  ;;  %v3078_v36 = vpop.f32.mrb[20].mxu1  ;;  %v3182_v13 = vmax.f32 %v3156_v45, 0.0 }
 0x599   :  { %v3263_v17 = vrot.slane %v3262_v15, 4  ;;  %v3161_v49 = vpop.f32.mrb[34].mxu0  ;;  %v3080_v53 = vpop.f32.mrb[21].mxu1  ;;  %v3183_v61 = vmax.f32 %v3158_v35, 0.0  ;;  %v3079_v26 = vadd.f32 %v3078_v36, %v9234_v37 }
 0x59a   :  { %v3272_v42 = vrot.slane %v3271_v47, 4  ;;  %v3162_v21 = vadd.f32 %v3161_v49, %v3073_v50  ;;  %v3163_v32 = vpop.f32.mrb[35].mxu0  ;;  %v3081_v39 = vadd.f32 %v3080_v53, %v9234_v37  ;;  %v3222_v7 = vmul.f32 %v8413_v12, %v3182_v13  ;;  %v9236_v50 = vld [vmem:[#allocation15_spill] sm:$0xff] }
 0x59b   :  { %v3264_v46 = vadd.f32 %v3263_v17, %v3262_v15  ;;  %v3164_v10 = vadd.f32 %v3163_v32, %v3075_v20  ;;  %v3223_v38 = vmul.f32 %v8413_v12, %v3183_v61  ;;  %v3319_v12 = vunpack.c.0.s8 %v3318_v41 }
 0x59c   :  { %v3273_v18 = vadd.f32 %v3272_v42, %v3271_v47  ;;  %v3188_v3 = vmax.f32 %v3162_v21, 0.0  ;;  %v3084_v8 = vpop.f32.mrb[22].mxu1 }
 0x59d   :  { %v3265_v48 = vrot.slane %v3264_v46, 2  ;;  %v3189_v11 = vmax.f32 %v3164_v10, 0.0  ;;  %v3167_v51 = vpop.f32.mrb[36].mxu0  ;;  %v3086_v44 = vpop.f32.mrb[23].mxu1  ;;  %v3085_v19 = vadd.f32 %v3084_v8, %v9235_v55  ;;  %v3322_v36 = vsub.s32 %v3319_v12, %v9236_v50 }
 0x59e   :  { %v3274_v14 = vrot.slane %v3273_v18, 2  ;;  %v3228_v56 = vmul.f32 %v8415_v63, %v3188_v3  ;;  %v3168_v52 = vadd.f32 %v3167_v51, %v3079_v26  ;;  %v3169_v2 = vpop.f32.mrb[37].mxu0  ;;  %v3087_v5 = vadd.f32 %v3086_v44, %v9235_v55 }
 0x59f   :  { %v3266_v27 = vadd.f32 %v3265_v48, %v3264_v46  ;;  %v3229_v29 = vmul.f32 %v8415_v63, %v3189_v11  ;;  %v3170_v60 = vadd.f32 %v3169_v2, %v3081_v39  ;;  %v3323_v42 = vrot.slane %v3314_v1, %v3322_v36 }
 0x5a0   :  { %v3275_v54 = vadd.f32 %v3274_v14, %v3273_v18  ;;  %v3278_v37 = vadd.f32 %v3228_v56, %v3222_v7  ;;  %v3194_v25 = vmax.f32 %v3168_v52, 0.0 }
 0x5a1   :  { %v3267_v24 = vrot.slane %v3266_v27, 1  ;;  %v3287_v22 = vadd.f32 %v3229_v29, %v3223_v38  ;;  %v3195_v6 = vmax.f32 %v3170_v60, 0.0  ;;  %v3173_v33 = vpop.f32.mrb[38].mxu0 }
 0x5a2   :  { %v3276_v31 = vrot.slane %v3275_v54, 1  ;;  %v3234_v43 = vmul.f32 %v8419_v23, %v3194_v25  ;;  %v3174_v30 = vadd.f32 %v3173_v33, %v3085_v19  ;;  %v3175_v9 = vpop.f32.mrb[39].mxu0 }
 0x5a3   :  { %v3268_v62 = vadd.f32 %v3267_v24, %v3266_v27  ;;  %v3235_v63 = vmul.f32 %v8419_v23, %v3195_v6  ;;  %v3176_v16 = vadd.f32 %v3175_v9, %v3087_v5 }
 0x5a4   :  { %v3277_v4 = vadd.f32 %v3276_v31, %v3275_v54  ;;  %v3279_v28 = vadd.f32 %v3278_v37, %v3234_v43  ;;  %v3200_v45 = vmax.f32 %v3174_v30, 0.0 }
 0x5a5   :  { %v3304_v57 = vadd.f32 %v8433_v59, %v3268_v62  ;;  %v3288_v15 = vadd.f32 %v3287_v22, %v3235_v63  ;;  %v3201_v35 = vmax.f32 %v3176_v16, 0.0 }
 0x5a6   :  { %v3305_v55 = vadd.f32 %v8433_v59, %v3277_v4  ;;  %v3240_v47 = vmul.f32 %v8429_v0, %v3200_v45 }
 0x5a7   :  { %v3241_v17 = vmul.f32 %v8429_v0, %v3201_v35 }
 0x5a8   :  { %v3280_v20 = vadd.f32 %v3279_v28, %v3240_v47  ;;  %v3315_v49 = vcombine.low %v3304_v57, %v3305_v55 }
 0x5a9   :  { %v3289_v53 = vadd.f32 %v3288_v15, %v3241_v17 }
 0x5aa   :  { %v3281_v23 = vrot.slane %v3280_v20, 4  ;;  %v3330_v13 = vrot.slane %v3315_v49, %v3322_v36 }
 0x5ab   :  { %v3290_v21 = vrot.slane %v3289_v53, 4 }
 0x5ac   :  { %v3282_v32 = vadd.f32 %v3281_v23, %v3280_v20  ;;  %v3338_v46 = vcombine.low %v3323_v42, %v3330_v13 }
 0x5ad   :  { %v3291_v61 = vadd.f32 %v3290_v21, %v3289_v53 }
 0x5ae   :  { %v3283_v10 = vrot.slane %v3282_v32, 2  ;;  %v3345_v40 = vrot.slane %v3338_v46, %v3322_v36 }
 0x5af   :  { %v3292_v18 = vrot.slane %v3291_v61, 2 }
 0x5b0   :  { %v3284_v26 = vadd.f32 %v3283_v10, %v3282_v32 }
 0x5b1   :  { %v3293_v3 = vadd.f32 %v3292_v18, %v3291_v61 }
 0x5b2   :  { %v3285_v8 = vrot.slane %v3284_v26, 1 }
 0x5b3   :  { %v3294_v48 = vrot.slane %v3293_v3, 1 }
 0x5b4   :  { %v3286_v0 = vadd.f32 %v3285_v8, %v3284_v26 }
 0x5b5   :  { %v3295_v39 = vadd.f32 %v3294_v48, %v3293_v3 }
 0x5b6   :  { %v3306_v11 = vadd.f32 %v8433_v59, %v3286_v0 }
 0x5b7   :  { %v3307_v51 = vadd.f32 %v8433_v59, %v3295_v39 }
 0x5b9   :  { %v3316_v44 = vcombine.low %v3306_v11, %v3307_v51 }
 0x5bb   :  { %v3337_v58 = vrot.slane %v3316_v44, %v3322_v36 }
 0x5bd   :  { %v3352_v1 = vrot.slane %v3337_v58, %v3322_v36 }
 0x5bf   :  { %v3353_v41 = vcombine.low %v3345_v40, %v3352_v1 }
 0x5c1   :  { %3359 = vst.msk [vmem:[#allocation8] sm:$0x3f] %vm3357_vm12, %v3353_v41 }
 0x5c2   :  { %5156 = shalt.err (!%p5153_p6)
}
 0x5c3   :  { %s5157_s14 = scalar_lea.hbm %s8501_s5, 96 }
 0x5c4   :  { %p5158_p7 = scmp.ne.s32.totalorder %s8501_s5, %s5157_s14  ;;  %p5161_p8 = scmp.lt.u32.totalorder %s5157_s14, %s8501_s5 }
 0x5c6   :  { %p5163_p9 = pnand %p5161_p8, %p5158_p7 }
 0x5c8   :  { %5166 = shalt.err (!%p5163_p9)
}
 0x5c9   :  { %3369 = dma.vmem_to_hbm [thread:$0]  %s3367_s10, 96, %s8501_s5, [#allocation5]  }
 0x5ca   :  { %5171 = dma.done.wait [#allocation5], 96  }
 0x5cb   :  { %5172 = vsyncadd [#allocation5], 4294967200 }
 0x5cc   :  { %3373 = vsyncpa [#allocation4], 1 }
 0x5cd   :  { %3374 = vsyncpa [#allocation7], 1 }
 0x5ce   :  { %3375 = vsyncpa [#allocation5], 1 }

</bundles_post_ra>
